<compile_context>
chip_gen: v7x
topology: tpu7x:2x2x1
jax: 0.10.0
libtpu: 0.0.40
codegen_flags: <defaults>
</compile_context>

<pallas_src>
import functools

import jax
import jax.numpy as jnp
import numpy as np
from jax import lax
from jax.experimental import pallas as pl
from jax.experimental.pallas import tpu as pltpu


def _round_up(x, m):
    return ((x + m - 1) // m) * m


# ----------------------------------------------------------------------------
# Kernel
# ----------------------------------------------------------------------------
def _bigru_kernel(xf_ref, xb_ref, wihf_ref, wihb_ref, bihf_ref, bihb_ref,
                  whhf_ref, whhb_ref, bhhnf_ref, bhhnb_ref,
                  o_ref, gxf_ref, gxb_ref, *, T, C):
    """
    Grid: (nC,) over time chunks of C steps, iterated sequentially ("arbitrary").

    xf_ref  : (C*Bp, D)   chunk c of time-major x (forward order)
    xb_ref  : (C*Bp, D)   chunk nC-1-c of time-major x (reverse order)
    wih*_ref: (D, 3*Hp)   per-direction input weights, gates [r|z|n], zero-padded
    bih*_ref: (1, 3*Hp)   b_ih (+ b_hh folded for r,z; n keeps b_ih only)
    whh*_ref: (Hp, 3*Hp)  per-direction recurrent weights, zero-padded
    bhhn*_ref:(1, Hp)     b_hh of the n gate (applied inside r*(...))
    o_ref   : (Bp, 2*Hp)  resident across the grid: [h_fwd | h_bwd]
    gx*_ref : (C*Bp, 3*Hp) VMEM scratch, per-chunk input projections
    """
    c = pl.program_id(0)
    nC = pl.num_programs(0)
    Bp, twoHp = o_ref.shape
    Hp = twoHp // 2

    @pl.when(c == 0)
    def _():
        o_ref[...] = jnp.zeros_like(o_ref)    # h0 = 0 for both directions

    # ---- Stage 1: per-chunk input projection, one MXU matmul per direction. ----
    gxf_ref[...] = (jnp.dot(xf_ref[...], wihf_ref[...],
                            preferred_element_type=jnp.float32) + bihf_ref[...])
    gxb_ref[...] = (jnp.dot(xb_ref[...], wihb_ref[...],
                            preferred_element_type=jnp.float32) + bihb_ref[...])

    # ---- Stage 2: fused fwd/bwd recurrence over the C steps of this chunk. ----
    whh_f = whhf_ref[...]                                   # (Hp, 3Hp)
    whh_b = whhb_ref[...]
    bhhn_f = jnp.broadcast_to(bhhnf_ref[...], (Bp, Hp))     # hoisted broadcasts
    bhhn_b = jnp.broadcast_to(bhhnb_ref[...], (Bp, Hp))

    def sigmoid(v):                  # exact: sigmoid(x) = 0.5*(1 + tanh(x/2))
        return 0.5 * (jnp.tanh(0.5 * v) + 1.0)

    def gru_step(gx, gh, bhh_n, h):  # PyTorch gate order r, z, n
        r = sigmoid(gx[:, 0:Hp] + gh[:, 0:Hp])
        z = sigmoid(gx[:, Hp:2 * Hp] + gh[:, Hp:2 * Hp])
        n = jnp.tanh(gx[:, 2 * Hp:3 * Hp] + r * (gh[:, 2 * Hp:3 * Hp] + bhh_n))
        return n + z * (h - n)       # == (1-z)*n + z*h

    def body(t, carry):
        hf, hb = carry

        # Forward chain: global time c*C + t (increasing).
        rowf = pl.multiple_of(t * Bp, Bp)
        ghf = jnp.dot(hf, whh_f, preferred_element_type=jnp.float32)
        hf_new = gru_step(gxf_ref[pl.ds(rowf, Bp), :], ghf, bhhn_f, hf)
        hf = jnp.where(c * C + t < T, hf_new, hf)          # mask padded steps

        # Backward chain: chunk nC-1-c, local time C-1-t (global time decreasing).
        rowb = pl.multiple_of((C - 1 - t) * Bp, Bp)
        ghb = jnp.dot(hb, whh_b, preferred_element_type=jnp.float32)
        hb_new = gru_step(gxb_ref[pl.ds(rowb, Bp), :], ghb, bhhn_b, hb)
        hb = jnp.where((nC - 1 - c) * C + (C - 1 - t) < T, hb_new, hb)
        return hf, hb

    # Full unroll for short chunks; modest unroll otherwise (avoid vreg spills).
    unroll = True if C <= 16 else 4
    hf, hb = lax.fori_loop(0, C, body,
                           (o_ref[:, 0:Hp], o_ref[:, Hp:twoHp]),
                           unroll=unroll)
    o_ref[:, 0:Hp] = hf       # lane-aligned (128-wide) stores
    o_ref[:, Hp:twoHp] = hb


# ----------------------------------------------------------------------------
# Parameter packing (done once, outside the kernel, in plain JAX)
# ----------------------------------------------------------------------------
def _pack_gates(w, H, Hp):
    """(K, 3H) with gate blocks [r|z|n] -> (K, 3Hp), each gate at offset g*Hp."""
    K = w.shape[0]
    out = jnp.zeros((K, 3 * Hp), jnp.float32)
    for g in range(3):
        out = out.at[:, g * Hp:g * Hp + H].set(w[:, g * H:(g + 1) * H])
    return out


def _pack_direction(wih, whh, bih, bhh, H, Hp):
    wih_p = _pack_gates(wih, H, Hp)                                 # (D, 3Hp)

    # Fold b_ih + b_hh for the r,z gates; the n gate keeps only b_ih
    # (its b_hh is applied inside r * (W_hh_n h + b_hh_n)).
    b_rz = bih[:, 0:2 * H] + bhh[:, 0:2 * H]
    b_folded = jnp.concatenate([b_rz, bih[:, 2 * H:3 * H]], axis=1)  # (1, 3H)
    bih_p = _pack_gates(b_folded, H, Hp)                             # (1, 3Hp)

    whh_p = jnp.zeros((Hp, 3 * Hp), jnp.float32)
    whh_p = whh_p.at[0:H, :].set(_pack_gates(whh, H, Hp))            # (Hp, 3Hp)

    bhhn = jnp.zeros((1, Hp), jnp.float32)
    bhhn = bhhn.at[:, 0:H].set(bhh[:, 2 * H:3 * H])                  # (1, Hp)
    return wih_p, bih_p, whh_p, bhhn


# ----------------------------------------------------------------------------
# Wrapper
# ----------------------------------------------------------------------------
def bigru_summarizer(x, params, *, chunk=64):
    """x: (B, T, D) float32.  Returns (B, 2H) float32 = [h_fwd | h_bwd]."""
    B, T, D = x.shape
    H = params["whh_f"].shape[0]
    Hp = _round_up(H, 128)           # lane-align hidden/gate width
    Bp = _round_up(B, 8)             # sublane-align batch

    # Time-chunking: bounds VMEM to O(C) and lets Pallas pipeline x DMAs.
    C = _round_up(min(chunk, _round_up(T, 8)), 8)
    Tp = _round_up(T, C)
    nC = Tp // C

    wih_f, bih_f, whh_f, bhhn_f = _pack_direction(
        params["wih_f"], params["whh_f"], params["bih_f"], params["bhh_f"], H, Hp)
    wih_b, bih_b, whh_b, bhhn_b = _pack_direction(
        params["wih_b"], params["whh_b"], params["bih_b"], params["bhh_b"], H, Hp)

    # Time-major, batch padded to Bp, time padded to a multiple of C, flattened.
    x_tm = jnp.transpose(x, (1, 0, 2))                              # (T, B, D)
    x_tm = jnp.pad(x_tm, ((0, Tp - T), (0, Bp - B), (0, 0)))        # (Tp, Bp, D)
    x_flat = x_tm.reshape(Tp * Bp, D)                               # (Tp*Bp, D)

    # VMEM budget: x chunks (2 streams, double-buffered), weights, resident
    # output, and the two chunk-sized gx scratches.  Cap at 80% of physical VMEM.
    buf_bytes = 4 * (
        2 * 2 * (C * Bp * D)
        + 2 * 2 * (D * 3 * Hp + 3 * Hp + Hp * 3 * Hp + Hp)
        + 2 * (Bp * 2 * Hp)
        + 2 * (C * Bp * 3 * Hp)
    )
    try:
        phys = getattr(pltpu.get_tpu_info(), "vmem_capacity_bytes",
                       64 * 1024 * 1024)
    except Exception:
        phys = 64 * 1024 * 1024
    vmem_limit = int(min(int(phys * 0.8),
                         max(32 * 1024 * 1024, int(1.5 * buf_bytes))))

    kernel = functools.partial(_bigru_kernel, T=T, C=C)

    grid_spec = pltpu.PrefetchScalarGridSpec(
        num_scalar_prefetch=0,
        grid=(nC,),
        in_specs=[
            pl.BlockSpec((C * Bp, D), lambda c: (c, 0)),            # x, fwd order
            pl.BlockSpec((C * Bp, D), lambda c: (nC - 1 - c, 0)),   # x, bwd order
            pl.BlockSpec((D, 3 * Hp), lambda c: (0, 0)),            # wih_f
            pl.BlockSpec((D, 3 * Hp), lambda c: (0, 0)),            # wih_b
            pl.BlockSpec((1, 3 * Hp), lambda c: (0, 0)),            # bih_f (folded)
            pl.BlockSpec((1, 3 * Hp), lambda c: (0, 0)),            # bih_b (folded)
            pl.BlockSpec((Hp, 3 * Hp), lambda c: (0, 0)),           # whh_f
            pl.BlockSpec((Hp, 3 * Hp), lambda c: (0, 0)),           # whh_b
            pl.BlockSpec((1, Hp), lambda c: (0, 0)),                # bhh_n fwd
            pl.BlockSpec((1, Hp), lambda c: (0, 0)),                # bhh_n bwd
        ],
        out_specs=pl.BlockSpec((Bp, 2 * Hp), lambda c: (0, 0)),     # resident
        scratch_shapes=[pltpu.VMEM((C * Bp, 3 * Hp), jnp.float32),
                        pltpu.VMEM((C * Bp, 3 * Hp), jnp.float32)],
    )

    out_pad = pl.pallas_call(
        kernel,
        out_shape=jax.ShapeDtypeStruct((Bp, 2 * Hp), jnp.float32),
        grid_spec=grid_spec,
        compiler_params=pltpu.CompilerParams(
            dimension_semantics=("arbitrary",),
            vmem_limit_bytes=vmem_limit),
    )(x_flat, x_flat, wih_f, wih_b, bih_f, bih_b, whh_f, whh_b, bhhn_f, bhhn_b)

    # Un-pad: logical output is concat(h_fwd[:, :H], h_bwd[:, :H]).
    return jnp.concatenate([out_pad[:B, 0:H], out_pad[:B, Hp:Hp + H]], axis=-1)


# ----------------------------------------------------------------------------
# Init + pure-JAX reference
# ----------------------------------------------------------------------------
def init_params(key, input_size, hidden_size):
    """Deterministic init mimicking nn.GRU's uniform(-1/sqrt(H), 1/sqrt(H)).
    Weights stored pre-transposed: wih (D, 3H), whh (H, 3H); biases (1, 3H)."""
    k = 1.0 / np.sqrt(hidden_size)
    keys = jax.random.split(key, 8)

    def u(kk, shape):
        return jax.random.uniform(kk, shape, jnp.float32, -k, k)

    return {
        "wih_f": u(keys[0], (input_size, 3 * hidden_size)),
        "whh_f": u(keys[1], (hidden_size, 3 * hidden_size)),
        "bih_f": u(keys[2], (1, 3 * hidden_size)),
        "bhh_f": u(keys[3], (1, 3 * hidden_size)),
        "wih_b": u(keys[4], (input_size, 3 * hidden_size)),
        "whh_b": u(keys[5], (hidden_size, 3 * hidden_size)),
        "bih_b": u(keys[6], (1, 3 * hidden_size)),
        "bhh_b": u(keys[7], (1, 3 * hidden_size)),
    }


def _reference(x, params):
    """Pure-JAX reference of the same bidirectional GRU (PyTorch semantics)."""
    B, T, D = x.shape
    H = params["whh_f"].shape[0]

    def step(h, x_t, wih, whh, bih, bhh):
        gx = x_t @ wih + bih
        gh = h @ whh + bhh
        r = jax.nn.sigmoid(gx[:, 0:H] + gh[:, 0:H])
        z = jax.nn.sigmoid(gx[:, H:2 * H] + gh[:, H:2 * H])
        n = jnp.tanh(gx[:, 2 * H:3 * H] + r * gh[:, 2 * H:3 * H])
        return (1.0 - z) * n + z * h

    h_f = jnp.zeros((B, H), jnp.float32)
    for t in range(T):
        h_f = step(h_f, x[:, t], params["wih_f"], params["whh_f"],
                   params["bih_f"], params["bhh_f"])
    h_b = jnp.zeros((B, H), jnp.float32)
    for t in reversed(range(T)):
        h_b = step(h_b, x[:, t], params["wih_b"], params["whh_b"],
                   params["bih_b"], params["bhh_b"])
    return jnp.concatenate([h_f, h_b], axis=-1)


if __name__ == "__main__":
    B, T, D, H = 2, 8, 16, 32
    key = jax.random.PRNGKey(0)
    kx, kp = jax.random.split(key)
    x = jax.random.normal(kx, (B, T, D), jnp.float32)
    params = init_params(kp, D, H)

    out = bigru_summarizer(x, params)
    out = jax.block_until_ready(out)

    ref = jax.block_until_ready(_reference(x, params))
    assert out.shape == (B, 2 * H)
    np.testing.assert_allclose(np.asarray(out), np.asarray(ref),
                               rtol=1e-5, atol=1e-5)
    print("KERNEL_OK")
</pallas_src>

<mosaic_0001>
module attributes {stable_mosaic.version = 11 : i64} {
  func.func @_bigru_kernel(%arg0: i32, %arg1: memref<64x16xf32, #tpu.memory_space<vmem>>, %arg2: memref<64x16xf32, #tpu.memory_space<vmem>>, %arg3: memref<16x384xf32, #tpu.memory_space<vmem>>, %arg4: memref<16x384xf32, #tpu.memory_space<vmem>>, %arg5: memref<1x384xf32, #tpu.memory_space<vmem>>, %arg6: memref<1x384xf32, #tpu.memory_space<vmem>>, %arg7: memref<128x384xf32, #tpu.memory_space<vmem>>, %arg8: memref<128x384xf32, #tpu.memory_space<vmem>>, %arg9: memref<1x128xf32, #tpu.memory_space<vmem>>, %arg10: memref<1x128xf32, #tpu.memory_space<vmem>>, %arg11: memref<8x256xf32, #tpu.memory_space<vmem>>, %arg12: memref<64x384xf32, #tpu.memory_space<vmem>>, %arg13: memref<64x384xf32, #tpu.memory_space<vmem>>) attributes {dimension_semantics = [#tpu.dimension_semantics<arbitrary>], iteration_bounds = array<i64: 1>, scalar_prefetch = 0 : i64, scratch_operands = 2 : i64, tpu.core_type = #tpu.core_type<tc>, window_params = [{transform_indices = @transform_0, window_bounds = array<i64: 64, 16>}, {transform_indices = @transform_1, window_bounds = array<i64: 64, 16>}, {pipeline_mode = #tpu.pipeline_mode<synchronous>, transform_indices = @transform_2, window_bounds = array<i64: 16, 384>}, {pipeline_mode = #tpu.pipeline_mode<synchronous>, transform_indices = @transform_3, window_bounds = array<i64: 16, 384>}, {pipeline_mode = #tpu.pipeline_mode<synchronous>, transform_indices = @transform_4, window_bounds = array<i64: 1, 384>}, {pipeline_mode = #tpu.pipeline_mode<synchronous>, transform_indices = @transform_5, window_bounds = array<i64: 1, 384>}, {pipeline_mode = #tpu.pipeline_mode<synchronous>, transform_indices = @transform_6, window_bounds = array<i64: 128, 384>}, {pipeline_mode = #tpu.pipeline_mode<synchronous>, transform_indices = @transform_7, window_bounds = array<i64: 128, 384>}, {pipeline_mode = #tpu.pipeline_mode<synchronous>, transform_indices = @transform_8, window_bounds = array<i64: 1, 128>}, {pipeline_mode = #tpu.pipeline_mode<synchronous>, transform_indices = @transform_9, window_bounds = array<i64: 1, 128>}, {pipeline_mode = #tpu.pipeline_mode<synchronous>, transform_indices = @transform_10, window_bounds = array<i64: 8, 256>}]} {
    %c0_i32 = arith.constant 0 : i32
    %0 = arith.cmpi eq, %arg0, %c0_i32 : i32
    %1 = arith.extui %0 : i1 to i32
    %c0_i32_0 = arith.constant 0 : i32
    %2 = arith.cmpi ne, %1, %c0_i32_0 : i32
    scf.if %2 {
      %cst_233 = arith.constant 0.000000e+00 : f32
      %661 = vector.broadcast %cst_233 : f32 to vector<8x256xf32>
      %c0_234 = arith.constant 0 : index
      %c0_235 = arith.constant 0 : index
      %662 = vector.load %arg11[%c0_234, %c0_235] : memref<8x256xf32, #tpu.memory_space<vmem>>, vector<8x256xf32>
      tpu.vector_store %arg11[%c0_234, %c0_235], %661 {strides = array<i32>} : memref<8x256xf32, #tpu.memory_space<vmem>>, vector<8x256xf32>,
    } else {
    }
    %c0 = arith.constant 0 : index
    %c0_1 = arith.constant 0 : index
    %3 = vector.load %arg1[%c0, %c0_1] : memref<64x16xf32, #tpu.memory_space<vmem>>, vector<64x16xf32>
    %c0_2 = arith.constant 0 : index
    %c0_3 = arith.constant 0 : index
    %4 = vector.load %arg3[%c0_2, %c0_3] : memref<16x384xf32, #tpu.memory_space<vmem>>, vector<16x384xf32>
    %cst = arith.constant dense<0.000000e+00> : vector<64x384xf32>
    %5 = tpu.matmul %3, %4, %cst {dimension_numbers = #tpu.dot_dimension_numbers<[1], [0], [0], [1], [0, 0, 1, 1], [], []>} : vector<64x16xf32>, vector<16x384xf32>, vector<64x384xf32> -> vector<64x384xf32>
    %c0_4 = arith.constant 0 : index
    %c0_5 = arith.constant 0 : index
    %6 = vector.load %arg5[%c0_4, %c0_5] : memref<1x384xf32, #tpu.memory_space<vmem>>, vector<1x384xf32>
    %7 = vector.broadcast %6 : vector<1x384xf32> to vector<64x384xf32>
    %8 = arith.addf %5, %7 : vector<64x384xf32>
    %c0_6 = arith.constant 0 : index
    %c0_7 = arith.constant 0 : index
    %9 = vector.load %arg12[%c0_6, %c0_7] : memref<64x384xf32, #tpu.memory_space<vmem>>, vector<64x384xf32>
    tpu.vector_store %arg12[%c0_6, %c0_7], %8 {strides = array<i32>} : memref<64x384xf32, #tpu.memory_space<vmem>>, vector<64x384xf32>,
    %c0_8 = arith.constant 0 : index
    %c0_9 = arith.constant 0 : index
    %10 = vector.load %arg2[%c0_8, %c0_9] : memref<64x16xf32, #tpu.memory_space<vmem>>, vector<64x16xf32>
    %c0_10 = arith.constant 0 : index
    %c0_11 = arith.constant 0 : index
    %11 = vector.load %arg4[%c0_10, %c0_11] : memref<16x384xf32, #tpu.memory_space<vmem>>, vector<16x384xf32>
    %cst_12 = arith.constant dense<0.000000e+00> : vector<64x384xf32>
    %12 = tpu.matmul %10, %11, %cst_12 {dimension_numbers = #tpu.dot_dimension_numbers<[1], [0], [0], [1], [0, 0, 1, 1], [], []>} : vector<64x16xf32>, vector<16x384xf32>, vector<64x384xf32> -> vector<64x384xf32>
    %c0_13 = arith.constant 0 : index
    %c0_14 = arith.constant 0 : index
    %13 = vector.load %arg6[%c0_13, %c0_14] : memref<1x384xf32, #tpu.memory_space<vmem>>, vector<1x384xf32>
    %14 = vector.broadcast %13 : vector<1x384xf32> to vector<64x384xf32>
    %15 = arith.addf %12, %14 : vector<64x384xf32>
    %c0_15 = arith.constant 0 : index
    %c0_16 = arith.constant 0 : index
    %16 = vector.load %arg13[%c0_15, %c0_16] : memref<64x384xf32, #tpu.memory_space<vmem>>, vector<64x384xf32>
    tpu.vector_store %arg13[%c0_15, %c0_16], %15 {strides = array<i32>} : memref<64x384xf32, #tpu.memory_space<vmem>>, vector<64x384xf32>,
    %c0_17 = arith.constant 0 : index
    %c0_18 = arith.constant 0 : index
    %17 = vector.load %arg7[%c0_17, %c0_18] : memref<128x384xf32, #tpu.memory_space<vmem>>, vector<128x384xf32>
    %c0_19 = arith.constant 0 : index
    %c0_20 = arith.constant 0 : index
    %18 = vector.load %arg8[%c0_19, %c0_20] : memref<128x384xf32, #tpu.memory_space<vmem>>, vector<128x384xf32>
    %c0_21 = arith.constant 0 : index
    %c0_22 = arith.constant 0 : index
    %19 = vector.load %arg9[%c0_21, %c0_22] : memref<1x128xf32, #tpu.memory_space<vmem>>, vector<1x128xf32>
    %20 = vector.shape_cast %19 : vector<1x128xf32> to vector<1x128xf32>
    %21 = vector.broadcast %20 : vector<1x128xf32> to vector<8x128xf32>
    %c0_23 = arith.constant 0 : index
    %c0_24 = arith.constant 0 : index
    %22 = vector.load %arg10[%c0_23, %c0_24] : memref<1x128xf32, #tpu.memory_space<vmem>>, vector<1x128xf32>
    %23 = vector.shape_cast %22 : vector<1x128xf32> to vector<1x128xf32>
    %24 = vector.broadcast %23 : vector<1x128xf32> to vector<8x128xf32>
    %c0_25 = arith.constant 0 : index
    %c0_26 = arith.constant 0 : index
    %25 = vector.load %arg11[%c0_25, %c0_26] : memref<8x256xf32, #tpu.memory_space<vmem>>, vector<8x128xf32>
    %c0_27 = arith.constant 0 : index
    %c128 = arith.constant 128 : index
    %26 = vector.load %arg11[%c0_27, %c128] : memref<8x256xf32, #tpu.memory_space<vmem>>, vector<8x128xf32>
    %c0_i32_28 = arith.constant 0 : i32
    %c8_i32 = arith.constant 8 : i32
    %27 = arith.muli %c0_i32_28, %c8_i32 : i32
    %28 = tpu.assume_multiple %27, 8 : i32
    %cst_29 = arith.constant dense<0.000000e+00> : vector<8x384xf32>
    %29 = tpu.matmul %25, %17, %cst_29 {dimension_numbers = #tpu.dot_dimension_numbers<[1], [0], [0], [1], [0, 0, 1, 1], [], []>} : vector<8x128xf32>, vector<128x384xf32>, vector<8x384xf32> -> vector<8x384xf32>
    %30 = arith.index_cast %28 : i32 to index
    %c0_30 = arith.constant 0 : index
    %31 = vector.load %arg12[%30, %c0_30] : memref<64x384xf32, #tpu.memory_space<vmem>>, vector<8x384xf32>
    %32 = vector.extract_strided_slice %31 {offsets = [0, 0], sizes = [8, 128], strides = [1, 1]} : vector<8x384xf32> to vector<8x128xf32>
    %33 = vector.extract_strided_slice %29 {offsets = [0, 0], sizes = [8, 128], strides = [1, 1]} : vector<8x384xf32> to vector<8x128xf32>
    %34 = arith.addf %32, %33 : vector<8x128xf32>
    %cst_31 = arith.constant 5.000000e-01 : f32
    %35 = vector.broadcast %cst_31 : f32 to vector<8x128xf32>
    %36 = arith.mulf %35, %34 : vector<8x128xf32>
    %37 = math.tanh %36 : vector<8x128xf32>
    %cst_32 = arith.constant 1.000000e+00 : f32
    %38 = vector.broadcast %cst_32 : f32 to vector<8x128xf32>
    %39 = arith.addf %37, %38 : vector<8x128xf32>
    %cst_33 = arith.constant 5.000000e-01 : f32
    %40 = vector.broadcast %cst_33 : f32 to vector<8x128xf32>
    %41 = arith.mulf %40, %39 : vector<8x128xf32>
    %42 = vector.extract_strided_slice %31 {offsets = [0, 128], sizes = [8, 128], strides = [1, 1]} : vector<8x384xf32> to vector<8x128xf32>
    %43 = vector.extract_strided_slice %29 {offsets = [0, 128], sizes = [8, 128], strides = [1, 1]} : vector<8x384xf32> to vector<8x128xf32>
    %44 = arith.addf %42, %43 : vector<8x128xf32>
    %cst_34 = arith.constant 5.000000e-01 : f32
    %45 = vector.broadcast %cst_34 : f32 to vector<8x128xf32>
    %46 = arith.mulf %45, %44 : vector<8x128xf32>
    %47 = math.tanh %46 : vector<8x128xf32>
    %cst_35 = arith.constant 1.000000e+00 : f32
    %48 = vector.broadcast %cst_35 : f32 to vector<8x128xf32>
    %49 = arith.addf %47, %48 : vector<8x128xf32>
    %cst_36 = arith.constant 5.000000e-01 : f32
    %50 = vector.broadcast %cst_36 : f32 to vector<8x128xf32>
    %51 = arith.mulf %50, %49 : vector<8x128xf32>
    %52 = vector.extract_strided_slice %31 {offsets = [0, 256], sizes = [8, 128], strides = [1, 1]} : vector<8x384xf32> to vector<8x128xf32>
    %53 = vector.extract_strided_slice %29 {offsets = [0, 256], sizes = [8, 128], strides = [1, 1]} : vector<8x384xf32> to vector<8x128xf32>
    %54 = arith.addf %53, %21 : vector<8x128xf32>
    %55 = arith.mulf %41, %54 : vector<8x128xf32>
    %56 = arith.addf %52, %55 : vector<8x128xf32>
    %57 = math.tanh %56 : vector<8x128xf32>
    %58 = arith.subf %25, %57 : vector<8x128xf32>
    %59 = arith.mulf %51, %58 : vector<8x128xf32>
    %60 = arith.addf %57, %59 : vector<8x128xf32>
    %c8_i32_37 = arith.constant 8 : i32
    %61 = arith.muli %arg0, %c8_i32_37 : i32
    %62 = arith.addi %61, %c0_i32_28 : i32
    %c8_i32_38 = arith.constant 8 : i32
    %63 = arith.cmpi slt, %62, %c8_i32_38 : i32
    %64 = arith.select %63, %60, %25 : vector<8x128xf32>
    %c7_i32 = arith.constant 7 : i32
    %65 = arith.subi %c7_i32, %c0_i32_28 : i32
    %c8_i32_39 = arith.constant 8 : i32
    %66 = arith.muli %65, %c8_i32_39 : i32
    %67 = tpu.assume_multiple %66, 8 : i32
    %cst_40 = arith.constant dense<0.000000e+00> : vector<8x384xf32>
    %68 = tpu.matmul %26, %18, %cst_40 {dimension_numbers = #tpu.dot_dimension_numbers<[1], [0], [0], [1], [0, 0, 1, 1], [], []>} : vector<8x128xf32>, vector<128x384xf32>, vector<8x384xf32> -> vector<8x384xf32>
    %69 = arith.index_cast %67 : i32 to index
    %c0_41 = arith.constant 0 : index
    %70 = vector.load %arg13[%69, %c0_41] : memref<64x384xf32, #tpu.memory_space<vmem>>, vector<8x384xf32>
    %71 = vector.extract_strided_slice %70 {offsets = [0, 0], sizes = [8, 128], strides = [1, 1]} : vector<8x384xf32> to vector<8x128xf32>
    %72 = vector.extract_strided_slice %68 {offsets = [0, 0], sizes = [8, 128], strides = [1, 1]} : vector<8x384xf32> to vector<8x128xf32>
    %73 = arith.addf %71, %72 : vector<8x128xf32>
    %cst_42 = arith.constant 5.000000e-01 : f32
    %74 = vector.broadcast %cst_42 : f32 to vector<8x128xf32>
    %75 = arith.mulf %74, %73 : vector<8x128xf32>
    %76 = math.tanh %75 : vector<8x128xf32>
    %cst_43 = arith.constant 1.000000e+00 : f32
    %77 = vector.broadcast %cst_43 : f32 to vector<8x128xf32>
    %78 = arith.addf %76, %77 : vector<8x128xf32>
    %cst_44 = arith.constant 5.000000e-01 : f32
    %79 = vector.broadcast %cst_44 : f32 to vector<8x128xf32>
    %80 = arith.mulf %79, %78 : vector<8x128xf32>
    %81 = vector.extract_strided_slice %70 {offsets = [0, 128], sizes = [8, 128], strides = [1, 1]} : vector<8x384xf32> to vector<8x128xf32>
    %82 = vector.extract_strided_slice %68 {offsets = [0, 128], sizes = [8, 128], strides = [1, 1]} : vector<8x384xf32> to vector<8x128xf32>
    %83 = arith.addf %81, %82 : vector<8x128xf32>
    %cst_45 = arith.constant 5.000000e-01 : f32
    %84 = vector.broadcast %cst_45 : f32 to vector<8x128xf32>
    %85 = arith.mulf %84, %83 : vector<8x128xf32>
    %86 = math.tanh %85 : vector<8x128xf32>
    %cst_46 = arith.constant 1.000000e+00 : f32
    %87 = vector.broadcast %cst_46 : f32 to vector<8x128xf32>
    %88 = arith.addf %86, %87 : vector<8x128xf32>
    %cst_47 = arith.constant 5.000000e-01 : f32
    %89 = vector.broadcast %cst_47 : f32 to vector<8x128xf32>
    %90 = arith.mulf %89, %88 : vector<8x128xf32>
    %91 = vector.extract_strided_slice %70 {offsets = [0, 256], sizes = [8, 128], strides = [1, 1]} : vector<8x384xf32> to vector<8x128xf32>
    %92 = vector.extract_strided_slice %68 {offsets = [0, 256], sizes = [8, 128], strides = [1, 1]} : vector<8x384xf32> to vector<8x128xf32>
    %93 = arith.addf %92, %24 : vector<8x128xf32>
    %94 = arith.mulf %80, %93 : vector<8x128xf32>
    %95 = arith.addf %91, %94 : vector<8x128xf32>
    %96 = math.tanh %95 : vector<8x128xf32>
    %97 = arith.subf %26, %96 : vector<8x128xf32>
    %98 = arith.mulf %90, %97 : vector<8x128xf32>
    %99 = arith.addf %96, %98 : vector<8x128xf32>
    %c0_i32_48 = arith.constant 0 : i32
    %100 = arith.subi %c0_i32_48, %arg0 : i32
    %c8_i32_49 = arith.constant 8 : i32
    %101 = arith.muli %100, %c8_i32_49 : i32
    %c7_i32_50 = arith.constant 7 : i32
    %102 = arith.subi %c7_i32_50, %c0_i32_28 : i32
    %103 = arith.addi %101, %102 : i32
    %c8_i32_51 = arith.constant 8 : i32
    %104 = arith.cmpi slt, %103, %c8_i32_51 : i32
    %105 = arith.select %104, %99, %26 : vector<8x128xf32>
    %c1_i32 = arith.constant 1 : i32
    %c8_i32_52 = arith.constant 8 : i32
    %106 = arith.muli %c1_i32, %c8_i32_52 : i32
    %107 = tpu.assume_multiple %106, 8 : i32
    %cst_53 = arith.constant dense<0.000000e+00> : vector<8x384xf32>
    %108 = tpu.matmul %64, %17, %cst_53 {dimension_numbers = #tpu.dot_dimension_numbers<[1], [0], [0], [1], [0, 0, 1, 1], [], []>} : vector<8x128xf32>, vector<128x384xf32>, vector<8x384xf32> -> vector<8x384xf32>
    %109 = arith.index_cast %107 : i32 to index
    %c0_54 = arith.constant 0 : index
    %110 = vector.load %arg12[%109, %c0_54] : memref<64x384xf32, #tpu.memory_space<vmem>>, vector<8x384xf32>
    %111 = vector.extract_strided_slice %110 {offsets = [0, 0], sizes = [8, 128], strides = [1, 1]} : vector<8x384xf32> to vector<8x128xf32>
    %112 = vector.extract_strided_slice %108 {offsets = [0, 0], sizes = [8, 128], strides = [1, 1]} : vector<8x384xf32> to vector<8x128xf32>
    %113 = arith.addf %111, %112 : vector<8x128xf32>
    %cst_55 = arith.constant 5.000000e-01 : f32
    %114 = vector.broadcast %cst_55 : f32 to vector<8x128xf32>
    %115 = arith.mulf %114, %113 : vector<8x128xf32>
    %116 = math.tanh %115 : vector<8x128xf32>
    %cst_56 = arith.constant 1.000000e+00 : f32
    %117 = vector.broadcast %cst_56 : f32 to vector<8x128xf32>
    %118 = arith.addf %116, %117 : vector<8x128xf32>
    %cst_57 = arith.constant 5.000000e-01 : f32
    %119 = vector.broadcast %cst_57 : f32 to vector<8x128xf32>
    %120 = arith.mulf %119, %118 : vector<8x128xf32>
    %121 = vector.extract_strided_slice %110 {offsets = [0, 128], sizes = [8, 128], strides = [1, 1]} : vector<8x384xf32> to vector<8x128xf32>
    %122 = vector.extract_strided_slice %108 {offsets = [0, 128], sizes = [8, 128], strides = [1, 1]} : vector<8x384xf32> to vector<8x128xf32>
    %123 = arith.addf %121, %122 : vector<8x128xf32>
    %cst_58 = arith.constant 5.000000e-01 : f32
    %124 = vector.broadcast %cst_58 : f32 to vector<8x128xf32>
    %125 = arith.mulf %124, %123 : vector<8x128xf32>
    %126 = math.tanh %125 : vector<8x128xf32>
    %cst_59 = arith.constant 1.000000e+00 : f32
    %127 = vector.broadcast %cst_59 : f32 to vector<8x128xf32>
    %128 = arith.addf %126, %127 : vector<8x128xf32>
    %cst_60 = arith.constant 5.000000e-01 : f32
    %129 = vector.broadcast %cst_60 : f32 to vector<8x128xf32>
    %130 = arith.mulf %129, %128 : vector<8x128xf32>
    %131 = vector.extract_strided_slice %110 {offsets = [0, 256], sizes = [8, 128], strides = [1, 1]} : vector<8x384xf32> to vector<8x128xf32>
    %132 = vector.extract_strided_slice %108 {offsets = [0, 256], sizes = [8, 128], strides = [1, 1]} : vector<8x384xf32> to vector<8x128xf32>
    %133 = arith.addf %132, %21 : vector<8x128xf32>
    %134 = arith.mulf %120, %133 : vector<8x128xf32>
    %135 = arith.addf %131, %134 : vector<8x128xf32>
    %136 = math.tanh %135 : vector<8x128xf32>
    %137 = arith.subf %64, %136 : vector<8x128xf32>
    %138 = arith.mulf %130, %137 : vector<8x128xf32>
    %139 = arith.addf %136, %138 : vector<8x128xf32>
    %c8_i32_61 = arith.constant 8 : i32
    %140 = arith.muli %arg0, %c8_i32_61 : i32
    %141 = arith.addi %140, %c1_i32 : i32
    %c8_i32_62 = arith.constant 8 : i32
    %142 = arith.cmpi slt, %141, %c8_i32_62 : i32
    %143 = arith.select %142, %139, %64 : vector<8x128xf32>
    %c7_i32_63 = arith.constant 7 : i32
    %144 = arith.subi %c7_i32_63, %c1_i32 : i32
    %c8_i32_64 = arith.constant 8 : i32
    %145 = arith.muli %144, %c8_i32_64 : i32
    %146 = tpu.assume_multiple %145, 8 : i32
    %cst_65 = arith.constant dense<0.000000e+00> : vector<8x384xf32>
    %147 = tpu.matmul %105, %18, %cst_65 {dimension_numbers = #tpu.dot_dimension_numbers<[1], [0], [0], [1], [0, 0, 1, 1], [], []>} : vector<8x128xf32>, vector<128x384xf32>, vector<8x384xf32> -> vector<8x384xf32>
    %148 = arith.index_cast %146 : i32 to index
    %c0_66 = arith.constant 0 : index
    %149 = vector.load %arg13[%148, %c0_66] : memref<64x384xf32, #tpu.memory_space<vmem>>, vector<8x384xf32>
    %150 = vector.extract_strided_slice %149 {offsets = [0, 0], sizes = [8, 128], strides = [1, 1]} : vector<8x384xf32> to vector<8x128xf32>
    %151 = vector.extract_strided_slice %147 {offsets = [0, 0], sizes = [8, 128], strides = [1, 1]} : vector<8x384xf32> to vector<8x128xf32>
    %152 = arith.addf %150, %151 : vector<8x128xf32>
    %cst_67 = arith.constant 5.000000e-01 : f32
    %153 = vector.broadcast %cst_67 : f32 to vector<8x128xf32>
    %154 = arith.mulf %153, %152 : vector<8x128xf32>
    %155 = math.tanh %154 : vector<8x128xf32>
    %cst_68 = arith.constant 1.000000e+00 : f32
    %156 = vector.broadcast %cst_68 : f32 to vector<8x128xf32>
    %157 = arith.addf %155, %156 : vector<8x128xf32>
    %cst_69 = arith.constant 5.000000e-01 : f32
    %158 = vector.broadcast %cst_69 : f32 to vector<8x128xf32>
    %159 = arith.mulf %158, %157 : vector<8x128xf32>
    %160 = vector.extract_strided_slice %149 {offsets = [0, 128], sizes = [8, 128], strides = [1, 1]} : vector<8x384xf32> to vector<8x128xf32>
    %161 = vector.extract_strided_slice %147 {offsets = [0, 128], sizes = [8, 128], strides = [1, 1]} : vector<8x384xf32> to vector<8x128xf32>
    %162 = arith.addf %160, %161 : vector<8x128xf32>
    %cst_70 = arith.constant 5.000000e-01 : f32
    %163 = vector.broadcast %cst_70 : f32 to vector<8x128xf32>
    %164 = arith.mulf %163, %162 : vector<8x128xf32>
    %165 = math.tanh %164 : vector<8x128xf32>
    %cst_71 = arith.constant 1.000000e+00 : f32
    %166 = vector.broadcast %cst_71 : f32 to vector<8x128xf32>
    %167 = arith.addf %165, %166 : vector<8x128xf32>
    %cst_72 = arith.constant 5.000000e-01 : f32
    %168 = vector.broadcast %cst_72 : f32 to vector<8x128xf32>
    %169 = arith.mulf %168, %167 : vector<8x128xf32>
    %170 = vector.extract_strided_slice %149 {offsets = [0, 256], sizes = [8, 128], strides = [1, 1]} : vector<8x384xf32> to vector<8x128xf32>
    %171 = vector.extract_strided_slice %147 {offsets = [0, 256], sizes = [8, 128], strides = [1, 1]} : vector<8x384xf32> to vector<8x128xf32>
    %172 = arith.addf %171, %24 : vector<8x128xf32>
    %173 = arith.mulf %159, %172 : vector<8x128xf32>
    %174 = arith.addf %170, %173 : vector<8x128xf32>
    %175 = math.tanh %174 : vector<8x128xf32>
    %176 = arith.subf %105, %175 : vector<8x128xf32>
    %177 = arith.mulf %169, %176 : vector<8x128xf32>
    %178 = arith.addf %175, %177 : vector<8x128xf32>
    %c0_i32_73 = arith.constant 0 : i32
    %179 = arith.subi %c0_i32_73, %arg0 : i32
    %c8_i32_74 = arith.constant 8 : i32
    %180 = arith.muli %179, %c8_i32_74 : i32
    %c7_i32_75 = arith.constant 7 : i32
    %181 = arith.subi %c7_i32_75, %c1_i32 : i32
    %182 = arith.addi %180, %181 : i32
    %c8_i32_76 = arith.constant 8 : i32
    %183 = arith.cmpi slt, %182, %c8_i32_76 : i32
    %184 = arith.select %183, %178, %105 : vector<8x128xf32>
    %c2_i32 = arith.constant 2 : i32
    %c8_i32_77 = arith.constant 8 : i32
    %185 = arith.muli %c2_i32, %c8_i32_77 : i32
    %186 = tpu.assume_multiple %185, 8 : i32
    %cst_78 = arith.constant dense<0.000000e+00> : vector<8x384xf32>
    %187 = tpu.matmul %143, %17, %cst_78 {dimension_numbers = #tpu.dot_dimension_numbers<[1], [0], [0], [1], [0, 0, 1, 1], [], []>} : vector<8x128xf32>, vector<128x384xf32>, vector<8x384xf32> -> vector<8x384xf32>
    %188 = arith.index_cast %186 : i32 to index
    %c0_79 = arith.constant 0 : index
    %189 = vector.load %arg12[%188, %c0_79] : memref<64x384xf32, #tpu.memory_space<vmem>>, vector<8x384xf32>
    %190 = vector.extract_strided_slice %189 {offsets = [0, 0], sizes = [8, 128], strides = [1, 1]} : vector<8x384xf32> to vector<8x128xf32>
    %191 = vector.extract_strided_slice %187 {offsets = [0, 0], sizes = [8, 128], strides = [1, 1]} : vector<8x384xf32> to vector<8x128xf32>
    %192 = arith.addf %190, %191 : vector<8x128xf32>
    %cst_80 = arith.constant 5.000000e-01 : f32
    %193 = vector.broadcast %cst_80 : f32 to vector<8x128xf32>
    %194 = arith.mulf %193, %192 : vector<8x128xf32>
    %195 = math.tanh %194 : vector<8x128xf32>
    %cst_81 = arith.constant 1.000000e+00 : f32
    %196 = vector.broadcast %cst_81 : f32 to vector<8x128xf32>
    %197 = arith.addf %195, %196 : vector<8x128xf32>
    %cst_82 = arith.constant 5.000000e-01 : f32
    %198 = vector.broadcast %cst_82 : f32 to vector<8x128xf32>
    %199 = arith.mulf %198, %197 : vector<8x128xf32>
    %200 = vector.extract_strided_slice %189 {offsets = [0, 128], sizes = [8, 128], strides = [1, 1]} : vector<8x384xf32> to vector<8x128xf32>
    %201 = vector.extract_strided_slice %187 {offsets = [0, 128], sizes = [8, 128], strides = [1, 1]} : vector<8x384xf32> to vector<8x128xf32>
    %202 = arith.addf %200, %201 : vector<8x128xf32>
    %cst_83 = arith.constant 5.000000e-01 : f32
    %203 = vector.broadcast %cst_83 : f32 to vector<8x128xf32>
    %204 = arith.mulf %203, %202 : vector<8x128xf32>
    %205 = math.tanh %204 : vector<8x128xf32>
    %cst_84 = arith.constant 1.000000e+00 : f32
    %206 = vector.broadcast %cst_84 : f32 to vector<8x128xf32>
    %207 = arith.addf %205, %206 : vector<8x128xf32>
    %cst_85 = arith.constant 5.000000e-01 : f32
    %208 = vector.broadcast %cst_85 : f32 to vector<8x128xf32>
    %209 = arith.mulf %208, %207 : vector<8x128xf32>
    %210 = vector.extract_strided_slice %189 {offsets = [0, 256], sizes = [8, 128], strides = [1, 1]} : vector<8x384xf32> to vector<8x128xf32>
    %211 = vector.extract_strided_slice %187 {offsets = [0, 256], sizes = [8, 128], strides = [1, 1]} : vector<8x384xf32> to vector<8x128xf32>
    %212 = arith.addf %211, %21 : vector<8x128xf32>
    %213 = arith.mulf %199, %212 : vector<8x128xf32>
    %214 = arith.addf %210, %213 : vector<8x128xf32>
    %215 = math.tanh %214 : vector<8x128xf32>
    %216 = arith.subf %143, %215 : vector<8x128xf32>
    %217 = arith.mulf %209, %216 : vector<8x128xf32>
    %218 = arith.addf %215, %217 : vector<8x128xf32>
    %c8_i32_86 = arith.constant 8 : i32
    %219 = arith.muli %arg0, %c8_i32_86 : i32
    %220 = arith.addi %219, %c2_i32 : i32
    %c8_i32_87 = arith.constant 8 : i32
    %221 = arith.cmpi slt, %220, %c8_i32_87 : i32
    %222 = arith.select %221, %218, %143 : vector<8x128xf32>
    %c7_i32_88 = arith.constant 7 : i32
    %223 = arith.subi %c7_i32_88, %c2_i32 : i32
    %c8_i32_89 = arith.constant 8 : i32
    %224 = arith.muli %223, %c8_i32_89 : i32
    %225 = tpu.assume_multiple %224, 8 : i32
    %cst_90 = arith.constant dense<0.000000e+00> : vector<8x384xf32>
    %226 = tpu.matmul %184, %18, %cst_90 {dimension_numbers = #tpu.dot_dimension_numbers<[1], [0], [0], [1], [0, 0, 1, 1], [], []>} : vector<8x128xf32>, vector<128x384xf32>, vector<8x384xf32> -> vector<8x384xf32>
    %227 = arith.index_cast %225 : i32 to index
    %c0_91 = arith.constant 0 : index
    %228 = vector.load %arg13[%227, %c0_91] : memref<64x384xf32, #tpu.memory_space<vmem>>, vector<8x384xf32>
    %229 = vector.extract_strided_slice %228 {offsets = [0, 0], sizes = [8, 128], strides = [1, 1]} : vector<8x384xf32> to vector<8x128xf32>
    %230 = vector.extract_strided_slice %226 {offsets = [0, 0], sizes = [8, 128], strides = [1, 1]} : vector<8x384xf32> to vector<8x128xf32>
    %231 = arith.addf %229, %230 : vector<8x128xf32>
    %cst_92 = arith.constant 5.000000e-01 : f32
    %232 = vector.broadcast %cst_92 : f32 to vector<8x128xf32>
    %233 = arith.mulf %232, %231 : vector<8x128xf32>
    %234 = math.tanh %233 : vector<8x128xf32>
    %cst_93 = arith.constant 1.000000e+00 : f32
    %235 = vector.broadcast %cst_93 : f32 to vector<8x128xf32>
    %236 = arith.addf %234, %235 : vector<8x128xf32>
    %cst_94 = arith.constant 5.000000e-01 : f32
    %237 = vector.broadcast %cst_94 : f32 to vector<8x128xf32>
    %238 = arith.mulf %237, %236 : vector<8x128xf32>
    %239 = vector.extract_strided_slice %228 {offsets = [0, 128], sizes = [8, 128], strides = [1, 1]} : vector<8x384xf32> to vector<8x128xf32>
    %240 = vector.extract_strided_slice %226 {offsets = [0, 128], sizes = [8, 128], strides = [1, 1]} : vector<8x384xf32> to vector<8x128xf32>
    %241 = arith.addf %239, %240 : vector<8x128xf32>
    %cst_95 = arith.constant 5.000000e-01 : f32
    %242 = vector.broadcast %cst_95 : f32 to vector<8x128xf32>
    %243 = arith.mulf %242, %241 : vector<8x128xf32>
    %244 = math.tanh %243 : vector<8x128xf32>
    %cst_96 = arith.constant 1.000000e+00 : f32
    %245 = vector.broadcast %cst_96 : f32 to vector<8x128xf32>
    %246 = arith.addf %244, %245 : vector<8x128xf32>
    %cst_97 = arith.constant 5.000000e-01 : f32
    %247 = vector.broadcast %cst_97 : f32 to vector<8x128xf32>
    %248 = arith.mulf %247, %246 : vector<8x128xf32>
    %249 = vector.extract_strided_slice %228 {offsets = [0, 256], sizes = [8, 128], strides = [1, 1]} : vector<8x384xf32> to vector<8x128xf32>
    %250 = vector.extract_strided_slice %226 {offsets = [0, 256], sizes = [8, 128], strides = [1, 1]} : vector<8x384xf32> to vector<8x128xf32>
    %251 = arith.addf %250, %24 : vector<8x128xf32>
    %252 = arith.mulf %238, %251 : vector<8x128xf32>
    %253 = arith.addf %249, %252 : vector<8x128xf32>
    %254 = math.tanh %253 : vector<8x128xf32>
    %255 = arith.subf %184, %254 : vector<8x128xf32>
    %256 = arith.mulf %248, %255 : vector<8x128xf32>
    %257 = arith.addf %254, %256 : vector<8x128xf32>
    %c0_i32_98 = arith.constant 0 : i32
    %258 = arith.subi %c0_i32_98, %arg0 : i32
    %c8_i32_99 = arith.constant 8 : i32
    %259 = arith.muli %258, %c8_i32_99 : i32
    %c7_i32_100 = arith.constant 7 : i32
    %260 = arith.subi %c7_i32_100, %c2_i32 : i32
    %261 = arith.addi %259, %260 : i32
    %c8_i32_101 = arith.constant 8 : i32
    %262 = arith.cmpi slt, %261, %c8_i32_101 : i32
    %263 = arith.select %262, %257, %184 : vector<8x128xf32>
    %c3_i32 = arith.constant 3 : i32
    %c8_i32_102 = arith.constant 8 : i32
    %264 = arith.muli %c3_i32, %c8_i32_102 : i32
    %265 = tpu.assume_multiple %264, 8 : i32
    %cst_103 = arith.constant dense<0.000000e+00> : vector<8x384xf32>
    %266 = tpu.matmul %222, %17, %cst_103 {dimension_numbers = #tpu.dot_dimension_numbers<[1], [0], [0], [1], [0, 0, 1, 1], [], []>} : vector<8x128xf32>, vector<128x384xf32>, vector<8x384xf32> -> vector<8x384xf32>
    %267 = arith.index_cast %265 : i32 to index
    %c0_104 = arith.constant 0 : index
    %268 = vector.load %arg12[%267, %c0_104] : memref<64x384xf32, #tpu.memory_space<vmem>>, vector<8x384xf32>
    %269 = vector.extract_strided_slice %268 {offsets = [0, 0], sizes = [8, 128], strides = [1, 1]} : vector<8x384xf32> to vector<8x128xf32>
    %270 = vector.extract_strided_slice %266 {offsets = [0, 0], sizes = [8, 128], strides = [1, 1]} : vector<8x384xf32> to vector<8x128xf32>
    %271 = arith.addf %269, %270 : vector<8x128xf32>
    %cst_105 = arith.constant 5.000000e-01 : f32
    %272 = vector.broadcast %cst_105 : f32 to vector<8x128xf32>
    %273 = arith.mulf %272, %271 : vector<8x128xf32>
    %274 = math.tanh %273 : vector<8x128xf32>
    %cst_106 = arith.constant 1.000000e+00 : f32
    %275 = vector.broadcast %cst_106 : f32 to vector<8x128xf32>
    %276 = arith.addf %274, %275 : vector<8x128xf32>
    %cst_107 = arith.constant 5.000000e-01 : f32
    %277 = vector.broadcast %cst_107 : f32 to vector<8x128xf32>
    %278 = arith.mulf %277, %276 : vector<8x128xf32>
    %279 = vector.extract_strided_slice %268 {offsets = [0, 128], sizes = [8, 128], strides = [1, 1]} : vector<8x384xf32> to vector<8x128xf32>
    %280 = vector.extract_strided_slice %266 {offsets = [0, 128], sizes = [8, 128], strides = [1, 1]} : vector<8x384xf32> to vector<8x128xf32>
    %281 = arith.addf %279, %280 : vector<8x128xf32>
    %cst_108 = arith.constant 5.000000e-01 : f32
    %282 = vector.broadcast %cst_108 : f32 to vector<8x128xf32>
    %283 = arith.mulf %282, %281 : vector<8x128xf32>
    %284 = math.tanh %283 : vector<8x128xf32>
    %cst_109 = arith.constant 1.000000e+00 : f32
    %285 = vector.broadcast %cst_109 : f32 to vector<8x128xf32>
    %286 = arith.addf %284, %285 : vector<8x128xf32>
    %cst_110 = arith.constant 5.000000e-01 : f32
    %287 = vector.broadcast %cst_110 : f32 to vector<8x128xf32>
    %288 = arith.mulf %287, %286 : vector<8x128xf32>
    %289 = vector.extract_strided_slice %268 {offsets = [0, 256], sizes = [8, 128], strides = [1, 1]} : vector<8x384xf32> to vector<8x128xf32>
    %290 = vector.extract_strided_slice %266 {offsets = [0, 256], sizes = [8, 128], strides = [1, 1]} : vector<8x384xf32> to vector<8x128xf32>
    %291 = arith.addf %290, %21 : vector<8x128xf32>
    %292 = arith.mulf %278, %291 : vector<8x128xf32>
    %293 = arith.addf %289, %292 : vector<8x128xf32>
    %294 = math.tanh %293 : vector<8x128xf32>
    %295 = arith.subf %222, %294 : vector<8x128xf32>
    %296 = arith.mulf %288, %295 : vector<8x128xf32>
    %297 = arith.addf %294, %296 : vector<8x128xf32>
    %c8_i32_111 = arith.constant 8 : i32
    %298 = arith.muli %arg0, %c8_i32_111 : i32
    %299 = arith.addi %298, %c3_i32 : i32
    %c8_i32_112 = arith.constant 8 : i32
    %300 = arith.cmpi slt, %299, %c8_i32_112 : i32
    %301 = arith.select %300, %297, %222 : vector<8x128xf32>
    %c7_i32_113 = arith.constant 7 : i32
    %302 = arith.subi %c7_i32_113, %c3_i32 : i32
    %c8_i32_114 = arith.constant 8 : i32
    %303 = arith.muli %302, %c8_i32_114 : i32
    %304 = tpu.assume_multiple %303, 8 : i32
    %cst_115 = arith.constant dense<0.000000e+00> : vector<8x384xf32>
    %305 = tpu.matmul %263, %18, %cst_115 {dimension_numbers = #tpu.dot_dimension_numbers<[1], [0], [0], [1], [0, 0, 1, 1], [], []>} : vector<8x128xf32>, vector<128x384xf32>, vector<8x384xf32> -> vector<8x384xf32>
    %306 = arith.index_cast %304 : i32 to index
    %c0_116 = arith.constant 0 : index
    %307 = vector.load %arg13[%306, %c0_116] : memref<64x384xf32, #tpu.memory_space<vmem>>, vector<8x384xf32>
    %308 = vector.extract_strided_slice %307 {offsets = [0, 0], sizes = [8, 128], strides = [1, 1]} : vector<8x384xf32> to vector<8x128xf32>
    %309 = vector.extract_strided_slice %305 {offsets = [0, 0], sizes = [8, 128], strides = [1, 1]} : vector<8x384xf32> to vector<8x128xf32>
    %310 = arith.addf %308, %309 : vector<8x128xf32>
    %cst_117 = arith.constant 5.000000e-01 : f32
    %311 = vector.broadcast %cst_117 : f32 to vector<8x128xf32>
    %312 = arith.mulf %311, %310 : vector<8x128xf32>
    %313 = math.tanh %312 : vector<8x128xf32>
    %cst_118 = arith.constant 1.000000e+00 : f32
    %314 = vector.broadcast %cst_118 : f32 to vector<8x128xf32>
    %315 = arith.addf %313, %314 : vector<8x128xf32>
    %cst_119 = arith.constant 5.000000e-01 : f32
    %316 = vector.broadcast %cst_119 : f32 to vector<8x128xf32>
    %317 = arith.mulf %316, %315 : vector<8x128xf32>
    %318 = vector.extract_strided_slice %307 {offsets = [0, 128], sizes = [8, 128], strides = [1, 1]} : vector<8x384xf32> to vector<8x128xf32>
    %319 = vector.extract_strided_slice %305 {offsets = [0, 128], sizes = [8, 128], strides = [1, 1]} : vector<8x384xf32> to vector<8x128xf32>
    %320 = arith.addf %318, %319 : vector<8x128xf32>
    %cst_120 = arith.constant 5.000000e-01 : f32
    %321 = vector.broadcast %cst_120 : f32 to vector<8x128xf32>
    %322 = arith.mulf %321, %320 : vector<8x128xf32>
    %323 = math.tanh %322 : vector<8x128xf32>
    %cst_121 = arith.constant 1.000000e+00 : f32
    %324 = vector.broadcast %cst_121 : f32 to vector<8x128xf32>
    %325 = arith.addf %323, %324 : vector<8x128xf32>
    %cst_122 = arith.constant 5.000000e-01 : f32
    %326 = vector.broadcast %cst_122 : f32 to vector<8x128xf32>
    %327 = arith.mulf %326, %325 : vector<8x128xf32>
    %328 = vector.extract_strided_slice %307 {offsets = [0, 256], sizes = [8, 128], strides = [1, 1]} : vector<8x384xf32> to vector<8x128xf32>
    %329 = vector.extract_strided_slice %305 {offsets = [0, 256], sizes = [8, 128], strides = [1, 1]} : vector<8x384xf32> to vector<8x128xf32>
    %330 = arith.addf %329, %24 : vector<8x128xf32>
    %331 = arith.mulf %317, %330 : vector<8x128xf32>
    %332 = arith.addf %328, %331 : vector<8x128xf32>
    %333 = math.tanh %332 : vector<8x128xf32>
    %334 = arith.subf %263, %333 : vector<8x128xf32>
    %335 = arith.mulf %327, %334 : vector<8x128xf32>
    %336 = arith.addf %333, %335 : vector<8x128xf32>
    %c0_i32_123 = arith.constant 0 : i32
    %337 = arith.subi %c0_i32_123, %arg0 : i32
    %c8_i32_124 = arith.constant 8 : i32
    %338 = arith.muli %337, %c8_i32_124 : i32
    %c7_i32_125 = arith.constant 7 : i32
    %339 = arith.subi %c7_i32_125, %c3_i32 : i32
    %340 = arith.addi %338, %339 : i32
    %c8_i32_126 = arith.constant 8 : i32
    %341 = arith.cmpi slt, %340, %c8_i32_126 : i32
    %342 = arith.select %341, %336, %263 : vector<8x128xf32>
    %c4_i32 = arith.constant 4 : i32
    %c8_i32_127 = arith.constant 8 : i32
    %343 = arith.muli %c4_i32, %c8_i32_127 : i32
    %344 = tpu.assume_multiple %343, 8 : i32
    %cst_128 = arith.constant dense<0.000000e+00> : vector<8x384xf32>
    %345 = tpu.matmul %301, %17, %cst_128 {dimension_numbers = #tpu.dot_dimension_numbers<[1], [0], [0], [1], [0, 0, 1, 1], [], []>} : vector<8x128xf32>, vector<128x384xf32>, vector<8x384xf32> -> vector<8x384xf32>
    %346 = arith.index_cast %344 : i32 to index
    %c0_129 = arith.constant 0 : index
    %347 = vector.load %arg12[%346, %c0_129] : memref<64x384xf32, #tpu.memory_space<vmem>>, vector<8x384xf32>
    %348 = vector.extract_strided_slice %347 {offsets = [0, 0], sizes = [8, 128], strides = [1, 1]} : vector<8x384xf32> to vector<8x128xf32>
    %349 = vector.extract_strided_slice %345 {offsets = [0, 0], sizes = [8, 128], strides = [1, 1]} : vector<8x384xf32> to vector<8x128xf32>
    %350 = arith.addf %348, %349 : vector<8x128xf32>
    %cst_130 = arith.constant 5.000000e-01 : f32
    %351 = vector.broadcast %cst_130 : f32 to vector<8x128xf32>
    %352 = arith.mulf %351, %350 : vector<8x128xf32>
    %353 = math.tanh %352 : vector<8x128xf32>
    %cst_131 = arith.constant 1.000000e+00 : f32
    %354 = vector.broadcast %cst_131 : f32 to vector<8x128xf32>
    %355 = arith.addf %353, %354 : vector<8x128xf32>
    %cst_132 = arith.constant 5.000000e-01 : f32
    %356 = vector.broadcast %cst_132 : f32 to vector<8x128xf32>
    %357 = arith.mulf %356, %355 : vector<8x128xf32>
    %358 = vector.extract_strided_slice %347 {offsets = [0, 128], sizes = [8, 128], strides = [1, 1]} : vector<8x384xf32> to vector<8x128xf32>
    %359 = vector.extract_strided_slice %345 {offsets = [0, 128], sizes = [8, 128], strides = [1, 1]} : vector<8x384xf32> to vector<8x128xf32>
    %360 = arith.addf %358, %359 : vector<8x128xf32>
    %cst_133 = arith.constant 5.000000e-01 : f32
    %361 = vector.broadcast %cst_133 : f32 to vector<8x128xf32>
    %362 = arith.mulf %361, %360 : vector<8x128xf32>
    %363 = math.tanh %362 : vector<8x128xf32>
    %cst_134 = arith.constant 1.000000e+00 : f32
    %364 = vector.broadcast %cst_134 : f32 to vector<8x128xf32>
    %365 = arith.addf %363, %364 : vector<8x128xf32>
    %cst_135 = arith.constant 5.000000e-01 : f32
    %366 = vector.broadcast %cst_135 : f32 to vector<8x128xf32>
    %367 = arith.mulf %366, %365 : vector<8x128xf32>
    %368 = vector.extract_strided_slice %347 {offsets = [0, 256], sizes = [8, 128], strides = [1, 1]} : vector<8x384xf32> to vector<8x128xf32>
    %369 = vector.extract_strided_slice %345 {offsets = [0, 256], sizes = [8, 128], strides = [1, 1]} : vector<8x384xf32> to vector<8x128xf32>
    %370 = arith.addf %369, %21 : vector<8x128xf32>
    %371 = arith.mulf %357, %370 : vector<8x128xf32>
    %372 = arith.addf %368, %371 : vector<8x128xf32>
    %373 = math.tanh %372 : vector<8x128xf32>
    %374 = arith.subf %301, %373 : vector<8x128xf32>
    %375 = arith.mulf %367, %374 : vector<8x128xf32>
    %376 = arith.addf %373, %375 : vector<8x128xf32>
    %c8_i32_136 = arith.constant 8 : i32
    %377 = arith.muli %arg0, %c8_i32_136 : i32
    %378 = arith.addi %377, %c4_i32 : i32
    %c8_i32_137 = arith.constant 8 : i32
    %379 = arith.cmpi slt, %378, %c8_i32_137 : i32
    %380 = arith.select %379, %376, %301 : vector<8x128xf32>
    %c7_i32_138 = arith.constant 7 : i32
    %381 = arith.subi %c7_i32_138, %c4_i32 : i32
    %c8_i32_139 = arith.constant 8 : i32
    %382 = arith.muli %381, %c8_i32_139 : i32
    %383 = tpu.assume_multiple %382, 8 : i32
    %cst_140 = arith.constant dense<0.000000e+00> : vector<8x384xf32>
    %384 = tpu.matmul %342, %18, %cst_140 {dimension_numbers = #tpu.dot_dimension_numbers<[1], [0], [0], [1], [0, 0, 1, 1], [], []>} : vector<8x128xf32>, vector<128x384xf32>, vector<8x384xf32> -> vector<8x384xf32>
    %385 = arith.index_cast %383 : i32 to index
    %c0_141 = arith.constant 0 : index
    %386 = vector.load %arg13[%385, %c0_141] : memref<64x384xf32, #tpu.memory_space<vmem>>, vector<8x384xf32>
    %387 = vector.extract_strided_slice %386 {offsets = [0, 0], sizes = [8, 128], strides = [1, 1]} : vector<8x384xf32> to vector<8x128xf32>
    %388 = vector.extract_strided_slice %384 {offsets = [0, 0], sizes = [8, 128], strides = [1, 1]} : vector<8x384xf32> to vector<8x128xf32>
    %389 = arith.addf %387, %388 : vector<8x128xf32>
    %cst_142 = arith.constant 5.000000e-01 : f32
    %390 = vector.broadcast %cst_142 : f32 to vector<8x128xf32>
    %391 = arith.mulf %390, %389 : vector<8x128xf32>
    %392 = math.tanh %391 : vector<8x128xf32>
    %cst_143 = arith.constant 1.000000e+00 : f32
    %393 = vector.broadcast %cst_143 : f32 to vector<8x128xf32>
    %394 = arith.addf %392, %393 : vector<8x128xf32>
    %cst_144 = arith.constant 5.000000e-01 : f32
    %395 = vector.broadcast %cst_144 : f32 to vector<8x128xf32>
    %396 = arith.mulf %395, %394 : vector<8x128xf32>
    %397 = vector.extract_strided_slice %386 {offsets = [0, 128], sizes = [8, 128], strides = [1, 1]} : vector<8x384xf32> to vector<8x128xf32>
    %398 = vector.extract_strided_slice %384 {offsets = [0, 128], sizes = [8, 128], strides = [1, 1]} : vector<8x384xf32> to vector<8x128xf32>
    %399 = arith.addf %397, %398 : vector<8x128xf32>
    %cst_145 = arith.constant 5.000000e-01 : f32
    %400 = vector.broadcast %cst_145 : f32 to vector<8x128xf32>
    %401 = arith.mulf %400, %399 : vector<8x128xf32>
    %402 = math.tanh %401 : vector<8x128xf32>
    %cst_146 = arith.constant 1.000000e+00 : f32
    %403 = vector.broadcast %cst_146 : f32 to vector<8x128xf32>
    %404 = arith.addf %402, %403 : vector<8x128xf32>
    %cst_147 = arith.constant 5.000000e-01 : f32
    %405 = vector.broadcast %cst_147 : f32 to vector<8x128xf32>
    %406 = arith.mulf %405, %404 : vector<8x128xf32>
    %407 = vector.extract_strided_slice %386 {offsets = [0, 256], sizes = [8, 128], strides = [1, 1]} : vector<8x384xf32> to vector<8x128xf32>
    %408 = vector.extract_strided_slice %384 {offsets = [0, 256], sizes = [8, 128], strides = [1, 1]} : vector<8x384xf32> to vector<8x128xf32>
    %409 = arith.addf %408, %24 : vector<8x128xf32>
    %410 = arith.mulf %396, %409 : vector<8x128xf32>
    %411 = arith.addf %407, %410 : vector<8x128xf32>
    %412 = math.tanh %411 : vector<8x128xf32>
    %413 = arith.subf %342, %412 : vector<8x128xf32>
    %414 = arith.mulf %406, %413 : vector<8x128xf32>
    %415 = arith.addf %412, %414 : vector<8x128xf32>
    %c0_i32_148 = arith.constant 0 : i32
    %416 = arith.subi %c0_i32_148, %arg0 : i32
    %c8_i32_149 = arith.constant 8 : i32
    %417 = arith.muli %416, %c8_i32_149 : i32
    %c7_i32_150 = arith.constant 7 : i32
    %418 = arith.subi %c7_i32_150, %c4_i32 : i32
    %419 = arith.addi %417, %418 : i32
    %c8_i32_151 = arith.constant 8 : i32
    %420 = arith.cmpi slt, %419, %c8_i32_151 : i32
    %421 = arith.select %420, %415, %342 : vector<8x128xf32>
    %c5_i32 = arith.constant 5 : i32
    %c8_i32_152 = arith.constant 8 : i32
    %422 = arith.muli %c5_i32, %c8_i32_152 : i32
    %423 = tpu.assume_multiple %422, 8 : i32
    %cst_153 = arith.constant dense<0.000000e+00> : vector<8x384xf32>
    %424 = tpu.matmul %380, %17, %cst_153 {dimension_numbers = #tpu.dot_dimension_numbers<[1], [0], [0], [1], [0, 0, 1, 1], [], []>} : vector<8x128xf32>, vector<128x384xf32>, vector<8x384xf32> -> vector<8x384xf32>
    %425 = arith.index_cast %423 : i32 to index
    %c0_154 = arith.constant 0 : index
    %426 = vector.load %arg12[%425, %c0_154] : memref<64x384xf32, #tpu.memory_space<vmem>>, vector<8x384xf32>
    %427 = vector.extract_strided_slice %426 {offsets = [0, 0], sizes = [8, 128], strides = [1, 1]} : vector<8x384xf32> to vector<8x128xf32>
    %428 = vector.extract_strided_slice %424 {offsets = [0, 0], sizes = [8, 128], strides = [1, 1]} : vector<8x384xf32> to vector<8x128xf32>
    %429 = arith.addf %427, %428 : vector<8x128xf32>
    %cst_155 = arith.constant 5.000000e-01 : f32
    %430 = vector.broadcast %cst_155 : f32 to vector<8x128xf32>
    %431 = arith.mulf %430, %429 : vector<8x128xf32>
    %432 = math.tanh %431 : vector<8x128xf32>
    %cst_156 = arith.constant 1.000000e+00 : f32
    %433 = vector.broadcast %cst_156 : f32 to vector<8x128xf32>
    %434 = arith.addf %432, %433 : vector<8x128xf32>
    %cst_157 = arith.constant 5.000000e-01 : f32
    %435 = vector.broadcast %cst_157 : f32 to vector<8x128xf32>
    %436 = arith.mulf %435, %434 : vector<8x128xf32>
    %437 = vector.extract_strided_slice %426 {offsets = [0, 128], sizes = [8, 128], strides = [1, 1]} : vector<8x384xf32> to vector<8x128xf32>
    %438 = vector.extract_strided_slice %424 {offsets = [0, 128], sizes = [8, 128], strides = [1, 1]} : vector<8x384xf32> to vector<8x128xf32>
    %439 = arith.addf %437, %438 : vector<8x128xf32>
    %cst_158 = arith.constant 5.000000e-01 : f32
    %440 = vector.broadcast %cst_158 : f32 to vector<8x128xf32>
    %441 = arith.mulf %440, %439 : vector<8x128xf32>
    %442 = math.tanh %441 : vector<8x128xf32>
    %cst_159 = arith.constant 1.000000e+00 : f32
    %443 = vector.broadcast %cst_159 : f32 to vector<8x128xf32>
    %444 = arith.addf %442, %443 : vector<8x128xf32>
    %cst_160 = arith.constant 5.000000e-01 : f32
    %445 = vector.broadcast %cst_160 : f32 to vector<8x128xf32>
    %446 = arith.mulf %445, %444 : vector<8x128xf32>
    %447 = vector.extract_strided_slice %426 {offsets = [0, 256], sizes = [8, 128], strides = [1, 1]} : vector<8x384xf32> to vector<8x128xf32>
    %448 = vector.extract_strided_slice %424 {offsets = [0, 256], sizes = [8, 128], strides = [1, 1]} : vector<8x384xf32> to vector<8x128xf32>
    %449 = arith.addf %448, %21 : vector<8x128xf32>
    %450 = arith.mulf %436, %449 : vector<8x128xf32>
    %451 = arith.addf %447, %450 : vector<8x128xf32>
    %452 = math.tanh %451 : vector<8x128xf32>
    %453 = arith.subf %380, %452 : vector<8x128xf32>
    %454 = arith.mulf %446, %453 : vector<8x128xf32>
    %455 = arith.addf %452, %454 : vector<8x128xf32>
    %c8_i32_161 = arith.constant 8 : i32
    %456 = arith.muli %arg0, %c8_i32_161 : i32
    %457 = arith.addi %456, %c5_i32 : i32
    %c8_i32_162 = arith.constant 8 : i32
    %458 = arith.cmpi slt, %457, %c8_i32_162 : i32
    %459 = arith.select %458, %455, %380 : vector<8x128xf32>
    %c7_i32_163 = arith.constant 7 : i32
    %460 = arith.subi %c7_i32_163, %c5_i32 : i32
    %c8_i32_164 = arith.constant 8 : i32
    %461 = arith.muli %460, %c8_i32_164 : i32
    %462 = tpu.assume_multiple %461, 8 : i32
    %cst_165 = arith.constant dense<0.000000e+00> : vector<8x384xf32>
    %463 = tpu.matmul %421, %18, %cst_165 {dimension_numbers = #tpu.dot_dimension_numbers<[1], [0], [0], [1], [0, 0, 1, 1], [], []>} : vector<8x128xf32>, vector<128x384xf32>, vector<8x384xf32> -> vector<8x384xf32>
    %464 = arith.index_cast %462 : i32 to index
    %c0_166 = arith.constant 0 : index
    %465 = vector.load %arg13[%464, %c0_166] : memref<64x384xf32, #tpu.memory_space<vmem>>, vector<8x384xf32>
    %466 = vector.extract_strided_slice %465 {offsets = [0, 0], sizes = [8, 128], strides = [1, 1]} : vector<8x384xf32> to vector<8x128xf32>
    %467 = vector.extract_strided_slice %463 {offsets = [0, 0], sizes = [8, 128], strides = [1, 1]} : vector<8x384xf32> to vector<8x128xf32>
    %468 = arith.addf %466, %467 : vector<8x128xf32>
    %cst_167 = arith.constant 5.000000e-01 : f32
    %469 = vector.broadcast %cst_167 : f32 to vector<8x128xf32>
    %470 = arith.mulf %469, %468 : vector<8x128xf32>
    %471 = math.tanh %470 : vector<8x128xf32>
    %cst_168 = arith.constant 1.000000e+00 : f32
    %472 = vector.broadcast %cst_168 : f32 to vector<8x128xf32>
    %473 = arith.addf %471, %472 : vector<8x128xf32>
    %cst_169 = arith.constant 5.000000e-01 : f32
    %474 = vector.broadcast %cst_169 : f32 to vector<8x128xf32>
    %475 = arith.mulf %474, %473 : vector<8x128xf32>
    %476 = vector.extract_strided_slice %465 {offsets = [0, 128], sizes = [8, 128], strides = [1, 1]} : vector<8x384xf32> to vector<8x128xf32>
    %477 = vector.extract_strided_slice %463 {offsets = [0, 128], sizes = [8, 128], strides = [1, 1]} : vector<8x384xf32> to vector<8x128xf32>
    %478 = arith.addf %476, %477 : vector<8x128xf32>
    %cst_170 = arith.constant 5.000000e-01 : f32
    %479 = vector.broadcast %cst_170 : f32 to vector<8x128xf32>
    %480 = arith.mulf %479, %478 : vector<8x128xf32>
    %481 = math.tanh %480 : vector<8x128xf32>
    %cst_171 = arith.constant 1.000000e+00 : f32
    %482 = vector.broadcast %cst_171 : f32 to vector<8x128xf32>
    %483 = arith.addf %481, %482 : vector<8x128xf32>
    %cst_172 = arith.constant 5.000000e-01 : f32
    %484 = vector.broadcast %cst_172 : f32 to vector<8x128xf32>
    %485 = arith.mulf %484, %483 : vector<8x128xf32>
    %486 = vector.extract_strided_slice %465 {offsets = [0, 256], sizes = [8, 128], strides = [1, 1]} : vector<8x384xf32> to vector<8x128xf32>
    %487 = vector.extract_strided_slice %463 {offsets = [0, 256], sizes = [8, 128], strides = [1, 1]} : vector<8x384xf32> to vector<8x128xf32>
    %488 = arith.addf %487, %24 : vector<8x128xf32>
    %489 = arith.mulf %475, %488 : vector<8x128xf32>
    %490 = arith.addf %486, %489 : vector<8x128xf32>
    %491 = math.tanh %490 : vector<8x128xf32>
    %492 = arith.subf %421, %491 : vector<8x128xf32>
    %493 = arith.mulf %485, %492 : vector<8x128xf32>
    %494 = arith.addf %491, %493 : vector<8x128xf32>
    %c0_i32_173 = arith.constant 0 : i32
    %495 = arith.subi %c0_i32_173, %arg0 : i32
    %c8_i32_174 = arith.constant 8 : i32
    %496 = arith.muli %495, %c8_i32_174 : i32
    %c7_i32_175 = arith.constant 7 : i32
    %497 = arith.subi %c7_i32_175, %c5_i32 : i32
    %498 = arith.addi %496, %497 : i32
    %c8_i32_176 = arith.constant 8 : i32
    %499 = arith.cmpi slt, %498, %c8_i32_176 : i32
    %500 = arith.select %499, %494, %421 : vector<8x128xf32>
    %c6_i32 = arith.constant 6 : i32
    %c8_i32_177 = arith.constant 8 : i32
    %501 = arith.muli %c6_i32, %c8_i32_177 : i32
    %502 = tpu.assume_multiple %501, 8 : i32
    %cst_178 = arith.constant dense<0.000000e+00> : vector<8x384xf32>
    %503 = tpu.matmul %459, %17, %cst_178 {dimension_numbers = #tpu.dot_dimension_numbers<[1], [0], [0], [1], [0, 0, 1, 1], [], []>} : vector<8x128xf32>, vector<128x384xf32>, vector<8x384xf32> -> vector<8x384xf32>
    %504 = arith.index_cast %502 : i32 to index
    %c0_179 = arith.constant 0 : index
    %505 = vector.load %arg12[%504, %c0_179] : memref<64x384xf32, #tpu.memory_space<vmem>>, vector<8x384xf32>
    %506 = vector.extract_strided_slice %505 {offsets = [0, 0], sizes = [8, 128], strides = [1, 1]} : vector<8x384xf32> to vector<8x128xf32>
    %507 = vector.extract_strided_slice %503 {offsets = [0, 0], sizes = [8, 128], strides = [1, 1]} : vector<8x384xf32> to vector<8x128xf32>
    %508 = arith.addf %506, %507 : vector<8x128xf32>
    %cst_180 = arith.constant 5.000000e-01 : f32
    %509 = vector.broadcast %cst_180 : f32 to vector<8x128xf32>
    %510 = arith.mulf %509, %508 : vector<8x128xf32>
    %511 = math.tanh %510 : vector<8x128xf32>
    %cst_181 = arith.constant 1.000000e+00 : f32
    %512 = vector.broadcast %cst_181 : f32 to vector<8x128xf32>
    %513 = arith.addf %511, %512 : vector<8x128xf32>
    %cst_182 = arith.constant 5.000000e-01 : f32
    %514 = vector.broadcast %cst_182 : f32 to vector<8x128xf32>
    %515 = arith.mulf %514, %513 : vector<8x128xf32>
    %516 = vector.extract_strided_slice %505 {offsets = [0, 128], sizes = [8, 128], strides = [1, 1]} : vector<8x384xf32> to vector<8x128xf32>
    %517 = vector.extract_strided_slice %503 {offsets = [0, 128], sizes = [8, 128], strides = [1, 1]} : vector<8x384xf32> to vector<8x128xf32>
    %518 = arith.addf %516, %517 : vector<8x128xf32>
    %cst_183 = arith.constant 5.000000e-01 : f32
    %519 = vector.broadcast %cst_183 : f32 to vector<8x128xf32>
    %520 = arith.mulf %519, %518 : vector<8x128xf32>
    %521 = math.tanh %520 : vector<8x128xf32>
    %cst_184 = arith.constant 1.000000e+00 : f32
    %522 = vector.broadcast %cst_184 : f32 to vector<8x128xf32>
    %523 = arith.addf %521, %522 : vector<8x128xf32>
    %cst_185 = arith.constant 5.000000e-01 : f32
    %524 = vector.broadcast %cst_185 : f32 to vector<8x128xf32>
    %525 = arith.mulf %524, %523 : vector<8x128xf32>
    %526 = vector.extract_strided_slice %505 {offsets = [0, 256], sizes = [8, 128], strides = [1, 1]} : vector<8x384xf32> to vector<8x128xf32>
    %527 = vector.extract_strided_slice %503 {offsets = [0, 256], sizes = [8, 128], strides = [1, 1]} : vector<8x384xf32> to vector<8x128xf32>
    %528 = arith.addf %527, %21 : vector<8x128xf32>
    %529 = arith.mulf %515, %528 : vector<8x128xf32>
    %530 = arith.addf %526, %529 : vector<8x128xf32>
    %531 = math.tanh %530 : vector<8x128xf32>
    %532 = arith.subf %459, %531 : vector<8x128xf32>
    %533 = arith.mulf %525, %532 : vector<8x128xf32>
    %534 = arith.addf %531, %533 : vector<8x128xf32>
    %c8_i32_186 = arith.constant 8 : i32
    %535 = arith.muli %arg0, %c8_i32_186 : i32
    %536 = arith.addi %535, %c6_i32 : i32
    %c8_i32_187 = arith.constant 8 : i32
    %537 = arith.cmpi slt, %536, %c8_i32_187 : i32
    %538 = arith.select %537, %534, %459 : vector<8x128xf32>
    %c7_i32_188 = arith.constant 7 : i32
    %539 = arith.subi %c7_i32_188, %c6_i32 : i32
    %c8_i32_189 = arith.constant 8 : i32
    %540 = arith.muli %539, %c8_i32_189 : i32
    %541 = tpu.assume_multiple %540, 8 : i32
    %cst_190 = arith.constant dense<0.000000e+00> : vector<8x384xf32>
    %542 = tpu.matmul %500, %18, %cst_190 {dimension_numbers = #tpu.dot_dimension_numbers<[1], [0], [0], [1], [0, 0, 1, 1], [], []>} : vector<8x128xf32>, vector<128x384xf32>, vector<8x384xf32> -> vector<8x384xf32>
    %543 = arith.index_cast %541 : i32 to index
    %c0_191 = arith.constant 0 : index
    %544 = vector.load %arg13[%543, %c0_191] : memref<64x384xf32, #tpu.memory_space<vmem>>, vector<8x384xf32>
    %545 = vector.extract_strided_slice %544 {offsets = [0, 0], sizes = [8, 128], strides = [1, 1]} : vector<8x384xf32> to vector<8x128xf32>
    %546 = vector.extract_strided_slice %542 {offsets = [0, 0], sizes = [8, 128], strides = [1, 1]} : vector<8x384xf32> to vector<8x128xf32>
    %547 = arith.addf %545, %546 : vector<8x128xf32>
    %cst_192 = arith.constant 5.000000e-01 : f32
    %548 = vector.broadcast %cst_192 : f32 to vector<8x128xf32>
    %549 = arith.mulf %548, %547 : vector<8x128xf32>
    %550 = math.tanh %549 : vector<8x128xf32>
    %cst_193 = arith.constant 1.000000e+00 : f32
    %551 = vector.broadcast %cst_193 : f32 to vector<8x128xf32>
    %552 = arith.addf %550, %551 : vector<8x128xf32>
    %cst_194 = arith.constant 5.000000e-01 : f32
    %553 = vector.broadcast %cst_194 : f32 to vector<8x128xf32>
    %554 = arith.mulf %553, %552 : vector<8x128xf32>
    %555 = vector.extract_strided_slice %544 {offsets = [0, 128], sizes = [8, 128], strides = [1, 1]} : vector<8x384xf32> to vector<8x128xf32>
    %556 = vector.extract_strided_slice %542 {offsets = [0, 128], sizes = [8, 128], strides = [1, 1]} : vector<8x384xf32> to vector<8x128xf32>
    %557 = arith.addf %555, %556 : vector<8x128xf32>
    %cst_195 = arith.constant 5.000000e-01 : f32
    %558 = vector.broadcast %cst_195 : f32 to vector<8x128xf32>
    %559 = arith.mulf %558, %557 : vector<8x128xf32>
    %560 = math.tanh %559 : vector<8x128xf32>
    %cst_196 = arith.constant 1.000000e+00 : f32
    %561 = vector.broadcast %cst_196 : f32 to vector<8x128xf32>
    %562 = arith.addf %560, %561 : vector<8x128xf32>
    %cst_197 = arith.constant 5.000000e-01 : f32
    %563 = vector.broadcast %cst_197 : f32 to vector<8x128xf32>
    %564 = arith.mulf %563, %562 : vector<8x128xf32>
    %565 = vector.extract_strided_slice %544 {offsets = [0, 256], sizes = [8, 128], strides = [1, 1]} : vector<8x384xf32> to vector<8x128xf32>
    %566 = vector.extract_strided_slice %542 {offsets = [0, 256], sizes = [8, 128], strides = [1, 1]} : vector<8x384xf32> to vector<8x128xf32>
    %567 = arith.addf %566, %24 : vector<8x128xf32>
    %568 = arith.mulf %554, %567 : vector<8x128xf32>
    %569 = arith.addf %565, %568 : vector<8x128xf32>
    %570 = math.tanh %569 : vector<8x128xf32>
    %571 = arith.subf %500, %570 : vector<8x128xf32>
    %572 = arith.mulf %564, %571 : vector<8x128xf32>
    %573 = arith.addf %570, %572 : vector<8x128xf32>
    %c0_i32_198 = arith.constant 0 : i32
    %574 = arith.subi %c0_i32_198, %arg0 : i32
    %c8_i32_199 = arith.constant 8 : i32
    %575 = arith.muli %574, %c8_i32_199 : i32
    %c7_i32_200 = arith.constant 7 : i32
    %576 = arith.subi %c7_i32_200, %c6_i32 : i32
    %577 = arith.addi %575, %576 : i32
    %c8_i32_201 = arith.constant 8 : i32
    %578 = arith.cmpi slt, %577, %c8_i32_201 : i32
    %579 = arith.select %578, %573, %500 : vector<8x128xf32>
    %c7_i32_202 = arith.constant 7 : i32
    %c8_i32_203 = arith.constant 8 : i32
    %580 = arith.muli %c7_i32_202, %c8_i32_203 : i32
    %581 = tpu.assume_multiple %580, 8 : i32
    %cst_204 = arith.constant dense<0.000000e+00> : vector<8x384xf32>
    %582 = tpu.matmul %538, %17, %cst_204 {dimension_numbers = #tpu.dot_dimension_numbers<[1], [0], [0], [1], [0, 0, 1, 1], [], []>} : vector<8x128xf32>, vector<128x384xf32>, vector<8x384xf32> -> vector<8x384xf32>
    %583 = arith.index_cast %581 : i32 to index
    %c0_205 = arith.constant 0 : index
    %584 = vector.load %arg12[%583, %c0_205] : memref<64x384xf32, #tpu.memory_space<vmem>>, vector<8x384xf32>
    %585 = vector.extract_strided_slice %584 {offsets = [0, 0], sizes = [8, 128], strides = [1, 1]} : vector<8x384xf32> to vector<8x128xf32>
    %586 = vector.extract_strided_slice %582 {offsets = [0, 0], sizes = [8, 128], strides = [1, 1]} : vector<8x384xf32> to vector<8x128xf32>
    %587 = arith.addf %585, %586 : vector<8x128xf32>
    %cst_206 = arith.constant 5.000000e-01 : f32
    %588 = vector.broadcast %cst_206 : f32 to vector<8x128xf32>
    %589 = arith.mulf %588, %587 : vector<8x128xf32>
    %590 = math.tanh %589 : vector<8x128xf32>
    %cst_207 = arith.constant 1.000000e+00 : f32
    %591 = vector.broadcast %cst_207 : f32 to vector<8x128xf32>
    %592 = arith.addf %590, %591 : vector<8x128xf32>
    %cst_208 = arith.constant 5.000000e-01 : f32
    %593 = vector.broadcast %cst_208 : f32 to vector<8x128xf32>
    %594 = arith.mulf %593, %592 : vector<8x128xf32>
    %595 = vector.extract_strided_slice %584 {offsets = [0, 128], sizes = [8, 128], strides = [1, 1]} : vector<8x384xf32> to vector<8x128xf32>
    %596 = vector.extract_strided_slice %582 {offsets = [0, 128], sizes = [8, 128], strides = [1, 1]} : vector<8x384xf32> to vector<8x128xf32>
    %597 = arith.addf %595, %596 : vector<8x128xf32>
    %cst_209 = arith.constant 5.000000e-01 : f32
    %598 = vector.broadcast %cst_209 : f32 to vector<8x128xf32>
    %599 = arith.mulf %598, %597 : vector<8x128xf32>
    %600 = math.tanh %599 : vector<8x128xf32>
    %cst_210 = arith.constant 1.000000e+00 : f32
    %601 = vector.broadcast %cst_210 : f32 to vector<8x128xf32>
    %602 = arith.addf %600, %601 : vector<8x128xf32>
    %cst_211 = arith.constant 5.000000e-01 : f32
    %603 = vector.broadcast %cst_211 : f32 to vector<8x128xf32>
    %604 = arith.mulf %603, %602 : vector<8x128xf32>
    %605 = vector.extract_strided_slice %584 {offsets = [0, 256], sizes = [8, 128], strides = [1, 1]} : vector<8x384xf32> to vector<8x128xf32>
    %606 = vector.extract_strided_slice %582 {offsets = [0, 256], sizes = [8, 128], strides = [1, 1]} : vector<8x384xf32> to vector<8x128xf32>
    %607 = arith.addf %606, %21 : vector<8x128xf32>
    %608 = arith.mulf %594, %607 : vector<8x128xf32>
    %609 = arith.addf %605, %608 : vector<8x128xf32>
    %610 = math.tanh %609 : vector<8x128xf32>
    %611 = arith.subf %538, %610 : vector<8x128xf32>
    %612 = arith.mulf %604, %611 : vector<8x128xf32>
    %613 = arith.addf %610, %612 : vector<8x128xf32>
    %c8_i32_212 = arith.constant 8 : i32
    %614 = arith.muli %arg0, %c8_i32_212 : i32
    %615 = arith.addi %614, %c7_i32_202 : i32
    %c8_i32_213 = arith.constant 8 : i32
    %616 = arith.cmpi slt, %615, %c8_i32_213 : i32
    %617 = arith.select %616, %613, %538 : vector<8x128xf32>
    %c7_i32_214 = arith.constant 7 : i32
    %618 = arith.subi %c7_i32_214, %c7_i32_202 : i32
    %c8_i32_215 = arith.constant 8 : i32
    %619 = arith.muli %618, %c8_i32_215 : i32
    %620 = tpu.assume_multiple %619, 8 : i32
    %cst_216 = arith.constant dense<0.000000e+00> : vector<8x384xf32>
    %621 = tpu.matmul %579, %18, %cst_216 {dimension_numbers = #tpu.dot_dimension_numbers<[1], [0], [0], [1], [0, 0, 1, 1], [], []>} : vector<8x128xf32>, vector<128x384xf32>, vector<8x384xf32> -> vector<8x384xf32>
    %622 = arith.index_cast %620 : i32 to index
    %c0_217 = arith.constant 0 : index
    %623 = vector.load %arg13[%622, %c0_217] : memref<64x384xf32, #tpu.memory_space<vmem>>, vector<8x384xf32>
    %624 = vector.extract_strided_slice %623 {offsets = [0, 0], sizes = [8, 128], strides = [1, 1]} : vector<8x384xf32> to vector<8x128xf32>
    %625 = vector.extract_strided_slice %621 {offsets = [0, 0], sizes = [8, 128], strides = [1, 1]} : vector<8x384xf32> to vector<8x128xf32>
    %626 = arith.addf %624, %625 : vector<8x128xf32>
    %cst_218 = arith.constant 5.000000e-01 : f32
    %627 = vector.broadcast %cst_218 : f32 to vector<8x128xf32>
    %628 = arith.mulf %627, %626 : vector<8x128xf32>
    %629 = math.tanh %628 : vector<8x128xf32>
    %cst_219 = arith.constant 1.000000e+00 : f32
    %630 = vector.broadcast %cst_219 : f32 to vector<8x128xf32>
    %631 = arith.addf %629, %630 : vector<8x128xf32>
    %cst_220 = arith.constant 5.000000e-01 : f32
    %632 = vector.broadcast %cst_220 : f32 to vector<8x128xf32>
    %633 = arith.mulf %632, %631 : vector<8x128xf32>
    %634 = vector.extract_strided_slice %623 {offsets = [0, 128], sizes = [8, 128], strides = [1, 1]} : vector<8x384xf32> to vector<8x128xf32>
    %635 = vector.extract_strided_slice %621 {offsets = [0, 128], sizes = [8, 128], strides = [1, 1]} : vector<8x384xf32> to vector<8x128xf32>
    %636 = arith.addf %634, %635 : vector<8x128xf32>
    %cst_221 = arith.constant 5.000000e-01 : f32
    %637 = vector.broadcast %cst_221 : f32 to vector<8x128xf32>
    %638 = arith.mulf %637, %636 : vector<8x128xf32>
    %639 = math.tanh %638 : vector<8x128xf32>
    %cst_222 = arith.constant 1.000000e+00 : f32
    %640 = vector.broadcast %cst_222 : f32 to vector<8x128xf32>
    %641 = arith.addf %639, %640 : vector<8x128xf32>
    %cst_223 = arith.constant 5.000000e-01 : f32
    %642 = vector.broadcast %cst_223 : f32 to vector<8x128xf32>
    %643 = arith.mulf %642, %641 : vector<8x128xf32>
    %644 = vector.extract_strided_slice %623 {offsets = [0, 256], sizes = [8, 128], strides = [1, 1]} : vector<8x384xf32> to vector<8x128xf32>
    %645 = vector.extract_strided_slice %621 {offsets = [0, 256], sizes = [8, 128], strides = [1, 1]} : vector<8x384xf32> to vector<8x128xf32>
    %646 = arith.addf %645, %24 : vector<8x128xf32>
    %647 = arith.mulf %633, %646 : vector<8x128xf32>
    %648 = arith.addf %644, %647 : vector<8x128xf32>
    %649 = math.tanh %648 : vector<8x128xf32>
    %650 = arith.subf %579, %649 : vector<8x128xf32>
    %651 = arith.mulf %643, %650 : vector<8x128xf32>
    %652 = arith.addf %649, %651 : vector<8x128xf32>
    %c0_i32_224 = arith.constant 0 : i32
    %653 = arith.subi %c0_i32_224, %arg0 : i32
    %c8_i32_225 = arith.constant 8 : i32
    %654 = arith.muli %653, %c8_i32_225 : i32
    %c7_i32_226 = arith.constant 7 : i32
    %655 = arith.subi %c7_i32_226, %c7_i32_202 : i32
    %656 = arith.addi %654, %655 : i32
    %c8_i32_227 = arith.constant 8 : i32
    %657 = arith.cmpi slt, %656, %c8_i32_227 : i32
    %658 = arith.select %657, %652, %579 : vector<8x128xf32>
    %c8_i32_228 = arith.constant 8 : i32
    %c0_229 = arith.constant 0 : index
    %c0_230 = arith.constant 0 : index
    %659 = vector.load %arg11[%c0_229, %c0_230] : memref<8x256xf32, #tpu.memory_space<vmem>>, vector<8x128xf32>
    tpu.vector_store %arg11[%c0_229, %c0_230], %617 {strides = array<i32>} : memref<8x256xf32, #tpu.memory_space<vmem>>, vector<8x128xf32>,
    %c0_231 = arith.constant 0 : index
    %c128_232 = arith.constant 128 : index
    %660 = vector.load %arg11[%c0_231, %c128_232] : memref<8x256xf32, #tpu.memory_space<vmem>>, vector<8x128xf32>
    tpu.vector_store %arg11[%c0_231, %c128_232], %658 {strides = array<i32>} : memref<8x256xf32, #tpu.memory_space<vmem>>, vector<8x128xf32>,
    return
  }
  func.func @transform_0(%arg0: i32) -> (i32, i32) {
    %c0_i32 = arith.constant 0 : i32
    %c0_i32_0 = arith.constant 0 : i32
    return %arg0, %c0_i32 : i32, i32
  }
  func.func @transform_1(%arg0: i32) -> (i32, i32) {
    %c0_i32 = arith.constant 0 : i32
    %0 = arith.subi %c0_i32, %arg0 : i32
    %c0_i32_0 = arith.constant 0 : i32
    %c0_i32_1 = arith.constant 0 : i32
    return %0, %c0_i32_0 : i32, i32
  }
  func.func @transform_2(%arg0: i32) -> (i32, i32) {
    %c0_i32 = arith.constant 0 : i32
    %c0_i32_0 = arith.constant 0 : i32
    %c0_i32_1 = arith.constant 0 : i32
    return %c0_i32, %c0_i32_0 : i32, i32
  }
  func.func @transform_3(%arg0: i32) -> (i32, i32) {
    %c0_i32 = arith.constant 0 : i32
    %c0_i32_0 = arith.constant 0 : i32
    %c0_i32_1 = arith.constant 0 : i32
    return %c0_i32, %c0_i32_0 : i32, i32
  }
  func.func @transform_4(%arg0: i32) -> (i32, i32) {
    %c0_i32 = arith.constant 0 : i32
    %c0_i32_0 = arith.constant 0 : i32
    %c0_i32_1 = arith.constant 0 : i32
    return %c0_i32, %c0_i32_0 : i32, i32
  }
  func.func @transform_5(%arg0: i32) -> (i32, i32) {
    %c0_i32 = arith.constant 0 : i32
    %c0_i32_0 = arith.constant 0 : i32
    %c0_i32_1 = arith.constant 0 : i32
    return %c0_i32, %c0_i32_0 : i32, i32
  }
  func.func @transform_6(%arg0: i32) -> (i32, i32) {
    %c0_i32 = arith.constant 0 : i32
    %c0_i32_0 = arith.constant 0 : i32
    %c0_i32_1 = arith.constant 0 : i32
    return %c0_i32, %c0_i32_0 : i32, i32
  }
  func.func @transform_7(%arg0: i32) -> (i32, i32) {
    %c0_i32 = arith.constant 0 : i32
    %c0_i32_0 = arith.constant 0 : i32
    %c0_i32_1 = arith.constant 0 : i32
    return %c0_i32, %c0_i32_0 : i32, i32
  }
  func.func @transform_8(%arg0: i32) -> (i32, i32) {
    %c0_i32 = arith.constant 0 : i32
    %c0_i32_0 = arith.constant 0 : i32
    %c0_i32_1 = arith.constant 0 : i32
    return %c0_i32, %c0_i32_0 : i32, i32
  }
  func.func @transform_9(%arg0: i32) -> (i32, i32) {
    %c0_i32 = arith.constant 0 : i32
    %c0_i32_0 = arith.constant 0 : i32
    %c0_i32_1 = arith.constant 0 : i32
    return %c0_i32, %c0_i32_0 : i32, i32
  }
  func.func @transform_10(%arg0: i32) -> (i32, i32) {
    %c0_i32 = arith.constant 0 : i32
    %c0_i32_0 = arith.constant 0 : i32
    %c0_i32_1 = arith.constant 0 : i32
    return %c0_i32, %c0_i32_0 : i32, i32
  }
}

</mosaic_0001>

<bundles_post_ra>
// kernel: tpu_custom_call.1
= control target key start
LH: loop header
LB: loop body
LE: loop exit
PB: predicated region body
PF: predicated region fallthrough
CT: control target
= control target key end

     0   :  { %15 = vsyncpa [#allocation5], 0  ;;  %s6738_s0 = inlined_call_operand.vmem [shape: f32[64,16], index: 0, kind: input, shape index: {}]   ;;  %s6739_s1 = inlined_call_operand.vmem [shape: f32[64,16], index: 1, kind: input, shape index: {}]   ;;  %s6740_s2 = inlined_call_operand.vmem [shape: f32[16,384], index: 2, kind: input, shape index: {}]   ;;  %s6741_s3 = inlined_call_operand.vmem [shape: f32[16,384], index: 3, kind: input, shape index: {}]   ;;  %s6742_s4 = inlined_call_operand.vmem [shape: f32[1,384], index: 4, kind: input, shape index: {}]   ;;  %s6743_s5 = inlined_call_operand.vmem [shape: f32[1,384], index: 5, kind: input, shape index: {}]   ;;  %s6744_s6 = inlined_call_operand.hbm [shape: f32[128,384], index: 6, kind: input, shape index: {}]   ;;  %s6745_s7 = inlined_call_operand.hbm [shape: f32[128,384], index: 7, kind: input, shape index: {}]   ;;  %s6746_s8 = inlined_call_operand.vmem [shape: f32[1,128], index: 8, kind: input, shape index: {}]   ;;  %s6747_s9 = inlined_call_operand.vmem [shape: f32[1,128], index: 9, kind: input, shape index: {}]   ;;  %s6748_s10 = inlined_call_operand.hbm [shape: f32[8,256], index: 10, kind: output, shape index: {}]  }
   0x1   :  { %16 = vsyncpa [#allocation8], 0 }
   0x2   :  { %17 = vsyncpa [#allocation6], 0  ;;  %s5624_s13 = smov [#allocation4]   ;;  %s5552_s17 = scalar_lea.hbm %s6744_s6, 6144 }
   0x3   :  { %s43_s14 = sshll.u32 %s5624_s13, 4  ;;  %p5553_p0 = scmp.ne.s32.totalorder %s6744_s6, %s5552_s17  ;;  %s44_s14 = int_to_ptr.vmem [resolvable:$true] %s43_s14 }
   0x4   :  { %p5556_p1 = scmp.lt.u32.totalorder %s5552_s17, %s6744_s6 }
   0x6   :  { %p5558_p2 = pnand %p5556_p1, %p5553_p0 }
   0x8   :  { %5561 = shalt.err (!%p5558_p2)
}
   0x9   :  { %s5562_s22 = scalar_lea.vmem %s44_s14, 6144  ;;  %p5567_p4 = scmp.lt.s32.totalorder %s44_s14, %s44_s14 }
   0xa   :  { %p5563_p3 = scmp.ne.s32.totalorder %s44_s14, %s5562_s22  ;;  %p5568_p5 = scmp.lt.s32.totalorder %s5562_s22, %s5562_s22 }
   0xc   :  { %p5569_p6 = por %p5568_p5, %p5567_p4 }
   0xe   :  { %p5570_p7 = pnand %p5569_p6, %p5563_p3 }
  0x10   :  { %5573 = shalt.err (!%p5570_p7)
}
  0x11   :  { %s5625_s23 = smov 384   ;;  %s5626_s24 = smov 24  }
  0x12   :  { %49 = dma.hbm_to_vmem [thread:$0]  %s6744_s6, 6144, %s44_s14, [#allocation5], %s5625_s23, %s5625_s23, %s5626_s24  }
  0x13   :  { %s5627_s27 = smov [#allocation7]   ;;  %s5574_s11 = scalar_lea.hbm %s6745_s7, 6144 }
  0x14   :  { %s55_s28 = sshll.u32 %s5627_s27, 4  ;;  %p5575_p8 = scmp.ne.s32.totalorder %s6745_s7, %s5574_s11  ;;  %s56_s28 = int_to_ptr.vmem [resolvable:$true] %s55_s28 }
  0x15   :  { %p5578_p9 = scmp.lt.u32.totalorder %s5574_s11, %s6745_s7 }
  0x17   :  { %p5580_p10 = pnand %p5578_p9, %p5575_p8 }
  0x19   :  { %5583 = shalt.err (!%p5580_p10)
}
  0x1a   :  { %s5584_s17 = scalar_lea.vmem %s56_s28, 6144  ;;  %p5589_p12 = scmp.lt.s32.totalorder %s56_s28, %s56_s28 }
  0x1b   :  { %p5585_p11 = scmp.ne.s32.totalorder %s56_s28, %s5584_s17  ;;  %p5590_p13 = scmp.lt.s32.totalorder %s5584_s17, %s5584_s17 }
  0x1d   :  { %p5591_p0 = por %p5590_p13, %p5589_p12 }
  0x1f   :  { %p5592_p1 = pnand %p5591_p0, %p5585_p11 }
  0x21   :  { %5595 = shalt.err (!%p5592_p1)
}
  0x22   :  { %61 = dma.hbm_to_vmem [thread:$0]  %s6745_s7, 6144, %s56_s28, [#allocation8], %s5625_s23, %s5625_s23, %s5626_s24  }
  0x23   :  { %5618 = dma.done.wait [#allocation5], 6144  }
  0x24   :  { %5619 = vsyncadd [#allocation5], 4294961152 }
  0x25   :  { %5620 = dma.done.wait [#allocation8], 6144  }
  0x26   :  { %5621 = vsyncadd [#allocation8], 4294961152  ;;  %v6749_v0 = vmov 0.0   ;;  %v101_v1 = vld [vmem:[%s6740_s2 + $0x8] sm:$0xff]  ;;  %v104_v2 = vld [vmem:[%s6740_s2 + $0x20] sm:$0xff]  ;;  %vm123_vm0 = vcmask 130048  }
  0x27   :  { %212 = vmatprep.mubr.f32.mxu0 %v6749_v0  ;;  %248 = vmatprep.mubr.f32.mxu1 %v6749_v0  ;;  %v100_v3 = vld [vmem:[%s6740_s2] sm:$0xff]  ;;  %v4468_v4 = vpack.c.bf16 %v104_v2, %v101_v1  ;;  %v103_v5 = vld [vmem:[%s6740_s2 + $0x18] sm:$0xff]  ;;  %v102_v7 = vld [vmem:[%s6740_s2 + $0x10] sm:$0xff]  ;;  %v6751_v29 = vmov 0.0|0.0   ;;  %vm5630_vm1 = vmmov 0  }
  0x28   :  { %v4470_v6 = vpack.c.bf16 %v103_v5, %v100_v3  ;;  %v105_v8 = vld [vmem:[%s6740_s2 + $0x28] sm:$0xff]  ;;  %v400_v9 = vld [vmem:[%s6741_s3 + $0x10] sm:$0xff]  ;;  %v92_v10 = vld [vmem:[%s6738_s0] sm:$0xff] }
  0x29   :  { %4469 = vmatprep.subr.bf16.mxu0 %v4468_v4  ;;  %5380 = vmatprep.subr.bf16.mxu1 %v4468_v4  ;;  %v4472_v11 = vpack.c.bf16 %v105_v8, %v102_v7  ;;  %v403_v12 = vld [vmem:[%s6741_s3 + $0x28] sm:$0xff]  ;;  %v98_v13 = vld [vmem:[%s6738_s0 + $0x30] sm:$0xff]  ;;  %v402_v16 = vld [vmem:[%s6741_s3 + $0x20] sm:$0xff] }
  0x2a   :  { %4471 = vmatpush1.bf16.msra.mxu0 %v4470_v6  ;;  %5381 = vmatpush1.bf16.msra.mxu1 %v4470_v6  ;;  %v4480_v14 = vpack.c.bf16 %v403_v12, %v400_v9  ;;  %v399_v15 = vld [vmem:[%s6741_s3 + $0x8] sm:$0xff]  ;;  %v691_v19 = vld [vmem:[#allocation4 + $0x20] sm:$0xff]  ;;  %v99_v21 = vld [vmem:[%s6738_s0 + $0x38] sm:$0xff] }
  0x2b   :  { %4473 = vmatprep.subr.bf16.mxu1 %v4472_v11  ;;  %v4476_v17 = vpack.c.bf16 %v402_v16, %v399_v15  ;;  %v688_v18 = vld [vmem:[#allocation4 + $0x8] sm:$0xff]  ;;  %v398_v23 = vld [vmem:[%s6741_s3] sm:$0xff]  ;;  %v401_v24 = vld [vmem:[%s6741_s3 + $0x18] sm:$0xff] }
  0x2c   :  { %4481 = vmatprep.subr.bf16.mxu0 %v4480_v14  ;;  %v93_v20 = vld [vmem:[%s6738_s0 + $0x8] sm:$0xff]  ;;  %v5757_v22 = vpack.c.bf16 %v691_v19, %v688_v18  ;;  %v94_v25 = vld [vmem:[%s6738_s0 + $0x10] sm:$0xff]  ;;  %v4478_v26 = vpack.c.bf16 %v401_v24, %v398_v23  ;;  %v95_v27 = vld [vmem:[%s6738_s0 + $0x18] sm:$0xff] }
  0x2d   :  { %3550 = vmatmul.mubr.msk.f32.vlgmr.msra.gmra.mrb[0].mxu0 %vm123_vm0, %v92_v10  ;;  %3556 = vmatmul.mubr.msk.f32.vlgmr.msra.gmra.mrb[0].mxu1 %vm123_vm0, %v98_v13  ;;  %v96_v28 = vld [vmem:[%s6738_s0 + $0x20] sm:$0xff]  ;;  %v97_v30 = vld [vmem:[%s6738_s0 + $0x28] sm:$0xff]  ;;  %v690_v33 = vld [vmem:[#allocation4 + $0x18] sm:$0xff] }
  0x2e   :  { %4475 = vmatpush3.bf16.msra.mxu1 %v4472_v11  ;;  %4483 = vmatpush3.bf16.msra.mxu0 %v4480_v14  ;;  %v390_v31 = vld [vmem:[%s6739_s1] sm:$0xff]  ;;  %v689_v34 = vld [vmem:[#allocation4 + $0x10] sm:$0xff]  ;;  %v692_v35 = vld [vmem:[#allocation4 + $0x28] sm:$0xff] }
  0x2f   :  { %218 = vmatprep.mubr.f32.mxu0 %v6749_v0  ;;  %254 = vmatprep.mubr.f32.mxu1 %v6749_v0  ;;  %v687_v32 = vld [vmem:[#allocation4] sm:$0xff]  ;;  %v694_v36 = vld [vmem:[#allocation4 + $0x38] sm:$0xff]  ;;  %v697_v37 = vld [vmem:[#allocation4 + $0x50] sm:$0xff]  ;;  %v5809_v40 = vpack.c.bf16 %v692_v35, %v689_v34 }
  0x30   :  { %4477 = vmatprep.subr.bf16.mxu1 %v4476_v17  ;;  %4485 = vmatprep.subr.bf16.mxu0 %v5757_v22  ;;  %v391_v38 = vld [vmem:[%s6739_s1 + $0x8] sm:$0xff]  ;;  %v5807_v39 = vpack.c.bf16 %v690_v33, %v687_v32  ;;  %v693_v41 = vld [vmem:[#allocation4 + $0x30] sm:$0xff]  ;;  %v5811_v42 = vpack.c.bf16 %v697_v37, %v694_v36  ;;  %v695_v44 = vld [vmem:[#allocation4 + $0x40] sm:$0xff] }
  0x31   :  { %3551 = vmatmul.mubr.msk.f32.gmra.mrb[2].mxu0 %vm123_vm0, %v93_v20  ;;  %3557 = vmatmul.mubr.msk.f32.gmra.mrb[2].mxu1 %vm123_vm0, %v99_v21  ;;  %v696_v43 = vld [vmem:[#allocation4 + $0x48] sm:$0xff]  ;;  %v698_v45 = vld [vmem:[#allocation4 + $0x58] sm:$0xff]  ;;  %v703_v47 = vld [vmem:[#allocation4 + $0x80] sm:$0xff] }
  0x32   :  { %224 = vmatprep.mubr.f32.mxu0 %v6749_v0  ;;  %3880 = vmatprep.mubr.msk.f32.mxu1 %vm123_vm0, %v92_v10  ;;  %v700_v46 = vld [vmem:[#allocation4 + $0x68] sm:$0xff]  ;;  %v5817_v48 = vpack.c.bf16 %v696_v43, %v693_v41  ;;  %v5819_v49 = vpack.c.bf16 %v698_v45, %v695_v44  ;;  %v392_v50 = vld [vmem:[%s6739_s1 + $0x10] sm:$0xff]  ;;  %v699_v51 = vld [vmem:[#allocation4 + $0x60] sm:$0xff] }
  0x33   :  { %v5826_v52 = vpack.c.bf16 %v703_v47, %v700_v46  ;;  %v702_v53 = vld [vmem:[#allocation4 + $0x78] sm:$0xff]  ;;  %v701_v54 = vld [vmem:[#allocation4 + $0x70] sm:$0xff]  ;;  %v704_v55 = vld [vmem:[#allocation4 + $0x88] sm:$0xff] }
  0x34   :  { %v706_v56 = vld [vmem:[#allocation4 + $0x98] sm:$0xff]  ;;  %v709_v57 = vld [vmem:[#allocation4 + $0xb0] sm:$0xff]  ;;  %v5837_v59 = vpack.c.bf16 %v702_v53, %v699_v51  ;;  %v5839_v60 = vpack.c.bf16 %v704_v55, %v701_v54  ;;  %v708_v62 = vld [vmem:[#allocation4 + $0xa8] sm:$0xff] }
  0x35   :  { %3552 = vmatmul.mubr.msk.f32.gmra.mrb[4].mxu0 %vm123_vm0, %v94_v25  ;;  %3881 = vmatmul.mubr.msk.f32.vlgmr.msra.gmra.mrb[4].mxu1 %vm123_vm0, %v93_v20  ;;  %v393_v58 = vld [vmem:[%s6739_s1 + $0x18] sm:$0xff]  ;;  %v705_v61 = vld [vmem:[#allocation4 + $0x90] sm:$0xff]  ;;  %v5843_v63 = vpack.c.bf16 %v709_v57, %v706_v56  ;;  %v707_v1 = vld [vmem:[#allocation4 + $0xa0] sm:$0xff] }
  0x36   :  { %4479 = vmatpush1.bf16.msra.mxu1 %v4478_v26  ;;  %230 = vmatprep.mubr.f32.mxu0 %v6749_v0  ;;  %v710_v2 = vld [vmem:[#allocation4 + $0xb8] sm:$0xff]  ;;  %v394_v3 = vld [vmem:[%s6739_s1 + $0x20] sm:$0xff]  ;;  %v712_v4 = vld [vmem:[#allocation4 + $0xc8] sm:$0xff]  ;;  %v5857_v7 = vpack.c.bf16 %v708_v62, %v705_v61 }
  0x37   :  { %3883 = vmatprep.mubr.msk.f32.mxu1 %vm123_vm0, %v94_v25  ;;  %4516 = vmatprep.subr.bf16.mxu1 %v6751_v29  ;;  %v715_v5 = vld [vmem:[#allocation4 + $0xe0] sm:$0xff]  ;;  %v395_v6 = vld [vmem:[%s6739_s1 + $0x28] sm:$0xff]  ;;  %v5859_v8 = vpack.c.bf16 %v710_v2, %v707_v1  ;;  %v714_v10 = vld [vmem:[#allocation4 + $0xd8] sm:$0xff] }
  0x38   :  { %v711_v9 = vld [vmem:[#allocation4 + $0xc0] sm:$0xff]  ;;  %v5864_v11 = vld [vmem:[%s6739_s1 + $0x38] sm:$0xff]  ;;  %v5868_v12 = vpack.c.bf16 %v715_v5, %v712_v4  ;;  %v716_v14 = vld [vmem:[#allocation4 + $0xe8] sm:$0xff] }
  0x39   :  { %3553 = vmatmul.mubr.msk.f32.gmra.mrb[6].mxu0 %vm123_vm0, %v95_v27  ;;  %3884 = vmatmul.mubr.msk.f32.gmra.mrb[6].mxu1 %vm123_vm0, %v95_v27  ;;  %v396_v15 = vld [vmem:[%s6739_s1 + $0x30] sm:$0xff]  ;;  %v718_v16 = vld [vmem:[#allocation4 + $0xf8] sm:$0xff]  ;;  %v5880_v18 = vpack.c.bf16 %v714_v10, %v711_v9  ;;  %v720_v23 = vld [vmem:[#allocation4 + $0x108] sm:$0xff] }
  0x3a   :  { %236 = vmatprep.mubr.f32.mxu0 %v6749_v0  ;;  %3886 = vmatprep.mubr.msk.f32.mxu1 %vm123_vm0, %v96_v28  ;;  %v721_v17 = vld [vmem:[#allocation4 + $0x110] sm:$0xff]  ;;  %v719_v24 = vld [vmem:[#allocation4 + $0x100] sm:$0xff]  ;;  %v722_v25 = vld [vmem:[#allocation4 + $0x118] sm:$0xff] }
  0x3b   :  { %v717_v20 = vld [vmem:[#allocation4 + $0xf0] sm:$0xff]  ;;  %v724_v26 = vld [vmem:[#allocation4 + $0x128] sm:$0xff]  ;;  %v727_v27 = vld [vmem:[#allocation4 + $0x140] sm:$0xff] }
  0x3c   :  { %v5899_v32 = vpack.c.bf16 %v727_v27, %v724_v26  ;;  %v726_v33 = vld [vmem:[#allocation4 + $0x138] sm:$0xff]  ;;  %v725_v34 = vld [vmem:[#allocation4 + $0x130] sm:$0xff]  ;;  %v728_v35 = vld [vmem:[#allocation4 + $0x148] sm:$0xff] }
  0x3d   :  { %3554 = vmatmul.mubr.msk.f32.gmra.mrb[8].mxu0 %vm123_vm0, %v96_v28  ;;  %3887 = vmatmul.mubr.msk.f32.gmra.mrb[8].mxu1 %vm123_vm0, %v97_v30  ;;  %v5893_v28 = vpack.c.bf16 %v720_v23, %v717_v20  ;;  %v730_v36 = vld [vmem:[#allocation4 + $0x158] sm:$0xff]  ;;  %v733_v37 = vld [vmem:[#allocation4 + $0x170] sm:$0xff]  ;;  %v5907_v41 = vpack.c.bf16 %v728_v35, %v725_v34  ;;  %v732_v45 = vld [vmem:[#allocation4 + $0x168] sm:$0xff] }
  0x3e   :  { %242 = vmatprep.mubr.f32.mxu0 %v6749_v0  ;;  %3889 = vmatprep.mubr.msk.f32.mxu1 %vm123_vm0, %v98_v13  ;;  %v713_v13 = vld [vmem:[#allocation4 + $0xd0] sm:$0xff]  ;;  %6783 = vst [vmem:[#allocation17_spill] sm:$0xff] %v5899_v32  ;;  %v5911_v44 = vpack.c.bf16 %v733_v37, %v730_v36  ;;  %v731_v46 = vld [vmem:[#allocation4 + $0x160] sm:$0xff]  ;;  %v734_v47 = vld [vmem:[#allocation4 + $0x178] sm:$0xff] }
  0x3f   :  { %v5882_v19 = vpack.c.bf16 %v716_v14, %v713_v13  ;;  %6781 = vst [vmem:[#allocation15_spill] sm:$0xff] %v5893_v28  ;;  %6785 = vst [vmem:[#allocation19_spill] sm:$0xff] %v5907_v41  ;;  %v729_v43 = vld [vmem:[#allocation4 + $0x150] sm:$0xff]  ;;  %v739_v51 = vld [vmem:[#allocation7 + $0x20] sm:$0xff]  ;;  %v5919_v54 = vpack.c.bf16 %v734_v47, %v731_v46 }
  0x40   :  { %6786 = vst [vmem:[#allocation20_spill] sm:$0xff] %v5911_v44  ;;  %v5917_v53 = vpack.c.bf16 %v732_v45, %v729_v43  ;;  %v735_v55 = vld [vmem:[#allocation7] sm:$0xff]  ;;  %v738_v57 = vld [vmem:[#allocation7 + $0x18] sm:$0xff]  ;;  %v740_v61 = vld [vmem:[#allocation7 + $0x28] sm:$0xff] }
  0x41   :  { %3555 = vmatmul.mubr.msk.f32.gmra.mrb[10].mxu0 %vm123_vm0, %v97_v30  ;;  %3890 = vmatmul.mubr.msk.f32.gmra.mrb[10].mxu1 %vm123_vm0, %v99_v21  ;;  %6779 = vst [vmem:[#allocation13_spill] sm:$0xff] %v5882_v19  ;;  %v5886_v21 = vpack.c.bf16 %v721_v17, %v718_v16  ;;  %v5895_v30 = vpack.c.bf16 %v722_v25, %v719_v24  ;;  %6788 = vst [vmem:[#allocation22_spill] sm:$0xff] %v5919_v54  ;;  %v742_v62 = vld [vmem:[#allocation7 + $0x38] sm:$0xff]  ;;  %v745_v1 = vld [vmem:[#allocation7 + $0x50] sm:$0xff] }
  0x42   :  { %509 = vmatprep.mubr.f32.mxu1 %v6749_v0  ;;  %3896 = vmatprep.mubr.msk.f32.mxu0 %vm123_vm0, %v390_v31  ;;  %6787 = vst [vmem:[#allocation21_spill] sm:$0xff] %v5917_v53  ;;  %v5930_v2 = vpack.c.bf16 %v738_v57, %v735_v55  ;;  %v5937_v5 = vpack.c.bf16 %v745_v1, %v742_v62  ;;  %v743_v9 = vld [vmem:[#allocation7 + $0x40] sm:$0xff]  ;;  %v746_v10 = vld [vmem:[#allocation7 + $0x58] sm:$0xff]  ;;  %v749_v23 = vld [vmem:[#allocation7 + $0x70] sm:$0xff] }
  0x43   :  { %6780 = vst [vmem:[#allocation14_spill] sm:$0xff] %v5886_v21  ;;  %6782 = vst [vmem:[#allocation16_spill] sm:$0xff] %v5895_v30  ;;  %v751_v13 = vld [vmem:[#allocation7 + $0x80] sm:$0xff]  ;;  %v5946_v16 = vpack.c.bf16 %v746_v10, %v743_v9  ;;  %v750_v20 = vld [vmem:[#allocation7 + $0x78] sm:$0xff] }
  0x44   :  { %v752_v24 = vld [vmem:[#allocation7 + $0x88] sm:$0xff]  ;;  %v754_v25 = vld [vmem:[#allocation7 + $0x98] sm:$0xff]  ;;  %v757_v26 = vld [vmem:[#allocation7 + $0xb0] sm:$0xff] }
  0x45   :  { %3566 = vmatmul.mubr.msk.f32.vlgmr.msra.gmra.mrb[12].mxu1 %vm123_vm0, %v390_v31  ;;  %3897 = vmatmul.mubr.msk.f32.vlgmr.msra.gmra.mrb[12].mxu0 %vm123_vm0, %v391_v38  ;;  %v723_v31 = vld [vmem:[#allocation4 + $0x120] sm:$0xff]  ;;  %v5962_v34 = vpack.c.bf16 %v757_v26, %v754_v25  ;;  %v756_v35 = vld [vmem:[#allocation7 + $0xa8] sm:$0xff]  ;;  %v758_v37 = vld [vmem:[#allocation7 + $0xb8] sm:$0xff] }
  0x46   :  { %4487 = vmatpush1.bf16.msra.mxu0 %v5807_v39  ;;  %4518 = vmatpush3.bf16.msra.mxu1 %v5809_v40  ;;  %v755_v36 = vld [vmem:[#allocation7 + $0xa0] sm:$0xff]  ;;  %v760_v43 = vld [vmem:[#allocation7 + $0xc8] sm:$0xff]  ;;  %v762_v55 = vld [vmem:[#allocation7 + $0xd8] sm:$0xff] }
  0x47   :  { %515 = vmatprep.mubr.f32.mxu1 %v6749_v0  ;;  %4489 = vmatprep.subr.bf16.mxu0 %v5811_v42  ;;  %v763_v45 = vld [vmem:[#allocation7 + $0xe0] sm:$0xff]  ;;  %v761_v57 = vld [vmem:[#allocation7 + $0xd0] sm:$0xff]  ;;  %v768_v10 = vld [vmem:[#allocation7 + $0x108] sm:$0xff] }
  0x48   :  { %4519 = vmatprep.subr.bf16.mxu1 %v6751_v29  ;;  %3899 = vmatprep.mubr.msk.f32.mxu0 %vm123_vm0, %v392_v50  ;;  %v759_v47 = vld [vmem:[#allocation7 + $0xc0] sm:$0xff]  ;;  %v769_v62 = vld [vmem:[#allocation7 + $0x110] sm:$0xff] }
  0x49   :  { %3567 = vmatmul.mubr.msk.f32.gmra.mrb[14].mxu1 %vm123_vm0, %v391_v38  ;;  %3900 = vmatmul.mubr.msk.f32.gmra.mrb[14].mxu0 %vm123_vm0, %v393_v58  ;;  %v5905_v38 = vpack.c.bf16 %v726_v33, %v723_v31  ;;  %v753_v31 = vld [vmem:[#allocation7 + $0x90] sm:$0xff]  ;;  %v5959_v33 = vpack.c.bf16 %v752_v24, %v749_v23  ;;  %v5976_v1 = vpack.c.bf16 %v762_v55, %v759_v47  ;;  %v771_v24 = vld [vmem:[#allocation7 + $0x120] sm:$0xff] }
  0x4a   :  { %4491 = vmatpush1.bf16.msra.mxu0 %v5817_v48  ;;  %4521 = vmatpush3.bf16.msra.mxu1 %v5819_v49  ;;  %v5966_v46 = vpack.c.bf16 %v756_v35, %v753_v31  ;;  %v774_v31 = vld [vmem:[#allocation7 + $0x138] sm:$0xff]  ;;  %v773_v35 = vld [vmem:[#allocation7 + $0x130] sm:$0xff] }
  0x4b   :  { %521 = vmatprep.mubr.f32.mxu1 %v6749_v0  ;;  %4493 = vmatprep.subr.bf16.mxu0 %v5826_v52  ;;  %6784 = vst [vmem:[#allocation18_spill] sm:$0xff] %v5905_v38  ;;  %v777_v47 = vld [vmem:[#allocation7 + $0x150] sm:$0xff] }
  0x4c   :  { %4522 = vmatprep.subr.bf16.mxu1 %v6751_v29  ;;  %3902 = vmatprep.mubr.msk.f32.mxu0 %vm123_vm0, %v394_v3 }
  0x4d   :  { %3568 = vmatmul.mubr.msk.f32.gmra.mrb[16].mxu1 %vm123_vm0, %v392_v50  ;;  %3903 = vmatmul.mubr.msk.f32.gmra.mrb[16].mxu0 %vm123_vm0, %v395_v6  ;;  %v736_v50 = vld [vmem:[#allocation7 + $0x8] sm:$0xff] }
  0x4e   :  { %4495 = vmatpush1.bf16.msra.mxu0 %v5837_v59  ;;  %4524 = vmatpush3.bf16.msra.mxu1 %v5839_v60  ;;  %v5923_v56 = vpack.c.bf16 %v739_v51, %v736_v50  ;;  %v5969_v50 = vpack.c.bf16 %v758_v37, %v755_v36  ;;  %v5972_v51 = vpack.c.bf16 %v763_v45, %v760_v43  ;;  %v776_v36 = vld [vmem:[#allocation7 + $0x148] sm:$0xff]  ;;  %v778_v37 = vld [vmem:[#allocation7 + $0x158] sm:$0xff]  ;;  %v781_v43 = vld [vmem:[#allocation7 + $0x170] sm:$0xff] }
  0x4f   :  { %527 = vmatprep.mubr.f32.mxu1 %v6749_v0  ;;  %4497 = vmatprep.subr.bf16.mxu0 %v5843_v63  ;;  %v5996_v45 = vpack.c.bf16 %v774_v31, %v771_v24  ;;  %v5999_v55 = vpack.c.bf16 %v776_v36, %v773_v35  ;;  %v106_v31 = vld [vmem:[%s6742_s4] sm:$0x7] }
  0x50   :  { %4525 = vmatprep.subr.bf16.mxu1 %v6751_v29  ;;  %3905 = vmatprep.mubr.msk.f32.mxu0 %vm123_vm0, %v396_v15  ;;  %6789 = vst [vmem:[#allocation23_spill] sm:$0xff] %v5923_v56 }
  0x51   :  { %3569 = vmatmul.mubr.msk.f32.gmra.mrb[18].mxu1 %vm123_vm0, %v393_v58  ;;  %3906 = vmatmul.mubr.msk.f32.gmra.mrb[18].mxu0 %vm123_vm0, %v5864_v11  ;;  %v737_v58 = vld [vmem:[#allocation7 + $0x10] sm:$0xff] }
  0x52   :  { %4499 = vmatpush1.bf16.msra.mxu0 %v5857_v7  ;;  %4527 = vmatpush3.bf16.msra.mxu1 %v5859_v8  ;;  %v5932_v4 = vpack.c.bf16 %v740_v61, %v737_v58  ;;  %v764_v58 = vld [vmem:[#allocation7 + $0xe8] sm:$0xff]  ;;  %v766_v61 = vld [vmem:[#allocation7 + $0xf8] sm:$0xff] }
  0x53   :  { %533 = vmatprep.mubr.f32.mxu1 %v6749_v0  ;;  %4501 = vmatprep.subr.bf16.mxu0 %v5868_v12  ;;  %v5982_v9 = vpack.c.bf16 %v769_v62, %v766_v61  ;;  %v779_v61 = vld [vmem:[#allocation7 + $0x160] sm:$0xff]  ;;  %v782_v62 = vld [vmem:[#allocation7 + $0x178] sm:$0xff] }
  0x54   :  { %4528 = vmatprep.subr.bf16.mxu1 %v6751_v29  ;;  %863 = vmatprep.mubr.f32.mxu0 %v6749_v0 }
  0x55   :  { %3570 = vmatmul.mubr.msk.f32.gmra.mrb[20].mxu1 %vm123_vm0, %v394_v3  ;;  %v741_v3 = vld [vmem:[#allocation7 + $0x30] sm:$0xff] }
  0x56   :  { %4503 = vmatpush1.bf16.msra.mxu0 %v5880_v18  ;;  %4530 = vmatpush3.bf16.msra.mxu1 %v5882_v19 }
  0x57   :  { %539 = vmatprep.mubr.f32.mxu1 %v6749_v0  ;;  %4505 = vmatprep.subr.bf16.mxu0 %v5886_v21 }
  0x58   :  { %4531 = vmatprep.subr.bf16.mxu1 %v6751_v29 }
  0x59   :  { %3571 = vmatmul.mubr.msk.f32.gmra.mrb[22].mxu1 %vm123_vm0, %v395_v6  ;;  %v744_v6 = vld [vmem:[#allocation7 + $0x48] sm:$0xff] }
  0x5a   :  { %4507 = vmatpush1.bf16.msra.mxu0 %v5893_v28  ;;  %4533 = vmatpush3.bf16.msra.mxu1 %v5895_v30  ;;  %v5943_v14 = vpack.c.bf16 %v744_v6, %v741_v3  ;;  %v765_v3 = vld [vmem:[#allocation7 + $0xf0] sm:$0xff]  ;;  %v5979_v6 = vpack.c.bf16 %v764_v58, %v761_v57  ;;  %v6002_v57 = vpack.c.bf16 %v781_v43, %v778_v37  ;;  %v780_v58 = vld [vmem:[#allocation7 + $0x168] sm:$0xff] }
  0x5b   :  { %545 = vmatprep.mubr.f32.mxu1 %v6749_v0  ;;  %4509 = vmatprep.subr.bf16.mxu0 %v5899_v32  ;;  %v5986_v23 = vpack.c.bf16 %v768_v10, %v765_v3  ;;  %v6006_v3 = vpack.c.bf16 %v780_v58, %v777_v47  ;;  %v6009_v10 = vpack.c.bf16 %v782_v62, %v779_v61 }
  0x5c   :  { %4534 = vmatprep.subr.bf16.mxu1 %v6751_v29 }
  0x5d   :  { %3572 = vmatmul.mubr.msk.f32.gmra.mrb[24].mxu1 %vm123_vm0, %v396_v15  ;;  %v747_v15 = vld [vmem:[#allocation7 + $0x60] sm:$0xff] }
  0x5e   :  { %4511 = vmatpush1.bf16.msra.mxu0 %v5905_v38  ;;  %4536 = vmatpush3.bf16.msra.mxu1 %v5907_v41  ;;  %v5956_v27 = vpack.c.bf16 %v750_v20, %v747_v15  ;;  %v772_v15 = vld [vmem:[#allocation7 + $0x128] sm:$0xff]  ;;  %v775_v20 = vld [vmem:[#allocation7 + $0x140] sm:$0xff] }
  0x5f   :  { %551 = vmatprep.mubr.f32.mxu1 %v6749_v0  ;;  %4513 = vmatprep.subr.bf16.mxu0 %v5911_v44  ;;  %v5992_v26 = vpack.c.bf16 %v775_v20, %v772_v15 }
  0x60   :  { %4537 = vmatprep.subr.bf16.mxu1 %v6751_v29 }
  0x61   :  { %3573 = vmatmul.mubr.msk.f32.gmra.mrb[26].mxu1 %vm123_vm0, %v5864_v11  ;;  %v748_v11 = vld [vmem:[#allocation7 + $0x68] sm:$0xff] }
  0x62   :  { %4515 = vmatpush1.bf16.msra.mxu0 %v5917_v53  ;;  %4539 = vmatpush3.bf16.msra.mxu1 %v5919_v54  ;;  %v5949_v17 = vpack.c.bf16 %v751_v13, %v748_v11  ;;  %v767_v11 = vld [vmem:[#allocation7 + $0x100] sm:$0xff]  ;;  %v770_v13 = vld [vmem:[#allocation7 + $0x118] sm:$0xff] }
  0x63   :  { %3940 = vmatprep.mubr.msk.f32.mxu1 %vm5630_vm1, %v6749_v0  ;;  %4541 = vmatprep.subr.bf16.mxu1 %v5923_v56  ;;  %v5989_v25 = vpack.c.bf16 %v770_v13, %v767_v11  ;;  %v108_v11 = vlaneseq }
  0x64   :  { %4572 = vmatprep.subr.bf16.mxu0 %v6751_v29 }
  0x65   :  { %864 = vmatmul.mubr.f32.vlgmr.msra.gmra.mrb[0].mxu0 %v6749_v0  ;;  %3941 = vmatmul.mubr.f32.vlgmr.msra.gmra.mrb[28].mxu1 %v6749_v0  ;;  %v6054_v13 = vshrl.u32 %v108_v11, 7 }
  0x66   :  { %4543 = vmatpush1.bf16.msra.mxu1 %v5930_v2  ;;  %4574 = vmatpush3.bf16.msra.mxu0 %v5932_v4 }
  0x67   :  { %4545 = vmatprep.subr.bf16.mxu1 %v5937_v5  ;;  %4575 = vmatprep.subr.bf16.mxu0 %v6751_v29  ;;  %v118_v24 = vsub.s32 2, %v6054_v13 }
  0x68   :  { %1033 = vmatprep.mubr.f32.mxu1 %v6749_v0  ;;  %3975 = vmatprep.mubr.msk.f32.mxu0 %vm5630_vm1, %v6749_v0 }
  0x69   :  { %v119_v37 = vrot.slane %v106_v31, %v118_v24 }
  0x6a   :  { %4547 = vmatpush1.bf16.msra.mxu1 %v5943_v14  ;;  %4577 = vmatpush3.bf16.msra.mxu0 %v5946_v16 }
  0x6b   :  { %4549 = vmatprep.subr.bf16.mxu1 %v5949_v17  ;;  %4578 = vmatprep.subr.bf16.mxu0 %v6751_v29 }
  0x6e   :  { %4551 = vmatpush1.bf16.msra.mxu1 %v5956_v27  ;;  %4580 = vmatpush3.bf16.msra.mxu0 %v5959_v33 }
  0x6f   :  { %4553 = vmatprep.subr.bf16.mxu1 %v5962_v34  ;;  %4581 = vmatprep.subr.bf16.mxu0 %v6751_v29 }
  0x72   :  { %4555 = vmatpush1.bf16.msra.mxu1 %v5966_v46  ;;  %4583 = vmatpush3.bf16.msra.mxu0 %v5969_v50 }
  0x73   :  { %4557 = vmatprep.subr.bf16.mxu1 %v5972_v51  ;;  %4584 = vmatprep.subr.bf16.mxu0 %v6751_v29 }
  0x76   :  { %4559 = vmatpush1.bf16.msra.mxu1 %v5976_v1  ;;  %4586 = vmatpush3.bf16.msra.mxu0 %v5979_v6 }
  0x77   :  { %4561 = vmatprep.subr.bf16.mxu1 %v5982_v9  ;;  %4587 = vmatprep.subr.bf16.mxu0 %v6751_v29 }
  0x7a   :  { %4563 = vmatpush1.bf16.msra.mxu1 %v5986_v23  ;;  %4589 = vmatpush3.bf16.msra.mxu0 %v5989_v25 }
  0x7b   :  { %4565 = vmatprep.subr.bf16.mxu1 %v5992_v26  ;;  %4590 = vmatprep.subr.bf16.mxu0 %v6751_v29 }
  0x7e   :  { %4567 = vmatpush1.bf16.msra.mxu1 %v5996_v45  ;;  %4592 = vmatpush3.bf16.msra.mxu0 %v5999_v55 }
  0x7f   :  { %4569 = vmatprep.subr.bf16.mxu1 %v6002_v57  ;;  %4593 = vmatprep.subr.bf16.mxu0 %v6751_v29 }
  0x82   :  { %4571 = vmatpush1.bf16.msra.mxu1 %v6006_v3  ;;  %4595 = vmatpush3.bf16.msra.mxu0 %v6009_v10 }
  0x83   :  { %4597 = vmatprep.subr.bf16.mxu0 %v5757_v22  ;;  %4628 = vmatprep.subr.bf16.mxu1 %v6751_v29 }
  0x85   :  { %1034 = vmatmul.mubr.f32.vlgmr.msra.gmra.mrb[26].mxu1 %v6749_v0  ;;  %3976 = vmatmul.mubr.f32.vlgmr.msra.gmra.mrb[20].mxu0 %v6749_v0 }
  0x86   :  { %4599 = vmatpush1.bf16.msra.mxu0 %v5807_v39  ;;  %4630 = vmatpush3.bf16.msra.mxu1 %v5809_v40 }
  0x87   :  { %4601 = vmatprep.subr.bf16.mxu0 %v5811_v42  ;;  %4631 = vmatprep.subr.bf16.mxu1 %v6751_v29 }
  0x88   :  { %1205 = vmatprep.mubr.f32.mxu0 %v6749_v0  ;;  %4010 = vmatprep.mubr.msk.f32.mxu1 %vm5630_vm1, %v6749_v0 }
  0x8a   :  { %4603 = vmatpush1.bf16.msra.mxu0 %v5817_v48  ;;  %4633 = vmatpush3.bf16.msra.mxu1 %v5819_v49 }
  0x8b   :  { %4605 = vmatprep.subr.bf16.mxu0 %v5826_v52  ;;  %4634 = vmatprep.subr.bf16.mxu1 %v6751_v29 }
  0x8e   :  { %4607 = vmatpush1.bf16.msra.mxu0 %v5837_v59  ;;  %4636 = vmatpush3.bf16.msra.mxu1 %v5839_v60 }
  0x8f   :  { %4609 = vmatprep.subr.bf16.mxu0 %v5843_v63  ;;  %4637 = vmatprep.subr.bf16.mxu1 %v6751_v29 }
  0x92   :  { %4611 = vmatpush1.bf16.msra.mxu0 %v5857_v7  ;;  %4639 = vmatpush3.bf16.msra.mxu1 %v5859_v8 }
  0x93   :  { %4613 = vmatprep.subr.bf16.mxu0 %v5868_v12  ;;  %4640 = vmatprep.subr.bf16.mxu1 %v6751_v29 }
  0x96   :  { %4615 = vmatpush1.bf16.msra.mxu0 %v5880_v18  ;;  %4642 = vmatpush3.bf16.msra.mxu1 %v5882_v19 }
  0x97   :  { %4617 = vmatprep.subr.bf16.mxu0 %v5886_v21  ;;  %4643 = vmatprep.subr.bf16.mxu1 %v6751_v29 }
  0x9a   :  { %4619 = vmatpush1.bf16.msra.mxu0 %v5893_v28  ;;  %4645 = vmatpush3.bf16.msra.mxu1 %v5895_v30 }
  0x9b   :  { %4621 = vmatprep.subr.bf16.mxu0 %v5899_v32  ;;  %4646 = vmatprep.subr.bf16.mxu1 %v6751_v29 }
  0x9e   :  { %4623 = vmatpush1.bf16.msra.mxu0 %v5905_v38  ;;  %4648 = vmatpush3.bf16.msra.mxu1 %v5907_v41  ;;  %v6121_v41 = vld [vmem:[%s6746_s8] ss:$0 sm:$0xff] }
  0x9f   :  { %4625 = vmatprep.subr.bf16.mxu0 %v5911_v44  ;;  %4649 = vmatprep.subr.bf16.mxu1 %v6751_v29 }
  0xa2   :  { %4627 = vmatpush1.bf16.msra.mxu0 %v5917_v53  ;;  %4651 = vmatpush3.bf16.msra.mxu1 %v5919_v54 }
  0xa3   :  { %4653 = vmatprep.subr.bf16.mxu1 %v5923_v56  ;;  %4684 = vmatprep.subr.bf16.mxu0 %v6751_v29 }
 0x100   :  { %v6056_v15 = vpop.f32.mrb[0].mxu1 }
 0x101   :  { %6790 = vst [vmem:[#allocation24_spill] sm:$0xff] %v6056_v15  ;;  %v6058_v20 = vpop.f32.mrb[1].mxu1 }
 0x102   :  { %6791 = vst [vmem:[#allocation25_spill] sm:$0xff] %v6058_v20 }
 0x104   :  { %v6064_v35 = vpop.f32.mrb[2].mxu1 }
 0x105   :  { %6792 = vst [vmem:[#allocation26_spill] sm:$0xff] %v6064_v35  ;;  %v6066_v36 = vpop.f32.mrb[3].mxu1 }
 0x106   :  { %6793 = vst [vmem:[#allocation27_spill] sm:$0xff] %v6066_v36  ;;  %v404_v36 = vld [vmem:[%s6743_s5] sm:$0x7] }
 0x107   :  { %v6083_v54 = vrot.slane %v404_v36, %v118_v24 }
 0x108   :  { %v3882_v43 = vpop.f32.mrb[4].mxu1 }
 0x109   :  { %v6068_v47 = vadd.f32 %v3882_v43, %v119_v37  ;;  %v327_v58 = vpop.f32.mrb[5].mxu1 }
 0x10b   :  { %6794 = vst [vmem:[#allocation28_spill] sm:$0xff] %v6068_v47 }
 0x10c   :  { %v3885_v61 = vpop.f32.mrb[6].mxu1 }
 0x10d   :  { %v6070_v62 = vadd.f32 %v3885_v61, %v119_v37  ;;  %v337_v11 = vpop.f32.mrb[7].mxu1 }
 0x10e   :  { %v6072_v0 = vadd.f32 %v337_v11, %v119_v37 }
 0x10f   :  { %6795 = vst [vmem:[#allocation29_spill] sm:$0xff] %v6070_v62 }
 0x110   :  { %6796 = vst [vmem:[#allocation30_spill] sm:$0xff] %v6072_v0  ;;  %v3888_v29 = vpop.f32.mrb[8].mxu1 }
 0x111   :  { %v6074_v20 = vadd.f32 %v3888_v29, %v119_v37  ;;  %v347_v15 = vpop.f32.mrb[9].mxu1 }
 0x112   :  { %v6076_v56 = vadd.f32 %v347_v15, %v119_v37 }
 0x113   :  { %6797 = vst [vmem:[#allocation31_spill] sm:$0xff] %v6074_v20 }
 0x114   :  { %6798 = vst [vmem:[#allocation32_spill] sm:$0xff] %v6076_v56  ;;  %v3891_v35 = vpop.f32.mrb[10].mxu1 }
 0x115   :  { %v6081_v43 = vadd.f32 %v3891_v35, %v119_v37  ;;  %v357_v47 = vpop.f32.mrb[11].mxu1 }
 0x116   :  { %v6085_v61 = vadd.f32 %v357_v47, %v119_v37 }
 0x117   :  { %6799 = vst [vmem:[#allocation33_spill] sm:$0xff] %v6081_v43 }
 0x118   :  { %6800 = vst [vmem:[#allocation34_spill] sm:$0xff] %v6085_v61  ;;  %v3898_v11 = vpop.f32.mrb[12].mxu0 }
 0x119   :  { %v6088_v62 = vadd.f32 %v3898_v11, %v6083_v54  ;;  %v624_v29 = vpop.f32.mrb[13].mxu0 }
 0x11a   :  { %v6091_v15 = vadd.f32 %v624_v29, %v6083_v54 }
 0x11b   :  { %6801 = vst [vmem:[#allocation35_spill] sm:$0xff] %v6088_v62 }
 0x11c   :  { %6802 = vst [vmem:[#allocation36_spill] sm:$0xff] %v6091_v15  ;;  %v3901_v20 = vpop.f32.mrb[14].mxu0 }
 0x11d   :  { %v6094_v56 = vadd.f32 %v3901_v20, %v6083_v54  ;;  %v634_v0 = vpop.f32.mrb[15].mxu0  ;;  %v110_v20 = vsub.s32 0, %v6054_v13 }
 0x11e   :  { %v6097_v35 = vadd.f32 %v634_v0, %v6083_v54 }
 0x11f   :  { %6803 = vst [vmem:[#allocation37_spill] sm:$0xff] %v6094_v56  ;;  %v6111_v61 = vrot.slane %v106_v31, %v110_v20 }
 0x120   :  { %6804 = vst [vmem:[#allocation38_spill] sm:$0xff] %v6097_v35  ;;  %v3904_v24 = vpop.f32.mrb[16].mxu0 }
 0x121   :  { %v6100_v47 = vadd.f32 %v3904_v24, %v6083_v54  ;;  %v644_v43 = vpop.f32.mrb[17].mxu0  ;;  %6808 = vst [vmem:[#allocation42_spill] sm:$0xff] %v6111_v61 }
 0x122   :  { %v6103_v11 = vadd.f32 %v644_v43, %v6083_v54  ;;  %v114_v43 = vsub.s32 1, %v6054_v13 }
 0x123   :  { %6805 = vst [vmem:[#allocation39_spill] sm:$0xff] %v6100_v47 }
 0x124   :  { %6806 = vst [vmem:[#allocation40_spill] sm:$0xff] %v6103_v11  ;;  %v6105_v62 = vpop.f32.mrb[18].mxu0  ;;  %v6115_v11 = vrot.slane %v106_v31, %v114_v43  ;;  %v6124_v31 = vrot.slane %v404_v36, %v110_v20 }
 0x125   :  { %v654_v29 = vpop.f32.mrb[19].mxu0 }
 0x126   :  { %v6108_v15 = vadd.f32 %v654_v29, %v6083_v54  ;;  %6809 = vst [vmem:[#allocation43_spill] sm:$0xff] %v6115_v11 }
 0x128   :  { %6807 = vst [vmem:[#allocation41_spill] sm:$0xff] %v6108_v15 }
 0x138   :  { %v865_v0 = vpop.f32.mrb[0].mxu0  ;;  %v936_v35 = vpop.f32.mrb[28].mxu1 }
 0x139   :  { %v5382_v56 = vadd.f32 %v865_v0, %v6111_v61  ;;  %v867_v24 = vpop.f32.mrb[1].mxu0  ;;  %v3942_v47 = vpop.f32.mrb[29].mxu1 }
 0x13a   :  { %v5383_v44 = vadd.f32 %v867_v24, %v6115_v11  ;;  %v956_v47 = vadd.f32 %v6121_v41, %v936_v35 }
 0x13b   :  { %v947_v53 = vmul.f32 0.5, %v5382_v56  ;;  %v328_v56 = vadd.f32 %v327_v58, %v119_v37  ;;  %v6127_v37 = vrot.slane %v404_v36, %v114_v43 }
 0x13c   :  { %v952_v29 = vmul.f32 0.5, %v5383_v44 }
 0x13d   :  { %5454 = vtanh.f32 %v947_v53 }
 0x13e   :  { %5456 = vtanh.f32 %v952_v29 }
 0x147   :  { %v5455_v15 = vpop.eup %5454 }
 0x148   :  { %v949_v38 = vadd.f32 1.0, %v5455_v15  ;;  %v5457_v53 = vpop.eup %5456 }
 0x149   :  { %v954_v24 = vadd.f32 1.0, %v5457_v53 }
 0x14a   :  { %v950_v0 = vmul.f32 0.5, %v949_v38 }
 0x14b   :  { %v955_v15 = vmul.f32 0.5, %v954_v24 }
 0x14c   :  { %v957_v61 = vmul.f32 %v956_v47, %v950_v0  ;;  %v660_v47 = vadd.f32 %v6105_v62, %v6083_v54 }
 0x14e   :  { %v958_v13 = vadd.f32 %v957_v61, %v328_v56 }
 0x150   :  { %5458 = vtanh.f32 %v958_v13 }
 0x158   :  { %v1035_v44 = vpop.f32.mrb[26].mxu1  ;;  %v1106_v11 = vpop.f32.mrb[20].mxu0 }
 0x159   :  { %v5416_v32 = vadd.f32 %v1035_v44, %v6124_v31  ;;  %v1037_v30 = vpop.f32.mrb[27].mxu1  ;;  %v3977_v28 = vpop.f32.mrb[21].mxu0 }
 0x15a   :  { %v5459_v21 = vpop.eup %5458  ;;  %v5417_v61 = vadd.f32 %v1037_v30, %v6127_v37  ;;  %v6810_v28 = vmov 0.0|0.0  }
 0x15b   :  { %v1117_v29 = vmul.f32 0.5, %v5416_v32  ;;  %v960_v38 = vsub.f32 0.0, %v5459_v21  ;;  %v6811_v32 = vmov 0.0  }
 0x15c   :  { %v1122_v36 = vmul.f32 0.5, %v5417_v61  ;;  %v6815_v61 = vld [vmem:[#allocation17_spill] sm:$0xff] }
 0x15d   :  { %5460 = vtanh.f32 %v1117_v29  ;;  %v961_v35 = vmul.f32 %v960_v38, %v955_v15  ;;  %v6812_v29 = vld [vmem:[#allocation14_spill] sm:$0xff]  ;;  %v6813_v38 = vld [vmem:[#allocation15_spill] sm:$0xff] }
 0x15e   :  { %5462 = vtanh.f32 %v1122_v36  ;;  %v6816_v36 = vld [vmem:[#allocation18_spill] sm:$0xff] }
 0x15f   :  { %v6129_v58 = vadd.f32 %v5459_v21, %v961_v35  ;;  %v6144_v21 = vld [vmem:[%s6747_s9] ss:$0 sm:$0xff]  ;;  %v6814_v35 = vld [vmem:[#allocation16_spill] sm:$0xff] }
 0x160   :  { %v1126_v43 = vadd.f32 %v6144_v21, %v1106_v11 }
 0x161   :  { %1206 = vmatmul.mubr.f32.vlgmr.msra.gmra.mrb[2].mxu0 %v6129_v58  ;;  %4011 = vmatmul.mubr.f32.vlgmr.msra.gmra.mrb[30].mxu1 %v6129_v58 }
 0x162   :  { %4655 = vmatpush1.bf16.msra.mxu1 %v5930_v2  ;;  %4686 = vmatpush3.bf16.msra.mxu0 %v5932_v4 }
 0x163   :  { %4657 = vmatprep.subr.bf16.mxu1 %v5937_v5  ;;  %4687 = vmatprep.subr.bf16.mxu0 %v6810_v28 }
 0x164   :  { %1375 = vmatprep.mubr.f32.mxu1 %v6811_v32  ;;  %4045 = vmatprep.mubr.msk.f32.mxu0 %vm5630_vm1, %v6811_v32 }
 0x166   :  { %4659 = vmatpush1.bf16.msra.mxu1 %v5943_v14  ;;  %4689 = vmatpush3.bf16.msra.mxu0 %v5946_v16 }
 0x167   :  { %v5461_v30 = vpop.eup %5460  ;;  %4661 = vmatprep.subr.bf16.mxu1 %v5949_v17  ;;  %4690 = vmatprep.subr.bf16.mxu0 %v6810_v28 }
 0x168   :  { %v1119_v20 = vadd.f32 1.0, %v5461_v30  ;;  %v5463_v54 = vpop.eup %5462  ;;  %v6817_v30 = vld [vmem:[#allocation19_spill] sm:$0xff] }
 0x169   :  { %v1124_v62 = vadd.f32 1.0, %v5463_v54  ;;  %v6822_v54 = vld [vmem:[#allocation42_spill] sm:$0xff] }
 0x16a   :  { %v1120_v0 = vmul.f32 0.5, %v1119_v20  ;;  %4663 = vmatpush1.bf16.msra.mxu1 %v5956_v27  ;;  %4692 = vmatpush3.bf16.msra.mxu0 %v5959_v33  ;;  %v6818_v20 = vld [vmem:[#allocation20_spill] sm:$0xff] }
 0x16b   :  { %4665 = vmatprep.subr.bf16.mxu1 %v5962_v34  ;;  %4693 = vmatprep.subr.bf16.mxu0 %v6810_v28  ;;  %v1125_v53 = vmul.f32 0.5, %v1124_v62 }
 0x16c   :  { %v1127_v56 = vmul.f32 %v1126_v43, %v1120_v0  ;;  %v6819_v43 = vld [vmem:[#allocation21_spill] sm:$0xff]  ;;  %v6820_v0 = vld [vmem:[#allocation22_spill] sm:$0xff] }
 0x16e   :  { %v1128_v13 = vadd.f32 %v1127_v56, %v660_v47  ;;  %4667 = vmatpush1.bf16.msra.mxu1 %v5966_v46  ;;  %4695 = vmatpush3.bf16.msra.mxu0 %v5969_v50  ;;  %v6821_v47 = vld [vmem:[#allocation23_spill] sm:$0xff] }
 0x16f   :  { %4669 = vmatprep.subr.bf16.mxu1 %v5972_v51  ;;  %4696 = vmatprep.subr.bf16.mxu0 %v6810_v28 }
 0x170   :  { %5464 = vtanh.f32 %v1128_v13 }
 0x172   :  { %4671 = vmatpush1.bf16.msra.mxu1 %v5976_v1  ;;  %4698 = vmatpush3.bf16.msra.mxu0 %v5979_v6 }
 0x173   :  { %4673 = vmatprep.subr.bf16.mxu1 %v5982_v9  ;;  %4699 = vmatprep.subr.bf16.mxu0 %v6810_v28 }
 0x176   :  { %4675 = vmatpush1.bf16.msra.mxu1 %v5986_v23  ;;  %4701 = vmatpush3.bf16.msra.mxu0 %v5989_v25 }
 0x177   :  { %4677 = vmatprep.subr.bf16.mxu1 %v5992_v26  ;;  %4702 = vmatprep.subr.bf16.mxu0 %v6810_v28 }
 0x17a   :  { %v5465_v11 = vpop.eup %5464  ;;  %4679 = vmatpush1.bf16.msra.mxu1 %v5996_v45  ;;  %4704 = vmatpush3.bf16.msra.mxu0 %v5999_v55 }
 0x17b   :  { %4681 = vmatprep.subr.bf16.mxu1 %v6002_v57  ;;  %4705 = vmatprep.subr.bf16.mxu0 %v6810_v28  ;;  %v1130_v24 = vsub.f32 0.0, %v5465_v11 }
 0x17d   :  { %v1131_v44 = vmul.f32 %v1130_v24, %v1125_v53 }
 0x17e   :  { %4683 = vmatpush1.bf16.msra.mxu1 %v6006_v3  ;;  %4707 = vmatpush3.bf16.msra.mxu0 %v6009_v10 }
 0x17f   :  { %v6175_v15 = vadd.f32 %v5465_v11, %v1131_v44  ;;  %4709 = vmatprep.subr.bf16.mxu0 %v5757_v22  ;;  %4740 = vmatprep.subr.bf16.mxu1 %v6810_v28  ;;  %v6823_v44 = vld [vmem:[#allocation43_spill] sm:$0xff] }
 0x181   :  { %1376 = vmatmul.mubr.f32.vlgmr.msra.gmra.mrb[24].mxu1 %v6175_v15  ;;  %4046 = vmatmul.mubr.f32.vlgmr.msra.gmra.mrb[22].mxu0 %v6175_v15 }
 0x182   :  { %4711 = vmatpush1.bf16.msra.mxu0 %v5807_v39  ;;  %4742 = vmatpush3.bf16.msra.mxu1 %v5809_v40 }
 0x183   :  { %4713 = vmatprep.subr.bf16.mxu0 %v5811_v42  ;;  %4743 = vmatprep.subr.bf16.mxu1 %v6810_v28 }
 0x184   :  { %1545 = vmatprep.mubr.f32.mxu0 %v6811_v32  ;;  %4080 = vmatprep.mubr.msk.f32.mxu1 %vm5630_vm1, %v6811_v32 }
 0x186   :  { %4715 = vmatpush1.bf16.msra.mxu0 %v5817_v48  ;;  %4745 = vmatpush3.bf16.msra.mxu1 %v5819_v49 }
 0x187   :  { %4717 = vmatprep.subr.bf16.mxu0 %v5826_v52  ;;  %4746 = vmatprep.subr.bf16.mxu1 %v6810_v28 }
 0x18a   :  { %4719 = vmatpush1.bf16.msra.mxu0 %v5837_v59  ;;  %4748 = vmatpush3.bf16.msra.mxu1 %v5839_v60 }
 0x18b   :  { %4721 = vmatprep.subr.bf16.mxu0 %v5843_v63  ;;  %4749 = vmatprep.subr.bf16.mxu1 %v6810_v28 }
 0x18e   :  { %4723 = vmatpush1.bf16.msra.mxu0 %v5857_v7  ;;  %4751 = vmatpush3.bf16.msra.mxu1 %v5859_v8 }
 0x18f   :  { %4725 = vmatprep.subr.bf16.mxu0 %v5868_v12  ;;  %4752 = vmatprep.subr.bf16.mxu1 %v6810_v28 }
 0x192   :  { %4727 = vmatpush1.bf16.msra.mxu0 %v5880_v18  ;;  %4754 = vmatpush3.bf16.msra.mxu1 %v5882_v19 }
 0x193   :  { %4729 = vmatprep.subr.bf16.mxu0 %v6812_v29  ;;  %4755 = vmatprep.subr.bf16.mxu1 %v6810_v28 }
 0x196   :  { %4731 = vmatpush1.bf16.msra.mxu0 %v6813_v38  ;;  %4757 = vmatpush3.bf16.msra.mxu1 %v6814_v35  ;;  %v6824_v35 = vld [vmem:[#allocation28_spill] sm:$0xff] }
 0x197   :  { %4733 = vmatprep.subr.bf16.mxu0 %v6815_v61  ;;  %4758 = vmatprep.subr.bf16.mxu1 %v6810_v28 }
 0x19a   :  { %4735 = vmatpush1.bf16.msra.mxu0 %v6816_v36  ;;  %4760 = vmatpush3.bf16.msra.mxu1 %v6817_v30 }
 0x19b   :  { %4737 = vmatprep.subr.bf16.mxu0 %v6818_v20  ;;  %4761 = vmatprep.subr.bf16.mxu1 %v6810_v28 }
 0x19e   :  { %4739 = vmatpush1.bf16.msra.mxu0 %v6819_v43  ;;  %4763 = vmatpush3.bf16.msra.mxu1 %v6820_v0 }
 0x19f   :  { %4765 = vmatprep.subr.bf16.mxu1 %v6821_v47  ;;  %4796 = vmatprep.subr.bf16.mxu0 %v6810_v28 }
 0x234   :  { %v1207_v56 = vpop.f32.mrb[2].mxu0  ;;  %v1278_v13 = vpop.f32.mrb[30].mxu1 }
 0x235   :  { %v5384_v62 = vadd.f32 %v1207_v56, %v6822_v54  ;;  %v1209_v11 = vpop.f32.mrb[3].mxu0  ;;  %v4012_v53 = vpop.f32.mrb[31].mxu1  ;;  %v1298_v0 = vadd.f32 %v6121_v41, %v1278_v13 }
 0x236   :  { %v5385_v20 = vadd.f32 %v1209_v11, %v6823_v44 }
 0x237   :  { %v1289_v24 = vmul.f32 0.5, %v5384_v62 }
 0x238   :  { %v1294_v30 = vmul.f32 0.5, %v5385_v20 }
 0x239   :  { %5466 = vtanh.f32 %v1289_v24 }
 0x23a   :  { %5468 = vtanh.f32 %v1294_v30 }
 0x243   :  { %v5467_v36 = vpop.eup %5466 }
 0x244   :  { %v1291_v61 = vadd.f32 1.0, %v5467_v36  ;;  %v5469_v29 = vpop.eup %5468 }
 0x245   :  { %v1296_v19 = vadd.f32 1.0, %v5469_v29 }
 0x246   :  { %v1292_v43 = vmul.f32 0.5, %v1291_v61 }
 0x247   :  { %v1297_v20 = vmul.f32 0.5, %v1296_v19 }
 0x248   :  { %v1299_v47 = vmul.f32 %v1298_v0, %v1292_v43 }
 0x24a   :  { %v1300_v38 = vadd.f32 %v1299_v47, %v6824_v35  ;;  %v6825_v47 = vld [vmem:[#allocation41_spill] sm:$0xff] }
 0x24c   :  { %5470 = vtanh.f32 %v1300_v38 }
 0x254   :  { %v1377_v56 = vpop.f32.mrb[24].mxu1  ;;  %v1448_v54 = vpop.f32.mrb[22].mxu0 }
 0x255   :  { %v5414_v62 = vadd.f32 %v1377_v56, %v6124_v31  ;;  %v1379_v53 = vpop.f32.mrb[25].mxu1  ;;  %v4047_v24 = vpop.f32.mrb[23].mxu0  ;;  %v1468_v43 = vadd.f32 %v6144_v21, %v1448_v54 }
 0x256   :  { %v5471_v11 = vpop.eup %5470  ;;  %v5415_v29 = vadd.f32 %v1379_v53, %v6127_v37 }
 0x257   :  { %v1302_v36 = vsub.f32 %v6129_v58, %v5471_v11  ;;  %v1459_v61 = vmul.f32 0.5, %v5414_v62 }
 0x258   :  { %v1464_v19 = vmul.f32 0.5, %v5415_v29  ;;  %v6830_v29 = vld [vmem:[#allocation17_spill] sm:$0xff] }
 0x259   :  { %v1303_v44 = vmul.f32 %v1302_v36, %v1297_v20  ;;  %5472 = vtanh.f32 %v1459_v61  ;;  %v6827_v20 = vld [vmem:[#allocation14_spill] sm:$0xff]  ;;  %v6828_v36 = vld [vmem:[#allocation15_spill] sm:$0xff]  ;;  %v6829_v61 = vld [vmem:[#allocation16_spill] sm:$0xff] }
 0x25a   :  { %5474 = vtanh.f32 %v1464_v19  ;;  %v6831_v19 = vld [vmem:[#allocation18_spill] sm:$0xff] }
 0x25b   :  { %v6222_v30 = vadd.f32 %v5471_v11, %v1303_v44 }
 0x25d   :  { %1546 = vmatmul.mubr.f32.vlgmr.msra.gmra.mrb[4].mxu0 %v6222_v30  ;;  %4081 = vmatmul.mubr.f32.vlgmr.msra.gmra.mrb[32].mxu1 %v6222_v30 }
 0x25e   :  { %4767 = vmatpush1.bf16.msra.mxu1 %v5930_v2  ;;  %4798 = vmatpush3.bf16.msra.mxu0 %v5932_v4 }
 0x25f   :  { %4769 = vmatprep.subr.bf16.mxu1 %v5937_v5  ;;  %4799 = vmatprep.subr.bf16.mxu0 %v6810_v28 }
 0x260   :  { %1715 = vmatprep.mubr.f32.mxu1 %v6811_v32  ;;  %4115 = vmatprep.mubr.msk.f32.mxu0 %vm5630_vm1, %v6811_v32 }
 0x262   :  { %4771 = vmatpush1.bf16.msra.mxu1 %v5943_v14  ;;  %4801 = vmatpush3.bf16.msra.mxu0 %v5946_v16 }
 0x263   :  { %v5473_v58 = vpop.eup %5472  ;;  %4773 = vmatprep.subr.bf16.mxu1 %v5949_v17  ;;  %4802 = vmatprep.subr.bf16.mxu0 %v6810_v28 }
 0x264   :  { %v1461_v38 = vadd.f32 1.0, %v5473_v58  ;;  %v5475_v54 = vpop.eup %5474  ;;  %v6832_v58 = vld [vmem:[#allocation19_spill] sm:$0xff] }
 0x265   :  { %v1466_v44 = vadd.f32 1.0, %v5475_v54  ;;  %v6837_v54 = vld [vmem:[#allocation42_spill] sm:$0xff] }
 0x266   :  { %v1462_v35 = vmul.f32 0.5, %v1461_v38  ;;  %4775 = vmatpush1.bf16.msra.mxu1 %v5956_v27  ;;  %4804 = vmatpush3.bf16.msra.mxu0 %v5959_v33  ;;  %v6833_v38 = vld [vmem:[#allocation20_spill] sm:$0xff] }
 0x267   :  { %4777 = vmatprep.subr.bf16.mxu1 %v5962_v34  ;;  %4805 = vmatprep.subr.bf16.mxu0 %v6810_v28  ;;  %v1467_v62 = vmul.f32 0.5, %v1466_v44 }
 0x268   :  { %v1469_v0 = vmul.f32 %v1468_v43, %v1462_v35  ;;  %v6834_v35 = vld [vmem:[#allocation21_spill] sm:$0xff]  ;;  %v6835_v43 = vld [vmem:[#allocation22_spill] sm:$0xff] }
 0x26a   :  { %v1470_v13 = vadd.f32 %v1469_v0, %v6825_v47  ;;  %4779 = vmatpush1.bf16.msra.mxu1 %v5966_v46  ;;  %4807 = vmatpush3.bf16.msra.mxu0 %v5969_v50  ;;  %v6836_v0 = vld [vmem:[#allocation23_spill] sm:$0xff] }
 0x26b   :  { %4781 = vmatprep.subr.bf16.mxu1 %v5972_v51  ;;  %4808 = vmatprep.subr.bf16.mxu0 %v6810_v28 }
 0x26c   :  { %5476 = vtanh.f32 %v1470_v13 }
 0x26e   :  { %4783 = vmatpush1.bf16.msra.mxu1 %v5976_v1  ;;  %4810 = vmatpush3.bf16.msra.mxu0 %v5979_v6 }
 0x26f   :  { %4785 = vmatprep.subr.bf16.mxu1 %v5982_v9  ;;  %4811 = vmatprep.subr.bf16.mxu0 %v6810_v28 }
 0x272   :  { %4787 = vmatpush1.bf16.msra.mxu1 %v5986_v23  ;;  %4813 = vmatpush3.bf16.msra.mxu0 %v5989_v25 }
 0x273   :  { %4789 = vmatprep.subr.bf16.mxu1 %v5992_v26  ;;  %4814 = vmatprep.subr.bf16.mxu0 %v6810_v28 }
 0x276   :  { %v5477_v56 = vpop.eup %5476  ;;  %4791 = vmatpush1.bf16.msra.mxu1 %v5996_v45  ;;  %4816 = vmatpush3.bf16.msra.mxu0 %v5999_v55 }
 0x277   :  { %v1472_v53 = vsub.f32 %v6175_v15, %v5477_v56  ;;  %4793 = vmatprep.subr.bf16.mxu1 %v6002_v57  ;;  %4817 = vmatprep.subr.bf16.mxu0 %v6810_v28  ;;  %v6826_v15 = vld [vmem:[#allocation13_spill] sm:$0xff] }
 0x279   :  { %v1473_v24 = vmul.f32 %v1472_v53, %v1467_v62 }
 0x27a   :  { %4795 = vmatpush1.bf16.msra.mxu1 %v6006_v3  ;;  %4819 = vmatpush3.bf16.msra.mxu0 %v6009_v10 }
 0x27b   :  { %v6263_v11 = vadd.f32 %v5477_v56, %v1473_v24  ;;  %4821 = vmatprep.subr.bf16.mxu0 %v5757_v22  ;;  %4852 = vmatprep.subr.bf16.mxu1 %v6810_v28  ;;  %v6838_v24 = vld [vmem:[#allocation43_spill] sm:$0xff] }
 0x27d   :  { %1716 = vmatmul.mubr.f32.vlgmr.msra.gmra.mrb[22].mxu1 %v6263_v11  ;;  %4116 = vmatmul.mubr.f32.vlgmr.msra.gmra.mrb[24].mxu0 %v6263_v11 }
 0x27e   :  { %4823 = vmatpush1.bf16.msra.mxu0 %v5807_v39  ;;  %4854 = vmatpush3.bf16.msra.mxu1 %v5809_v40 }
 0x27f   :  { %4825 = vmatprep.subr.bf16.mxu0 %v5811_v42  ;;  %4855 = vmatprep.subr.bf16.mxu1 %v6810_v28 }
 0x280   :  { %1885 = vmatprep.mubr.f32.mxu0 %v6811_v32  ;;  %4150 = vmatprep.mubr.msk.f32.mxu1 %vm5630_vm1, %v6811_v32 }
 0x282   :  { %4827 = vmatpush1.bf16.msra.mxu0 %v5817_v48  ;;  %4857 = vmatpush3.bf16.msra.mxu1 %v5819_v49 }
 0x283   :  { %4829 = vmatprep.subr.bf16.mxu0 %v5826_v52  ;;  %4858 = vmatprep.subr.bf16.mxu1 %v6810_v28 }
 0x286   :  { %4831 = vmatpush1.bf16.msra.mxu0 %v5837_v59  ;;  %4860 = vmatpush3.bf16.msra.mxu1 %v5839_v60 }
 0x287   :  { %4833 = vmatprep.subr.bf16.mxu0 %v5843_v63  ;;  %4861 = vmatprep.subr.bf16.mxu1 %v6810_v28 }
 0x28a   :  { %4835 = vmatpush1.bf16.msra.mxu0 %v5857_v7  ;;  %4863 = vmatpush3.bf16.msra.mxu1 %v5859_v8 }
 0x28b   :  { %4837 = vmatprep.subr.bf16.mxu0 %v5868_v12  ;;  %4864 = vmatprep.subr.bf16.mxu1 %v6810_v28 }
 0x28e   :  { %4839 = vmatpush1.bf16.msra.mxu0 %v5880_v18  ;;  %4866 = vmatpush3.bf16.msra.mxu1 %v6826_v15 }
 0x28f   :  { %4841 = vmatprep.subr.bf16.mxu0 %v6827_v20  ;;  %4867 = vmatprep.subr.bf16.mxu1 %v6810_v28 }
 0x292   :  { %4843 = vmatpush1.bf16.msra.mxu0 %v6828_v36  ;;  %4869 = vmatpush3.bf16.msra.mxu1 %v6829_v61  ;;  %v6839_v61 = vld [vmem:[#allocation30_spill] sm:$0xff] }
 0x293   :  { %4845 = vmatprep.subr.bf16.mxu0 %v6830_v29  ;;  %4870 = vmatprep.subr.bf16.mxu1 %v6810_v28 }
 0x296   :  { %4847 = vmatpush1.bf16.msra.mxu0 %v6831_v19  ;;  %4872 = vmatpush3.bf16.msra.mxu1 %v6832_v58 }
 0x297   :  { %4849 = vmatprep.subr.bf16.mxu0 %v6833_v38  ;;  %4873 = vmatprep.subr.bf16.mxu1 %v6810_v28 }
 0x29a   :  { %4851 = vmatpush1.bf16.msra.mxu0 %v6834_v35  ;;  %4875 = vmatpush3.bf16.msra.mxu1 %v6835_v43 }
 0x29b   :  { %4877 = vmatprep.subr.bf16.mxu1 %v6836_v0  ;;  %4908 = vmatprep.subr.bf16.mxu0 %v6810_v28 }
 0x330   :  { %v1547_v47 = vpop.f32.mrb[4].mxu0  ;;  %v1618_v13 = vpop.f32.mrb[32].mxu1 }
 0x331   :  { %v5386_v44 = vadd.f32 %v1547_v47, %v6837_v54  ;;  %v1549_v56 = vpop.f32.mrb[5].mxu0  ;;  %v4082_v62 = vpop.f32.mrb[33].mxu1  ;;  %v1638_v43 = vadd.f32 %v6121_v41, %v1618_v13 }
 0x332   :  { %v5387_v38 = vadd.f32 %v1549_v56, %v6838_v24 }
 0x333   :  { %v1629_v53 = vmul.f32 0.5, %v5386_v44 }
 0x334   :  { %v1634_v58 = vmul.f32 0.5, %v5387_v38 }
 0x335   :  { %5478 = vtanh.f32 %v1629_v53 }
 0x336   :  { %5480 = vtanh.f32 %v1634_v58 }
 0x33f   :  { %v5479_v19 = vpop.eup %5478 }
 0x340   :  { %v1631_v29 = vadd.f32 1.0, %v5479_v19  ;;  %v5481_v20 = vpop.eup %5480 }
 0x341   :  { %v1636_v15 = vadd.f32 1.0, %v5481_v20 }
 0x342   :  { %v1632_v35 = vmul.f32 0.5, %v1631_v29 }
 0x343   :  { %v1637_v38 = vmul.f32 0.5, %v1636_v15 }
 0x344   :  { %v1639_v0 = vmul.f32 %v1638_v43, %v1632_v35 }
 0x346   :  { %v1640_v36 = vadd.f32 %v1639_v0, %v6839_v61  ;;  %v6840_v0 = vld [vmem:[#allocation39_spill] sm:$0xff] }
 0x348   :  { %5482 = vtanh.f32 %v1640_v36 }
 0x350   :  { %v1717_v47 = vpop.f32.mrb[22].mxu1  ;;  %v1788_v54 = vpop.f32.mrb[24].mxu0 }
 0x351   :  { %v5412_v44 = vadd.f32 %v1717_v47, %v6124_v31  ;;  %v1719_v62 = vpop.f32.mrb[23].mxu1  ;;  %v4117_v53 = vpop.f32.mrb[25].mxu0  ;;  %v1808_v35 = vadd.f32 %v6144_v21, %v1788_v54 }
 0x352   :  { %v5483_v56 = vpop.eup %5482  ;;  %v5413_v20 = vadd.f32 %v1719_v62, %v6127_v37 }
 0x353   :  { %v1642_v19 = vsub.f32 %v6222_v30, %v5483_v56  ;;  %v1799_v29 = vmul.f32 0.5, %v5412_v44 }
 0x354   :  { %v1804_v30 = vmul.f32 0.5, %v5413_v20  ;;  %v6845_v20 = vld [vmem:[#allocation17_spill] sm:$0xff] }
 0x355   :  { %v1643_v24 = vmul.f32 %v1642_v19, %v1637_v38  ;;  %5484 = vtanh.f32 %v1799_v29  ;;  %v6842_v38 = vld [vmem:[#allocation14_spill] sm:$0xff]  ;;  %v6843_v19 = vld [vmem:[#allocation15_spill] sm:$0xff]  ;;  %v6844_v29 = vld [vmem:[#allocation16_spill] sm:$0xff] }
 0x356   :  { %5486 = vtanh.f32 %v1804_v30  ;;  %v6846_v30 = vld [vmem:[#allocation18_spill] sm:$0xff] }
 0x357   :  { %v6310_v58 = vadd.f32 %v5483_v56, %v1643_v24 }
 0x359   :  { %1886 = vmatmul.mubr.f32.vlgmr.msra.gmra.mrb[6].mxu0 %v6310_v58  ;;  %4151 = vmatmul.mubr.f32.vlgmr.msra.gmra.mrb[34].mxu1 %v6310_v58 }
 0x35a   :  { %4879 = vmatpush1.bf16.msra.mxu1 %v5930_v2  ;;  %4910 = vmatpush3.bf16.msra.mxu0 %v5932_v4 }
 0x35b   :  { %4881 = vmatprep.subr.bf16.mxu1 %v5937_v5  ;;  %4911 = vmatprep.subr.bf16.mxu0 %v6810_v28 }
 0x35c   :  { %2055 = vmatprep.mubr.f32.mxu1 %v6811_v32  ;;  %4185 = vmatprep.mubr.msk.f32.mxu0 %vm5630_vm1, %v6811_v32 }
 0x35e   :  { %4883 = vmatpush1.bf16.msra.mxu1 %v5943_v14  ;;  %4913 = vmatpush3.bf16.msra.mxu0 %v5946_v16 }
 0x35f   :  { %v5485_v15 = vpop.eup %5484  ;;  %4885 = vmatprep.subr.bf16.mxu1 %v5949_v17  ;;  %4914 = vmatprep.subr.bf16.mxu0 %v6810_v28 }
 0x360   :  { %v1801_v36 = vadd.f32 1.0, %v5485_v15  ;;  %v5487_v54 = vpop.eup %5486  ;;  %v6847_v15 = vld [vmem:[#allocation19_spill] sm:$0xff] }
 0x361   :  { %v1806_v24 = vadd.f32 1.0, %v5487_v54  ;;  %v6852_v54 = vld [vmem:[#allocation42_spill] sm:$0xff] }
 0x362   :  { %v1802_v61 = vmul.f32 0.5, %v1801_v36  ;;  %4887 = vmatpush1.bf16.msra.mxu1 %v5956_v27  ;;  %4916 = vmatpush3.bf16.msra.mxu0 %v5959_v33  ;;  %v6848_v36 = vld [vmem:[#allocation20_spill] sm:$0xff] }
 0x363   :  { %4889 = vmatprep.subr.bf16.mxu1 %v5962_v34  ;;  %4917 = vmatprep.subr.bf16.mxu0 %v6810_v28  ;;  %v1807_v44 = vmul.f32 0.5, %v1806_v24 }
 0x364   :  { %v1809_v43 = vmul.f32 %v1808_v35, %v1802_v61  ;;  %v6849_v61 = vld [vmem:[#allocation21_spill] sm:$0xff]  ;;  %v6850_v35 = vld [vmem:[#allocation22_spill] sm:$0xff] }
 0x366   :  { %v1810_v13 = vadd.f32 %v1809_v43, %v6840_v0  ;;  %4891 = vmatpush1.bf16.msra.mxu1 %v5966_v46  ;;  %4919 = vmatpush3.bf16.msra.mxu0 %v5969_v50  ;;  %v6851_v43 = vld [vmem:[#allocation23_spill] sm:$0xff] }
 0x367   :  { %4893 = vmatprep.subr.bf16.mxu1 %v5972_v51  ;;  %4920 = vmatprep.subr.bf16.mxu0 %v6810_v28 }
 0x368   :  { %5488 = vtanh.f32 %v1810_v13 }
 0x36a   :  { %4895 = vmatpush1.bf16.msra.mxu1 %v5976_v1  ;;  %4922 = vmatpush3.bf16.msra.mxu0 %v5979_v6 }
 0x36b   :  { %4897 = vmatprep.subr.bf16.mxu1 %v5982_v9  ;;  %4923 = vmatprep.subr.bf16.mxu0 %v6810_v28 }
 0x36e   :  { %4899 = vmatpush1.bf16.msra.mxu1 %v5986_v23  ;;  %4925 = vmatpush3.bf16.msra.mxu0 %v5989_v25 }
 0x36f   :  { %4901 = vmatprep.subr.bf16.mxu1 %v5992_v26  ;;  %4926 = vmatprep.subr.bf16.mxu0 %v6810_v28 }
 0x372   :  { %v5489_v47 = vpop.eup %5488  ;;  %4903 = vmatpush1.bf16.msra.mxu1 %v5996_v45  ;;  %4928 = vmatpush3.bf16.msra.mxu0 %v5999_v55 }
 0x373   :  { %v1812_v62 = vsub.f32 %v6263_v11, %v5489_v47  ;;  %4905 = vmatprep.subr.bf16.mxu1 %v6002_v57  ;;  %4929 = vmatprep.subr.bf16.mxu0 %v6810_v28  ;;  %v6841_v11 = vld [vmem:[#allocation13_spill] sm:$0xff] }
 0x375   :  { %v1813_v53 = vmul.f32 %v1812_v62, %v1807_v44 }
 0x376   :  { %4907 = vmatpush1.bf16.msra.mxu1 %v6006_v3  ;;  %4931 = vmatpush3.bf16.msra.mxu0 %v6009_v10 }
 0x377   :  { %v6351_v56 = vadd.f32 %v5489_v47, %v1813_v53  ;;  %4933 = vmatprep.subr.bf16.mxu0 %v5757_v22  ;;  %4964 = vmatprep.subr.bf16.mxu1 %v6810_v28  ;;  %v6853_v53 = vld [vmem:[#allocation43_spill] sm:$0xff] }
 0x379   :  { %2056 = vmatmul.mubr.f32.vlgmr.msra.gmra.mrb[20].mxu1 %v6351_v56  ;;  %4186 = vmatmul.mubr.f32.vlgmr.msra.gmra.mrb[26].mxu0 %v6351_v56 }
 0x37a   :  { %4935 = vmatpush1.bf16.msra.mxu0 %v5807_v39  ;;  %4966 = vmatpush3.bf16.msra.mxu1 %v5809_v40 }
 0x37b   :  { %4937 = vmatprep.subr.bf16.mxu0 %v5811_v42  ;;  %4967 = vmatprep.subr.bf16.mxu1 %v6810_v28 }
 0x37c   :  { %2225 = vmatprep.mubr.f32.mxu0 %v6811_v32  ;;  %4220 = vmatprep.mubr.msk.f32.mxu1 %vm5630_vm1, %v6811_v32 }
 0x37e   :  { %4939 = vmatpush1.bf16.msra.mxu0 %v5817_v48  ;;  %4969 = vmatpush3.bf16.msra.mxu1 %v5819_v49 }
 0x37f   :  { %4941 = vmatprep.subr.bf16.mxu0 %v5826_v52  ;;  %4970 = vmatprep.subr.bf16.mxu1 %v6810_v28 }
 0x382   :  { %4943 = vmatpush1.bf16.msra.mxu0 %v5837_v59  ;;  %4972 = vmatpush3.bf16.msra.mxu1 %v5839_v60 }
 0x383   :  { %4945 = vmatprep.subr.bf16.mxu0 %v5843_v63  ;;  %4973 = vmatprep.subr.bf16.mxu1 %v6810_v28 }
 0x386   :  { %4947 = vmatpush1.bf16.msra.mxu0 %v5857_v7  ;;  %4975 = vmatpush3.bf16.msra.mxu1 %v5859_v8 }
 0x387   :  { %4949 = vmatprep.subr.bf16.mxu0 %v5868_v12  ;;  %4976 = vmatprep.subr.bf16.mxu1 %v6810_v28 }
 0x38a   :  { %4951 = vmatpush1.bf16.msra.mxu0 %v5880_v18  ;;  %4978 = vmatpush3.bf16.msra.mxu1 %v6841_v11 }
 0x38b   :  { %4953 = vmatprep.subr.bf16.mxu0 %v6842_v38  ;;  %4979 = vmatprep.subr.bf16.mxu1 %v6810_v28 }
 0x38e   :  { %4955 = vmatpush1.bf16.msra.mxu0 %v6843_v19  ;;  %4981 = vmatpush3.bf16.msra.mxu1 %v6844_v29  ;;  %v6854_v29 = vld [vmem:[#allocation29_spill] sm:$0xff] }
 0x38f   :  { %4957 = vmatprep.subr.bf16.mxu0 %v6845_v20  ;;  %4982 = vmatprep.subr.bf16.mxu1 %v6810_v28 }
 0x392   :  { %4959 = vmatpush1.bf16.msra.mxu0 %v6846_v30  ;;  %4984 = vmatpush3.bf16.msra.mxu1 %v6847_v15 }
 0x393   :  { %4961 = vmatprep.subr.bf16.mxu0 %v6848_v36  ;;  %4985 = vmatprep.subr.bf16.mxu1 %v6810_v28 }
 0x396   :  { %4963 = vmatpush1.bf16.msra.mxu0 %v6849_v61  ;;  %4987 = vmatpush3.bf16.msra.mxu1 %v6850_v35 }
 0x397   :  { %4989 = vmatprep.subr.bf16.mxu1 %v6851_v43  ;;  %5020 = vmatprep.subr.bf16.mxu0 %v6810_v28 }
 0x42c   :  { %v1887_v0 = vpop.f32.mrb[6].mxu0  ;;  %v1958_v13 = vpop.f32.mrb[34].mxu1 }
 0x42d   :  { %v5388_v24 = vadd.f32 %v1887_v0, %v6852_v54  ;;  %v1889_v47 = vpop.f32.mrb[7].mxu0  ;;  %v4152_v44 = vpop.f32.mrb[35].mxu1  ;;  %v1978_v35 = vadd.f32 %v6121_v41, %v1958_v13 }
 0x42e   :  { %v5389_v36 = vadd.f32 %v1889_v47, %v6853_v53 }
 0x42f   :  { %v1969_v62 = vmul.f32 0.5, %v5388_v24 }
 0x430   :  { %v1974_v15 = vmul.f32 0.5, %v5389_v36 }
 0x431   :  { %5490 = vtanh.f32 %v1969_v62 }
 0x432   :  { %5492 = vtanh.f32 %v1974_v15 }
 0x43b   :  { %v5491_v30 = vpop.eup %5490 }
 0x43c   :  { %v1971_v20 = vadd.f32 1.0, %v5491_v30  ;;  %v5493_v38 = vpop.eup %5492 }
 0x43d   :  { %v1976_v11 = vadd.f32 1.0, %v5493_v38 }
 0x43e   :  { %v1972_v61 = vmul.f32 0.5, %v1971_v20 }
 0x43f   :  { %v1977_v36 = vmul.f32 0.5, %v1976_v11 }
 0x440   :  { %v1979_v43 = vmul.f32 %v1978_v35, %v1972_v61 }
 0x442   :  { %v1980_v19 = vadd.f32 %v1979_v43, %v6854_v29  ;;  %v6855_v43 = vld [vmem:[#allocation40_spill] sm:$0xff] }
 0x444   :  { %5494 = vtanh.f32 %v1980_v19 }
 0x44c   :  { %v2057_v0 = vpop.f32.mrb[20].mxu1  ;;  %v2128_v54 = vpop.f32.mrb[26].mxu0 }
 0x44d   :  { %v5410_v24 = vadd.f32 %v2057_v0, %v6124_v31  ;;  %v2059_v44 = vpop.f32.mrb[21].mxu1  ;;  %v4187_v62 = vpop.f32.mrb[27].mxu0  ;;  %v2148_v61 = vadd.f32 %v6144_v21, %v2128_v54 }
 0x44e   :  { %v5495_v47 = vpop.eup %5494  ;;  %v5411_v38 = vadd.f32 %v2059_v44, %v6127_v37 }
 0x44f   :  { %v1982_v30 = vsub.f32 %v6310_v58, %v5495_v47  ;;  %v2139_v20 = vmul.f32 0.5, %v5410_v24 }
 0x450   :  { %v2144_v58 = vmul.f32 0.5, %v5411_v38  ;;  %v6860_v38 = vld [vmem:[#allocation17_spill] sm:$0xff] }
 0x451   :  { %v1983_v53 = vmul.f32 %v1982_v30, %v1977_v36  ;;  %5496 = vtanh.f32 %v2139_v20  ;;  %v6857_v36 = vld [vmem:[#allocation14_spill] sm:$0xff]  ;;  %v6858_v30 = vld [vmem:[#allocation15_spill] sm:$0xff]  ;;  %v6859_v20 = vld [vmem:[#allocation16_spill] sm:$0xff] }
 0x452   :  { %5498 = vtanh.f32 %v2144_v58  ;;  %v6861_v58 = vld [vmem:[#allocation18_spill] sm:$0xff] }
 0x453   :  { %v6398_v15 = vadd.f32 %v5495_v47, %v1983_v53 }
 0x455   :  { %2226 = vmatmul.mubr.f32.vlgmr.msra.gmra.mrb[8].mxu0 %v6398_v15  ;;  %4221 = vmatmul.mubr.f32.vlgmr.msra.gmra.mrb[36].mxu1 %v6398_v15 }
 0x456   :  { %4991 = vmatpush1.bf16.msra.mxu1 %v5930_v2  ;;  %5022 = vmatpush3.bf16.msra.mxu0 %v5932_v4 }
 0x457   :  { %4993 = vmatprep.subr.bf16.mxu1 %v5937_v5  ;;  %5023 = vmatprep.subr.bf16.mxu0 %v6810_v28 }
 0x458   :  { %2394 = vmatprep.mubr.f32.mxu1 %v6811_v32  ;;  %4255 = vmatprep.mubr.msk.f32.mxu0 %vm5630_vm1, %v6811_v32 }
 0x45a   :  { %4995 = vmatpush1.bf16.msra.mxu1 %v5943_v14  ;;  %5025 = vmatpush3.bf16.msra.mxu0 %v5946_v16 }
 0x45b   :  { %v5497_v11 = vpop.eup %5496  ;;  %4997 = vmatprep.subr.bf16.mxu1 %v5949_v17  ;;  %5026 = vmatprep.subr.bf16.mxu0 %v6810_v28 }
 0x45c   :  { %v2141_v19 = vadd.f32 1.0, %v5497_v11  ;;  %v5499_v54 = vpop.eup %5498  ;;  %v6862_v11 = vld [vmem:[#allocation19_spill] sm:$0xff] }
 0x45d   :  { %v2146_v53 = vadd.f32 1.0, %v5499_v54  ;;  %v6867_v54 = vld [vmem:[#allocation42_spill] sm:$0xff] }
 0x45e   :  { %v2142_v29 = vmul.f32 0.5, %v2141_v19  ;;  %4999 = vmatpush1.bf16.msra.mxu1 %v5956_v27  ;;  %5028 = vmatpush3.bf16.msra.mxu0 %v5959_v33  ;;  %v6863_v19 = vld [vmem:[#allocation20_spill] sm:$0xff] }
 0x45f   :  { %5001 = vmatprep.subr.bf16.mxu1 %v5962_v34  ;;  %5029 = vmatprep.subr.bf16.mxu0 %v6810_v28  ;;  %v2147_v24 = vmul.f32 0.5, %v2146_v53 }
 0x460   :  { %v2149_v35 = vmul.f32 %v2148_v61, %v2142_v29  ;;  %v6864_v29 = vld [vmem:[#allocation21_spill] sm:$0xff]  ;;  %v6865_v61 = vld [vmem:[#allocation22_spill] sm:$0xff] }
 0x462   :  { %v2150_v13 = vadd.f32 %v2149_v35, %v6855_v43  ;;  %5003 = vmatpush1.bf16.msra.mxu1 %v5966_v46  ;;  %5031 = vmatpush3.bf16.msra.mxu0 %v5969_v50  ;;  %v6866_v35 = vld [vmem:[#allocation23_spill] sm:$0xff] }
 0x463   :  { %5005 = vmatprep.subr.bf16.mxu1 %v5972_v51  ;;  %5032 = vmatprep.subr.bf16.mxu0 %v6810_v28 }
 0x464   :  { %5500 = vtanh.f32 %v2150_v13 }
 0x466   :  { %5007 = vmatpush1.bf16.msra.mxu1 %v5976_v1  ;;  %5034 = vmatpush3.bf16.msra.mxu0 %v5979_v6 }
 0x467   :  { %5009 = vmatprep.subr.bf16.mxu1 %v5982_v9  ;;  %5035 = vmatprep.subr.bf16.mxu0 %v6810_v28 }
 0x46a   :  { %5011 = vmatpush1.bf16.msra.mxu1 %v5986_v23  ;;  %5037 = vmatpush3.bf16.msra.mxu0 %v5989_v25 }
 0x46b   :  { %5013 = vmatprep.subr.bf16.mxu1 %v5992_v26  ;;  %5038 = vmatprep.subr.bf16.mxu0 %v6810_v28 }
 0x46e   :  { %v5501_v0 = vpop.eup %5500  ;;  %5015 = vmatpush1.bf16.msra.mxu1 %v5996_v45  ;;  %5040 = vmatpush3.bf16.msra.mxu0 %v5999_v55 }
 0x46f   :  { %v2152_v44 = vsub.f32 %v6351_v56, %v5501_v0  ;;  %5017 = vmatprep.subr.bf16.mxu1 %v6002_v57  ;;  %5041 = vmatprep.subr.bf16.mxu0 %v6810_v28  ;;  %v6856_v56 = vld [vmem:[#allocation13_spill] sm:$0xff] }
 0x471   :  { %v2153_v62 = vmul.f32 %v2152_v44, %v2147_v24 }
 0x472   :  { %5019 = vmatpush1.bf16.msra.mxu1 %v6006_v3  ;;  %5043 = vmatpush3.bf16.msra.mxu0 %v6009_v10 }
 0x473   :  { %v6439_v47 = vadd.f32 %v5501_v0, %v2153_v62  ;;  %5045 = vmatprep.subr.bf16.mxu0 %v5757_v22  ;;  %5076 = vmatprep.subr.bf16.mxu1 %v6810_v28  ;;  %v6868_v62 = vld [vmem:[#allocation43_spill] sm:$0xff] }
 0x475   :  { %2395 = vmatmul.mubr.f32.vlgmr.msra.gmra.mrb[18].mxu1 %v6439_v47  ;;  %4256 = vmatmul.mubr.f32.vlgmr.msra.gmra.mrb[28].mxu0 %v6439_v47 }
 0x476   :  { %5047 = vmatpush1.bf16.msra.mxu0 %v5807_v39  ;;  %5078 = vmatpush3.bf16.msra.mxu1 %v5809_v40 }
 0x477   :  { %5049 = vmatprep.subr.bf16.mxu0 %v5811_v42  ;;  %5079 = vmatprep.subr.bf16.mxu1 %v6810_v28 }
 0x478   :  { %2563 = vmatprep.mubr.f32.mxu0 %v6811_v32  ;;  %4290 = vmatprep.mubr.msk.f32.mxu1 %vm5630_vm1, %v6811_v32 }
 0x47a   :  { %5051 = vmatpush1.bf16.msra.mxu0 %v5817_v48  ;;  %5081 = vmatpush3.bf16.msra.mxu1 %v5819_v49 }
 0x47b   :  { %5053 = vmatprep.subr.bf16.mxu0 %v5826_v52  ;;  %5082 = vmatprep.subr.bf16.mxu1 %v6810_v28 }
 0x47e   :  { %5055 = vmatpush1.bf16.msra.mxu0 %v5837_v59  ;;  %5084 = vmatpush3.bf16.msra.mxu1 %v5839_v60 }
 0x47f   :  { %5057 = vmatprep.subr.bf16.mxu0 %v5843_v63  ;;  %5085 = vmatprep.subr.bf16.mxu1 %v6810_v28 }
 0x482   :  { %5059 = vmatpush1.bf16.msra.mxu0 %v5857_v7  ;;  %5087 = vmatpush3.bf16.msra.mxu1 %v5859_v8 }
 0x483   :  { %5061 = vmatprep.subr.bf16.mxu0 %v5868_v12  ;;  %5088 = vmatprep.subr.bf16.mxu1 %v6810_v28 }
 0x486   :  { %5063 = vmatpush1.bf16.msra.mxu0 %v5880_v18  ;;  %5090 = vmatpush3.bf16.msra.mxu1 %v6856_v56 }
 0x487   :  { %5065 = vmatprep.subr.bf16.mxu0 %v6857_v36  ;;  %5091 = vmatprep.subr.bf16.mxu1 %v6810_v28 }
 0x48a   :  { %5067 = vmatpush1.bf16.msra.mxu0 %v6858_v30  ;;  %5093 = vmatpush3.bf16.msra.mxu1 %v6859_v20  ;;  %v6869_v20 = vld [vmem:[#allocation32_spill] sm:$0xff] }
 0x48b   :  { %5069 = vmatprep.subr.bf16.mxu0 %v6860_v38  ;;  %5094 = vmatprep.subr.bf16.mxu1 %v6810_v28 }
 0x48e   :  { %5071 = vmatpush1.bf16.msra.mxu0 %v6861_v58  ;;  %5096 = vmatpush3.bf16.msra.mxu1 %v6862_v11 }
 0x48f   :  { %5073 = vmatprep.subr.bf16.mxu0 %v6863_v19  ;;  %5097 = vmatprep.subr.bf16.mxu1 %v6810_v28 }
 0x492   :  { %5075 = vmatpush1.bf16.msra.mxu0 %v6864_v29  ;;  %5099 = vmatpush3.bf16.msra.mxu1 %v6865_v61 }
 0x493   :  { %5101 = vmatprep.subr.bf16.mxu1 %v6866_v35  ;;  %5132 = vmatprep.subr.bf16.mxu0 %v6810_v28 }
 0x528   :  { %v2227_v43 = vpop.f32.mrb[8].mxu0  ;;  %v2298_v13 = vpop.f32.mrb[36].mxu1 }
 0x529   :  { %v5390_v53 = vadd.f32 %v2227_v43, %v6867_v54  ;;  %v2229_v0 = vpop.f32.mrb[9].mxu0  ;;  %v4222_v24 = vpop.f32.mrb[37].mxu1  ;;  %v2317_v61 = vadd.f32 %v6121_v41, %v2298_v13 }
 0x52a   :  { %v5391_v19 = vadd.f32 %v2229_v0, %v6868_v62 }
 0x52b   :  { %v2308_v44 = vmul.f32 0.5, %v5390_v53 }
 0x52c   :  { %v2313_v11 = vmul.f32 0.5, %v5391_v19 }
 0x52d   :  { %5502 = vtanh.f32 %v2308_v44 }
 0x52e   :  { %5504 = vtanh.f32 %v2313_v11 }
 0x537   :  { %v5503_v58 = vpop.eup %5502 }
 0x538   :  { %v2310_v38 = vadd.f32 1.0, %v5503_v58  ;;  %v5505_v36 = vpop.eup %5504 }
 0x539   :  { %v2315_v56 = vadd.f32 1.0, %v5505_v36 }
 0x53a   :  { %v2311_v29 = vmul.f32 0.5, %v2310_v38 }
 0x53b   :  { %v2316_v19 = vmul.f32 0.5, %v2315_v56 }
 0x53c   :  { %v2318_v35 = vmul.f32 %v2317_v61, %v2311_v29  ;;  %v6870_v61 = vld [vmem:[#allocation37_spill] sm:$0xff] }
 0x53e   :  { %v2319_v30 = vadd.f32 %v2318_v35, %v6869_v20 }
 0x540   :  { %5506 = vtanh.f32 %v2319_v30 }
 0x548   :  { %v2396_v43 = vpop.f32.mrb[18].mxu1  ;;  %v2467_v54 = vpop.f32.mrb[28].mxu0 }
 0x549   :  { %v5408_v53 = vadd.f32 %v2396_v43, %v6124_v31  ;;  %v2398_v24 = vpop.f32.mrb[19].mxu1  ;;  %v4257_v44 = vpop.f32.mrb[29].mxu0  ;;  %v2486_v11 = vadd.f32 %v6144_v21, %v2467_v54 }
 0x54a   :  { %v5507_v0 = vpop.eup %5506  ;;  %v5409_v36 = vadd.f32 %v2398_v24, %v6127_v37  ;;  %v6872_v44 = vld [vmem:[#allocation14_spill] sm:$0xff] }
 0x54b   :  { %v2321_v58 = vsub.f32 %v6398_v15, %v5507_v0  ;;  %v2477_v38 = vmul.f32 0.5, %v5408_v53 }
 0x54c   :  { %v2482_v15 = vmul.f32 0.5, %v5409_v36  ;;  %v6877_v36 = vld [vmem:[#allocation19_spill] sm:$0xff] }
 0x54d   :  { %v2322_v62 = vmul.f32 %v2321_v58, %v2316_v19  ;;  %5508 = vtanh.f32 %v2477_v38  ;;  %v6874_v19 = vld [vmem:[#allocation16_spill] sm:$0xff]  ;;  %v6875_v58 = vld [vmem:[#allocation17_spill] sm:$0xff]  ;;  %v6876_v38 = vld [vmem:[#allocation18_spill] sm:$0xff] }
 0x54e   :  { %5510 = vtanh.f32 %v2482_v15  ;;  %v6878_v15 = vld [vmem:[#allocation20_spill] sm:$0xff] }
 0x54f   :  { %v6486_v41 = vadd.f32 %v5507_v0, %v2322_v62  ;;  %v6873_v0 = vld [vmem:[#allocation15_spill] sm:$0xff] }
 0x551   :  { %2564 = vmatmul.mubr.f32.vlgmr.msra.gmra.mrb[10].mxu0 %v6486_v41  ;;  %4291 = vmatmul.mubr.f32.vlgmr.msra.gmra.mrb[38].mxu1 %v6486_v41 }
 0x552   :  { %5103 = vmatpush1.bf16.msra.mxu1 %v5930_v2  ;;  %5134 = vmatpush3.bf16.msra.mxu0 %v5932_v4 }
 0x553   :  { %5105 = vmatprep.subr.bf16.mxu1 %v5937_v5  ;;  %5135 = vmatprep.subr.bf16.mxu0 %v6810_v28 }
 0x554   :  { %2732 = vmatprep.mubr.f32.mxu1 %v6811_v32  ;;  %4325 = vmatprep.mubr.msk.f32.mxu0 %vm5630_vm1, %v6811_v32 }
 0x556   :  { %5107 = vmatpush1.bf16.msra.mxu1 %v5943_v14  ;;  %5137 = vmatpush3.bf16.msra.mxu0 %v5946_v16 }
 0x557   :  { %v5509_v56 = vpop.eup %5508  ;;  %5109 = vmatprep.subr.bf16.mxu1 %v5949_v17  ;;  %5138 = vmatprep.subr.bf16.mxu0 %v6810_v28 }
 0x558   :  { %v2479_v30 = vadd.f32 1.0, %v5509_v56  ;;  %v5511_v21 = vpop.eup %5510  ;;  %v6879_v56 = vld [vmem:[#allocation21_spill] sm:$0xff] }
 0x559   :  { %v2484_v13 = vadd.f32 1.0, %v5511_v21 }
 0x55a   :  { %v2480_v20 = vmul.f32 0.5, %v2479_v30  ;;  %5111 = vmatpush1.bf16.msra.mxu1 %v5956_v27  ;;  %5140 = vmatpush3.bf16.msra.mxu0 %v5959_v33  ;;  %v6880_v30 = vld [vmem:[#allocation22_spill] sm:$0xff] }
 0x55b   :  { %5113 = vmatprep.subr.bf16.mxu1 %v5962_v34  ;;  %5141 = vmatprep.subr.bf16.mxu0 %v6810_v28  ;;  %v2485_v62 = vmul.f32 0.5, %v2484_v13 }
 0x55c   :  { %v2487_v29 = vmul.f32 %v2486_v11, %v2480_v20  ;;  %v6881_v20 = vld [vmem:[#allocation23_spill] sm:$0xff] }
 0x55e   :  { %v2488_v35 = vadd.f32 %v2487_v29, %v6870_v61  ;;  %5115 = vmatpush1.bf16.msra.mxu1 %v5966_v46  ;;  %5143 = vmatpush3.bf16.msra.mxu0 %v5969_v50  ;;  %v6882_v61 = vld [vmem:[#allocation42_spill] sm:$0xff] }
 0x55f   :  { %5117 = vmatprep.subr.bf16.mxu1 %v5972_v51  ;;  %5144 = vmatprep.subr.bf16.mxu0 %v6810_v28 }
 0x560   :  { %5512 = vtanh.f32 %v2488_v35 }
 0x562   :  { %5119 = vmatpush1.bf16.msra.mxu1 %v5976_v1  ;;  %5146 = vmatpush3.bf16.msra.mxu0 %v5979_v6 }
 0x563   :  { %5121 = vmatprep.subr.bf16.mxu1 %v5982_v9  ;;  %5147 = vmatprep.subr.bf16.mxu0 %v6810_v28 }
 0x566   :  { %5123 = vmatpush1.bf16.msra.mxu1 %v5986_v23  ;;  %5149 = vmatpush3.bf16.msra.mxu0 %v5989_v25 }
 0x567   :  { %5125 = vmatprep.subr.bf16.mxu1 %v5992_v26  ;;  %5150 = vmatprep.subr.bf16.mxu0 %v6810_v28 }
 0x56a   :  { %v5513_v54 = vpop.eup %5512  ;;  %5127 = vmatpush1.bf16.msra.mxu1 %v5996_v45  ;;  %5152 = vmatpush3.bf16.msra.mxu0 %v5999_v55 }
 0x56b   :  { %v2490_v43 = vsub.f32 %v6439_v47, %v5513_v54  ;;  %5129 = vmatprep.subr.bf16.mxu1 %v6002_v57  ;;  %5153 = vmatprep.subr.bf16.mxu0 %v6810_v28  ;;  %v6871_v47 = vld [vmem:[#allocation13_spill] sm:$0xff] }
 0x56d   :  { %v2491_v53 = vmul.f32 %v2490_v43, %v2485_v62  ;;  %v6883_v62 = vld [vmem:[#allocation43_spill] sm:$0xff] }
 0x56e   :  { %5131 = vmatpush1.bf16.msra.mxu1 %v6006_v3  ;;  %5155 = vmatpush3.bf16.msra.mxu0 %v6009_v10 }
 0x56f   :  { %v6527_v24 = vadd.f32 %v5513_v54, %v2491_v53  ;;  %5157 = vmatprep.subr.bf16.mxu0 %v5757_v22  ;;  %5188 = vmatprep.subr.bf16.mxu1 %v6810_v28 }
 0x571   :  { %2733 = vmatmul.mubr.f32.vlgmr.msra.gmra.mrb[16].mxu1 %v6527_v24  ;;  %4326 = vmatmul.mubr.f32.vlgmr.msra.gmra.mrb[30].mxu0 %v6527_v24 }
 0x572   :  { %5159 = vmatpush1.bf16.msra.mxu0 %v5807_v39  ;;  %5190 = vmatpush3.bf16.msra.mxu1 %v5809_v40 }
 0x573   :  { %5161 = vmatprep.subr.bf16.mxu0 %v5811_v42  ;;  %5191 = vmatprep.subr.bf16.mxu1 %v6810_v28 }
 0x574   :  { %2901 = vmatprep.mubr.f32.mxu0 %v6811_v32  ;;  %4360 = vmatprep.mubr.msk.f32.mxu1 %vm5630_vm1, %v6811_v32 }
 0x576   :  { %5163 = vmatpush1.bf16.msra.mxu0 %v5817_v48  ;;  %5193 = vmatpush3.bf16.msra.mxu1 %v5819_v49 }
 0x577   :  { %5165 = vmatprep.subr.bf16.mxu0 %v5826_v52  ;;  %5194 = vmatprep.subr.bf16.mxu1 %v6810_v28 }
 0x57a   :  { %5167 = vmatpush1.bf16.msra.mxu0 %v5837_v59  ;;  %5196 = vmatpush3.bf16.msra.mxu1 %v5839_v60 }
 0x57b   :  { %5169 = vmatprep.subr.bf16.mxu0 %v5843_v63  ;;  %5197 = vmatprep.subr.bf16.mxu1 %v6810_v28 }
 0x57e   :  { %5171 = vmatpush1.bf16.msra.mxu0 %v5857_v7  ;;  %5199 = vmatpush3.bf16.msra.mxu1 %v5859_v8 }
 0x57f   :  { %5173 = vmatprep.subr.bf16.mxu0 %v5868_v12  ;;  %5200 = vmatprep.subr.bf16.mxu1 %v6810_v28 }
 0x582   :  { %5175 = vmatpush1.bf16.msra.mxu0 %v5880_v18  ;;  %5202 = vmatpush3.bf16.msra.mxu1 %v6871_v47 }
 0x583   :  { %5177 = vmatprep.subr.bf16.mxu0 %v6872_v44  ;;  %5203 = vmatprep.subr.bf16.mxu1 %v6810_v28 }
 0x586   :  { %5179 = vmatpush1.bf16.msra.mxu0 %v6873_v0  ;;  %5205 = vmatpush3.bf16.msra.mxu1 %v6874_v19 }
 0x587   :  { %5181 = vmatprep.subr.bf16.mxu0 %v6875_v58  ;;  %5206 = vmatprep.subr.bf16.mxu1 %v6810_v28 }
 0x58a   :  { %5183 = vmatpush1.bf16.msra.mxu0 %v6876_v38  ;;  %5208 = vmatpush3.bf16.msra.mxu1 %v6877_v36 }
 0x58b   :  { %5185 = vmatprep.subr.bf16.mxu0 %v6878_v15  ;;  %5209 = vmatprep.subr.bf16.mxu1 %v6810_v28 }
 0x58e   :  { %5187 = vmatpush1.bf16.msra.mxu0 %v6879_v56  ;;  %5211 = vmatpush3.bf16.msra.mxu1 %v6880_v30 }
 0x58f   :  { %5213 = vmatprep.subr.bf16.mxu1 %v6881_v20  ;;  %5244 = vmatprep.subr.bf16.mxu0 %v6810_v28  ;;  %v6573_v20 = vld [vmem:[%s6746_s8] ss:$0 sm:$0xff] }
 0x624   :  { %v2565_v11 = vpop.f32.mrb[10].mxu0  ;;  %v2636_v29 = vpop.f32.mrb[38].mxu1 }
 0x625   :  { %v5392_v35 = vadd.f32 %v2565_v11, %v6882_v61  ;;  %v2567_v21 = vpop.f32.mrb[11].mxu0  ;;  %v4292_v13 = vpop.f32.mrb[39].mxu1  ;;  %v2655_v30 = vadd.f32 %v6573_v20, %v2636_v29  ;;  %v6884_v11 = vld [vmem:[#allocation31_spill] sm:$0xff] }
 0x626   :  { %v5393_v43 = vadd.f32 %v2567_v21, %v6883_v62 }
 0x627   :  { %v2646_v54 = vmul.f32 0.5, %v5392_v35 }
 0x628   :  { %v2651_v53 = vmul.f32 0.5, %v5393_v43 }
 0x629   :  { %5514 = vtanh.f32 %v2646_v54 }
 0x62a   :  { %5516 = vtanh.f32 %v2651_v53 }
 0x633   :  { %v5515_v15 = vpop.eup %5514 }
 0x634   :  { %v2648_v36 = vadd.f32 1.0, %v5515_v15  ;;  %v5517_v35 = vpop.eup %5516 }
 0x635   :  { %v2653_v13 = vadd.f32 1.0, %v5517_v35 }
 0x636   :  { %v2649_v56 = vmul.f32 0.5, %v2648_v36 }
 0x637   :  { %v2654_v58 = vmul.f32 0.5, %v2653_v13 }
 0x638   :  { %v2656_v38 = vmul.f32 %v2655_v30, %v2649_v56 }
 0x63a   :  { %v2657_v61 = vadd.f32 %v2656_v38, %v6884_v11 }
 0x63c   :  { %5518 = vtanh.f32 %v2657_v61  ;;  %v6885_v61 = vld [vmem:[#allocation38_spill] sm:$0xff] }
 0x644   :  { %v2734_v54 = vpop.f32.mrb[16].mxu1  ;;  %v2805_v21 = vpop.f32.mrb[30].mxu0 }
 0x645   :  { %v5406_v43 = vadd.f32 %v2734_v54, %v6124_v31  ;;  %v2736_v15 = vpop.f32.mrb[17].mxu1  ;;  %v4327_v36 = vpop.f32.mrb[31].mxu0 }
 0x646   :  { %v5519_v62 = vpop.eup %5518  ;;  %v5407_v38 = vadd.f32 %v2736_v15, %v6127_v37 }
 0x647   :  { %v2659_v19 = vsub.f32 %v6486_v41, %v5519_v62  ;;  %v2815_v0 = vmul.f32 0.5, %v5406_v43 }
 0x648   :  { %v2820_v41 = vmul.f32 0.5, %v5407_v38 }
 0x649   :  { %v2660_v44 = vmul.f32 %v2659_v19, %v2654_v58  ;;  %5520 = vtanh.f32 %v2815_v0  ;;  %v6598_v58 = vld [vmem:[%s6747_s9] ss:$0 sm:$0xff]  ;;  %s5631_s9 = smov [#allocation9]  }
 0x64a   :  { %v2824_v56 = vadd.f32 %v6598_v58, %v2805_v21  ;;  %5522 = vtanh.f32 %v2820_v41  ;;  %s3520_s12 = sshll.u32 %s5631_s9, 4  ;;  %s3521_s12 = int_to_ptr.vmem [resolvable:$true] %s3520_s12 }
 0x64b   :  { %v6579_v29 = vadd.f32 %v5519_v62, %v2660_v44  ;;  %s5596_s13 = scalar_lea.vmem %s3521_s12, 256  ;;  %p5601_p3 = scmp.lt.s32.totalorder %s3521_s12, %s3521_s12 }
 0x64c   :  { %p5597_p2 = scmp.ne.s32.totalorder %s3521_s12, %s5596_s13  ;;  %p5602_p4 = scmp.lt.s32.totalorder %s5596_s13, %s5596_s13 }
 0x64d   :  { %2902 = vmatmul.mubr.f32.vlgmr.msra.gmra.mrb[32].mxu0 %v6579_v29  ;;  %4361 = vmatmul.mubr.f32.vlgmr.msra.gmra.mrb[40].mxu1 %v6579_v29 }
 0x64e   :  { %5215 = vmatpush1.bf16.msra.mxu1 %v5930_v2  ;;  %5246 = vmatpush3.bf16.msra.mxu0 %v5932_v4  ;;  %p5603_p5 = por %p5602_p4, %p5601_p3 }
 0x64f   :  { %5217 = vmatprep.subr.bf16.mxu1 %v5937_v5  ;;  %5247 = vmatprep.subr.bf16.mxu0 %v6810_v28 }
 0x650   :  { %3070 = vmatprep.mubr.f32.mxu1 %v6811_v32  ;;  %4395 = vmatprep.mubr.msk.f32.mxu0 %vm5630_vm1, %v6811_v32  ;;  %p5604_p6 = pnand %p5603_p5, %p5597_p2 }
 0x652   :  { %5219 = vmatpush1.bf16.msra.mxu1 %v5943_v14  ;;  %5249 = vmatpush3.bf16.msra.mxu0 %v5946_v16 }
 0x653   :  { %v5521_v44 = vpop.eup %5520  ;;  %5221 = vmatprep.subr.bf16.mxu1 %v5949_v17  ;;  %5250 = vmatprep.subr.bf16.mxu0 %v6810_v28 }
 0x654   :  { %v2817_v0 = vadd.f32 1.0, %v5521_v44  ;;  %v5523_v53 = vpop.eup %5522 }
 0x655   :  { %v2822_v11 = vadd.f32 1.0, %v5523_v53 }
 0x656   :  { %v2818_v19 = vmul.f32 0.5, %v2817_v0  ;;  %5223 = vmatpush1.bf16.msra.mxu1 %v5956_v27  ;;  %5252 = vmatpush3.bf16.msra.mxu0 %v5959_v33 }
 0x657   :  { %5225 = vmatprep.subr.bf16.mxu1 %v5962_v34  ;;  %5253 = vmatprep.subr.bf16.mxu0 %v6810_v28  ;;  %v2823_v13 = vmul.f32 0.5, %v2822_v11 }
 0x658   :  { %v2825_v30 = vmul.f32 %v2824_v56, %v2818_v19 }
 0x65a   :  { %v2826_v62 = vadd.f32 %v2825_v30, %v6885_v61  ;;  %5227 = vmatpush1.bf16.msra.mxu1 %v5966_v46  ;;  %5255 = vmatpush3.bf16.msra.mxu0 %v5969_v50 }
 0x65b   :  { %5229 = vmatprep.subr.bf16.mxu1 %v5972_v51  ;;  %5256 = vmatprep.subr.bf16.mxu0 %v6810_v28 }
 0x65c   :  { %5524 = vtanh.f32 %v2826_v62 }
 0x65e   :  { %5231 = vmatpush1.bf16.msra.mxu1 %v5976_v1  ;;  %5258 = vmatpush3.bf16.msra.mxu0 %v5979_v6 }
 0x65f   :  { %5233 = vmatprep.subr.bf16.mxu1 %v5982_v9  ;;  %5259 = vmatprep.subr.bf16.mxu0 %v6810_v28 }
 0x662   :  { %5235 = vmatpush1.bf16.msra.mxu1 %v5986_v23  ;;  %5261 = vmatpush3.bf16.msra.mxu0 %v5989_v25 }
 0x663   :  { %5237 = vmatprep.subr.bf16.mxu1 %v5992_v26  ;;  %5262 = vmatprep.subr.bf16.mxu0 %v6810_v28 }
 0x666   :  { %v5525_v35 = vpop.eup %5524  ;;  %5239 = vmatpush1.bf16.msra.mxu1 %v5996_v45  ;;  %5264 = vmatpush3.bf16.msra.mxu0 %v5999_v55 }
 0x667   :  { %v2828_v54 = vsub.f32 %v6527_v24, %v5525_v35  ;;  %5241 = vmatprep.subr.bf16.mxu1 %v6002_v57  ;;  %5265 = vmatprep.subr.bf16.mxu0 %v6810_v28  ;;  %v6899_v24 = vld [vmem:[#allocation25_spill] sm:$0xff] }
 0x669   :  { %v2829_v21 = vmul.f32 %v2828_v54, %v2823_v13 }
 0x66a   :  { %5243 = vmatpush1.bf16.msra.mxu1 %v6006_v3  ;;  %5267 = vmatpush3.bf16.msra.mxu0 %v6009_v10 }
 0x66b   :  { %v6625_v43 = vadd.f32 %v5525_v35, %v2829_v21  ;;  %5269 = vmatprep.subr.bf16.mxu0 %v5757_v22  ;;  %5300 = vmatprep.subr.bf16.mxu1 %v6810_v28  ;;  %v6886_v22 = vld [vmem:[#allocation14_spill] sm:$0xff] }
 0x66c   :  { %v6900_v35 = vld [vmem:[#allocation34_spill] sm:$0xff] }
 0x66d   :  { %3071 = vmatmul.mubr.f32.vlgmr.msra.gmra.mrb[14].mxu1 %v6625_v43  ;;  %4396 = vmatmul.mubr.f32.vlgmr.msra.gmra.mrb[34].mxu0 %v6625_v43 }
 0x66e   :  { %5271 = vmatpush1.bf16.msra.mxu0 %v5807_v39  ;;  %5302 = vmatpush3.bf16.msra.mxu1 %v5809_v40  ;;  %v6887_v39 = vld [vmem:[#allocation15_spill] sm:$0xff]  ;;  %v6888_v40 = vld [vmem:[#allocation16_spill] sm:$0xff] }
 0x66f   :  { %5273 = vmatprep.subr.bf16.mxu0 %v5811_v42  ;;  %5303 = vmatprep.subr.bf16.mxu1 %v6810_v28  ;;  %v6889_v42 = vld [vmem:[#allocation17_spill] sm:$0xff] }
 0x670   :  { %3239 = vmatprep.mubr.f32.mxu0 %v6811_v32  ;;  %4430 = vmatprep.mubr.msk.f32.mxu1 %vm5630_vm1, %v6811_v32 }
 0x672   :  { %5275 = vmatpush1.bf16.msra.mxu0 %v5817_v48  ;;  %5305 = vmatpush3.bf16.msra.mxu1 %v5819_v49  ;;  %v6890_v48 = vld [vmem:[#allocation18_spill] sm:$0xff]  ;;  %v6891_v49 = vld [vmem:[#allocation19_spill] sm:$0xff] }
 0x673   :  { %5277 = vmatprep.subr.bf16.mxu0 %v5826_v52  ;;  %5306 = vmatprep.subr.bf16.mxu1 %v6810_v28  ;;  %v6892_v52 = vld [vmem:[#allocation20_spill] sm:$0xff] }
 0x676   :  { %5279 = vmatpush1.bf16.msra.mxu0 %v5837_v59  ;;  %5308 = vmatpush3.bf16.msra.mxu1 %v5839_v60  ;;  %v6893_v59 = vld [vmem:[#allocation21_spill] sm:$0xff]  ;;  %v6894_v60 = vld [vmem:[#allocation22_spill] sm:$0xff] }
 0x677   :  { %5281 = vmatprep.subr.bf16.mxu0 %v5843_v63  ;;  %5309 = vmatprep.subr.bf16.mxu1 %v6810_v28  ;;  %v6895_v63 = vld [vmem:[#allocation23_spill] sm:$0xff] }
 0x67a   :  { %5283 = vmatpush1.bf16.msra.mxu0 %v5857_v7  ;;  %5311 = vmatpush3.bf16.msra.mxu1 %v5859_v8  ;;  %v6896_v7 = vld [vmem:[#allocation42_spill] sm:$0xff]  ;;  %v6897_v8 = vld [vmem:[#allocation24_spill] sm:$0xff] }
 0x67b   :  { %5285 = vmatprep.subr.bf16.mxu0 %v5868_v12  ;;  %5312 = vmatprep.subr.bf16.mxu1 %v6810_v28  ;;  %v251_v12 = vadd.f32 %v6897_v8, %v6896_v7 }
 0x67e   :  { %5287 = vmatpush1.bf16.msra.mxu0 %v5880_v18  ;;  %5314 = vmatpush3.bf16.msra.mxu1 %v6871_v47  ;;  %v6898_v18 = vld [vmem:[#allocation43_spill] sm:$0xff] }
 0x67f   :  { %5289 = vmatprep.subr.bf16.mxu0 %v6886_v22  ;;  %5315 = vmatprep.subr.bf16.mxu1 %v6810_v28  ;;  %v253_v47 = vadd.f32 %v6899_v24, %v6898_v18 }
 0x682   :  { %5291 = vmatpush1.bf16.msra.mxu0 %v6887_v39  ;;  %5317 = vmatpush3.bf16.msra.mxu1 %v6888_v40 }
 0x683   :  { %5293 = vmatprep.subr.bf16.mxu0 %v6889_v42  ;;  %5318 = vmatprep.subr.bf16.mxu1 %v6810_v28 }
 0x686   :  { %5295 = vmatpush1.bf16.msra.mxu0 %v6890_v48  ;;  %5320 = vmatpush3.bf16.msra.mxu1 %v6891_v49 }
 0x687   :  { %5297 = vmatprep.subr.bf16.mxu0 %v6892_v52  ;;  %5321 = vmatprep.subr.bf16.mxu1 %v6810_v28 }
 0x68a   :  { %5299 = vmatpush1.bf16.msra.mxu0 %v6893_v59  ;;  %5323 = vmatpush3.bf16.msra.mxu1 %v6894_v60 }
 0x68b   :  { %5325 = vmatprep.subr.bf16.mxu1 %v6895_v63  ;;  %5356 = vmatprep.subr.bf16.mxu0 %v6810_v28 }
 0x720   :  { %v2903_v15 = vpop.f32.mrb[32].mxu0  ;;  %v2974_v36 = vpop.f32.mrb[40].mxu1 }
 0x721   :  { %v2983_v38 = vadd.f32 %v2903_v15, %v251_v12  ;;  %v2905_v41 = vpop.f32.mrb[33].mxu0  ;;  %v4362_v44 = vpop.f32.mrb[41].mxu1  ;;  %v2993_v53 = vadd.f32 %v6573_v20, %v2974_v36 }
 0x722   :  { %v2988_v0 = vadd.f32 %v2905_v41, %v253_v47 }
 0x723   :  { %v2984_v19 = vmul.f32 0.5, %v2983_v38 }
 0x724   :  { %v2989_v56 = vmul.f32 0.5, %v2988_v0 }
 0x725   :  { %5526 = vtanh.f32 %v2984_v19 }
 0x726   :  { %5528 = vtanh.f32 %v2989_v56 }
 0x72f   :  { %v5527_v30 = vpop.eup %5526 }
 0x730   :  { %v2986_v61 = vadd.f32 1.0, %v5527_v30  ;;  %v5529_v54 = vpop.eup %5528 }
 0x731   :  { %v2991_v21 = vadd.f32 1.0, %v5529_v54 }
 0x732   :  { %v2987_v62 = vmul.f32 0.5, %v2986_v61 }
 0x733   :  { %v2992_v52 = vmul.f32 0.5, %v2991_v21 }
 0x734   :  { %v2994_v11 = vmul.f32 %v2993_v53, %v2987_v62 }
 0x736   :  { %v2995_v13 = vadd.f32 %v2994_v11, %v6900_v35 }
 0x738   :  { %5530 = vtanh.f32 %v2995_v13 }
 0x740   :  { %v3072_v22 = vpop.f32.mrb[14].mxu1  ;;  %v3143_v39 = vpop.f32.mrb[34].mxu0 }
 0x741   :  { %v5404_v40 = vadd.f32 %v3072_v22, %v6124_v31  ;;  %v3074_v42 = vpop.f32.mrb[15].mxu1  ;;  %v4397_v48 = vpop.f32.mrb[35].mxu0 }
 0x742   :  { %v5531_v49 = vpop.eup %5530  ;;  %v5405_v12 = vadd.f32 %v3074_v42, %v6127_v37  ;;  %v6905_v48 = vld [vmem:[#allocation36_spill] sm:$0xff] }
 0x743   :  { %v2997_v59 = vsub.f32 %v6579_v29, %v5531_v49  ;;  %v3153_v60 = vmul.f32 0.5, %v5404_v40 }
 0x744   :  { %v3158_v29 = vmul.f32 0.5, %v5405_v12 }
 0x745   :  { %v2998_v63 = vmul.f32 %v2997_v59, %v2992_v52  ;;  %5532 = vtanh.f32 %v3153_v60 }
 0x746   :  { %5534 = vtanh.f32 %v3158_v29 }
 0x747   :  { %v6674_v8 = vadd.f32 %v5531_v49, %v2998_v63 }
 0x749   :  { %3240 = vmatmul.mubr.f32.vlgmr.msra.gmra.mrb[36].mxu0 %v6674_v8  ;;  %4431 = vmatmul.mubr.f32.vlgmr.msra.gmra.mrb[42].mxu1 %v6674_v8 }
 0x74a   :  { %5327 = vmatpush1.bf16.msra.mxu1 %v5930_v2  ;;  %5358 = vmatpush3.bf16.msra.mxu0 %v5932_v4 }
 0x74b   :  { %5329 = vmatprep.subr.bf16.mxu1 %v5937_v5  ;;  %5359 = vmatprep.subr.bf16.mxu0 %v6810_v28  ;;  %v3162_v5 = vadd.f32 %v6598_v58, %v3143_v39 }
 0x74c   :  { %3408 = vmatprep.mubr.f32.mxu1 %v6811_v32  ;;  %4465 = vmatprep.mubr.msk.f32.mxu0 %vm5630_vm1, %v6811_v32 }
 0x74e   :  { %5331 = vmatpush1.bf16.msra.mxu1 %v5943_v14  ;;  %5361 = vmatpush3.bf16.msra.mxu0 %v5946_v16  ;;  %v6901_v16 = vld [vmem:[#allocation35_spill] sm:$0xff] }
 0x74f   :  { %v5533_v24 = vpop.eup %5532  ;;  %5333 = vmatprep.subr.bf16.mxu1 %v5949_v17  ;;  %5362 = vmatprep.subr.bf16.mxu0 %v6810_v28 }
 0x750   :  { %v3155_v2 = vadd.f32 1.0, %v5533_v24  ;;  %v5535_v17 = vpop.eup %5534 }
 0x752   :  { %v3156_v4 = vmul.f32 0.5, %v3155_v2  ;;  %5335 = vmatpush1.bf16.msra.mxu1 %v5956_v27  ;;  %5364 = vmatpush3.bf16.msra.mxu0 %v5959_v33  ;;  %v3160_v27 = vadd.f32 1.0, %v5535_v17 }
 0x753   :  { %5337 = vmatprep.subr.bf16.mxu1 %v5962_v34  ;;  %5365 = vmatprep.subr.bf16.mxu0 %v6810_v28 }
 0x754   :  { %v3163_v14 = vmul.f32 %v3162_v5, %v3156_v4  ;;  %v3161_v34 = vmul.f32 0.5, %v3160_v27 }
 0x756   :  { %v3164_v32 = vadd.f32 %v3163_v14, %v6901_v16  ;;  %5339 = vmatpush1.bf16.msra.mxu1 %v5966_v46  ;;  %5367 = vmatpush3.bf16.msra.mxu0 %v5969_v50 }
 0x757   :  { %5341 = vmatprep.subr.bf16.mxu1 %v5972_v51  ;;  %5368 = vmatprep.subr.bf16.mxu0 %v6810_v28 }
 0x758   :  { %5536 = vtanh.f32 %v3164_v32 }
 0x75a   :  { %5343 = vmatpush1.bf16.msra.mxu1 %v5976_v1  ;;  %5370 = vmatpush3.bf16.msra.mxu0 %v5979_v6  ;;  %v6902_v1 = vld [vmem:[#allocation26_spill] sm:$0xff] }
 0x75b   :  { %5345 = vmatprep.subr.bf16.mxu1 %v5982_v9  ;;  %5371 = vmatprep.subr.bf16.mxu0 %v6810_v28  ;;  %v257_v6 = vadd.f32 %v6902_v1, %v6896_v7  ;;  %v6903_v9 = vld [vmem:[#allocation27_spill] sm:$0xff]  ;;  %v6904_v7 = vld [vmem:[#allocation33_spill] sm:$0xff] }
 0x75e   :  { %5347 = vmatpush1.bf16.msra.mxu1 %v5986_v23  ;;  %5373 = vmatpush3.bf16.msra.mxu0 %v5989_v25  ;;  %v259_v23 = vadd.f32 %v6903_v9, %v6898_v18 }
 0x75f   :  { %5349 = vmatprep.subr.bf16.mxu1 %v5992_v26  ;;  %5374 = vmatprep.subr.bf16.mxu0 %v6810_v28 }
 0x762   :  { %v5537_v33 = vpop.eup %5536  ;;  %5351 = vmatpush1.bf16.msra.mxu1 %v5996_v45  ;;  %5376 = vmatpush3.bf16.msra.mxu0 %v5999_v55 }
 0x763   :  { %v3166_v46 = vsub.f32 %v6625_v43, %v5537_v33  ;;  %5353 = vmatprep.subr.bf16.mxu1 %v6002_v57  ;;  %5377 = vmatprep.subr.bf16.mxu0 %v6810_v28 }
 0x765   :  { %v3167_v50 = vmul.f32 %v3166_v46, %v3161_v34 }
 0x766   :  { %5355 = vmatpush1.bf16.msra.mxu1 %v6006_v3  ;;  %5379 = vmatpush3.bf16.msra.mxu0 %v6009_v10 }
 0x767   :  { %v3168_v51 = vadd.f32 %v5537_v33, %v3167_v50 }
 0x769   :  { %3409 = vmatmul.mubr.f32.vlgmr.msra.gmra.mrb[12].mxu1 %v3168_v51  ;;  %4466 = vmatmul.mubr.f32.vlgmr.msra.gmra.mrb[38].mxu0 %v3168_v51 }
 0x81c   :  { %v3241_v25 = vpop.f32.mrb[36].mxu0  ;;  %v3312_v26 = vpop.f32.mrb[42].mxu1 }
 0x81d   :  { %v3321_v45 = vadd.f32 %v3241_v25, %v257_v6  ;;  %v3243_v55 = vpop.f32.mrb[37].mxu0  ;;  %v4432_v57 = vpop.f32.mrb[43].mxu1  ;;  %v3331_v36 = vadd.f32 %v6573_v20, %v3312_v26 }
 0x81e   :  { %v3326_v28 = vadd.f32 %v3243_v55, %v259_v23 }
 0x81f   :  { %v3322_v43 = vmul.f32 0.5, %v3321_v45 }
 0x820   :  { %v3327_v3 = vmul.f32 0.5, %v3326_v28 }
 0x821   :  { %5538 = vtanh.f32 %v3322_v43 }
 0x822   :  { %5540 = vtanh.f32 %v3327_v3 }
 0x82b   :  { %v5539_v47 = vpop.eup %5538 }
 0x82c   :  { %v3324_v10 = vadd.f32 1.0, %v5539_v47  ;;  %v5541_v18 = vpop.eup %5540 }
 0x82d   :  { %v3329_v44 = vadd.f32 1.0, %v5541_v18 }
 0x82e   :  { %v3325_v15 = vmul.f32 0.5, %v3324_v10 }
 0x82f   :  { %v3330_v53 = vmul.f32 0.5, %v3329_v44 }
 0x830   :  { %v3332_v38 = vmul.f32 %v3331_v36, %v3325_v15 }
 0x832   :  { %v3333_v41 = vadd.f32 %v3332_v38, %v6904_v7 }
 0x834   :  { %5542 = vtanh.f32 %v3333_v41 }
 0x83c   :  { %v3410_v0 = vpop.f32.mrb[12].mxu1  ;;  %v3481_v19 = vpop.f32.mrb[38].mxu0 }
 0x83d   :  { %v5402_v56 = vadd.f32 %v3410_v0, %v6124_v31  ;;  %v3412_v30 = vpop.f32.mrb[13].mxu1  ;;  %v4467_v61 = vpop.f32.mrb[39].mxu0  ;;  %v3500_v42 = vadd.f32 %v6598_v58, %v3481_v19 }
 0x83e   :  { %v5543_v62 = vpop.eup %5542  ;;  %v5403_v54 = vadd.f32 %v3412_v30, %v6127_v37 }
 0x83f   :  { %v3335_v11 = vsub.f32 %v6674_v8, %v5543_v62  ;;  %v3491_v35 = vmul.f32 0.5, %v5402_v56 }
 0x840   :  { %v3496_v21 = vmul.f32 0.5, %v5403_v54 }
 0x841   :  { %v3336_v13 = vmul.f32 %v3335_v11, %v3330_v53  ;;  %5544 = vtanh.f32 %v3491_v35 }
 0x842   :  { %5546 = vtanh.f32 %v3496_v21 }
 0x843   :  { %v3337_v20 = vadd.f32 %v5543_v62, %v3336_v13 }
 0x845   :  { %3512 = vst [vmem:[#allocation9] sm:$0xff] %v3337_v20 }
 0x84b   :  { %v5545_v22 = vpop.eup %5544 }
 0x84c   :  { %v3493_v39 = vadd.f32 1.0, %v5545_v22  ;;  %v5547_v52 = vpop.eup %5546 }
 0x84d   :  { %v3498_v59 = vadd.f32 1.0, %v5547_v52 }
 0x84e   :  { %v3494_v40 = vmul.f32 0.5, %v3493_v39 }
 0x84f   :  { %v3499_v63 = vmul.f32 0.5, %v3498_v59 }
 0x850   :  { %v3501_v31 = vmul.f32 %v3500_v42, %v3494_v40 }
 0x852   :  { %v3502_v49 = vadd.f32 %v3501_v31, %v6905_v48 }
 0x854   :  { %5548 = vtanh.f32 %v3502_v49 }
 0x85e   :  { %v5549_v60 = vpop.eup %5548 }
 0x85f   :  { %v3504_v8 = vsub.f32 %v3168_v51, %v5549_v60 }
 0x861   :  { %v3505_v12 = vmul.f32 %v3504_v8, %v3499_v63 }
 0x863   :  { %v3506_v37 = vadd.f32 %v5549_v60, %v3505_v12 }
 0x865   :  { %3513 = vst [vmem:[#allocation9 + $0x8] sm:$0xff] %v3506_v37 }
 0x866   :  { %5607 = shalt.err (!%p5604_p6)
}
 0x867   :  { %s5608_s16 = scalar_lea.hbm %s6748_s10, 256 }
 0x868   :  { %p5609_p7 = scmp.ne.s32.totalorder %s6748_s10, %s5608_s16  ;;  %p5612_p8 = scmp.lt.u32.totalorder %s5608_s16, %s6748_s10 }
 0x86a   :  { %p5614_p9 = pnand %p5612_p8, %p5609_p7 }
 0x86c   :  { %5617 = shalt.err (!%p5614_p9)
}
 0x86d   :  { %3523 = dma.vmem_to_hbm [thread:$0]  %s3521_s12, 256, %s6748_s10, [#allocation6]  }
 0x86e   :  { %5622 = dma.done.wait [#allocation6], 256  }
 0x86f   :  { %5623 = vsyncadd [#allocation6], 4294967040 }
 0x870   :  { %3527 = vsyncpa [#allocation5], 1 }
 0x871   :  { %3528 = vsyncpa [#allocation8], 1 }
 0x872   :  { %3529 = vsyncpa [#allocation6], 1 }

</bundles_post_ra>
